<compile_context>
chip_gen: v7x
topology: tpu7x:2x2x1
jax: 0.10.0
libtpu: 0.0.40
codegen_flags: <defaults>
</compile_context>

<pallas_src>
import functools

import jax
import jax.numpy as jnp
from jax import lax
from jax.experimental import pallas as pl
from jax.experimental.pallas import tpu as pltpu

# ------------------------- configuration -------------------------
NUM_CLASS = 16
PRE_CHANNELS = 64          # conv7x7 output channels
NUM_OUT_CHANNEL = 64       # hparams.MODEL.LEARNABLE_OFFSET.NUM_OUT_CHANNEL
DISPLACE_PLANES = 128      # hparams.MODEL.LEARNABLE_OFFSET.NUM_OFFSET[0]
BN_EPS = 1e-5
CIN = 3
K_TAPS = 7                 # conv kernel size
KW_PACK = 24               # 7*3 = 21 (kw, cin) taps, zero-padded to 24 (8-aligned)


# ------------------------- Kernel A: conv7x7/s2 + bias + ReLU + maxpool3x3/s2 ---
def _conv_pool_kernel(xw_ref, w_ref, b_ref, o_ref, *, Ho, Wo, Hp, Wp, Hh):
  """Per image: 7x7 stride-2 conv (+bias, ReLU) then 3x3 stride-2 pad-1 max-pool.

  xw_ref: (1, 2*Hh, Wo, KW_PACK) bf16  width-im2col'ed + row-parity-packed input.
  w_ref : (7, KW_PACK, 64)       bf16  conv weights, one (kw,cin)->cout slab per kh.
  b_ref : (1, 64)                f32   conv bias.
  o_ref : (1, Hp*Wp, 64)         bf16  pooled features.
  """
  C = o_ref.shape[-1]

  # ---- conv: accumulate 7 row-tap matmuls (bf16 x bf16 -> f32) ----
  acc = jnp.zeros((Ho * Wo, C), jnp.float32)
  for kh in range(K_TAPS):
    start = (kh % 2) * Hh + kh // 2                     # contiguous rows of the
    slab = xw_ref[0, start:start + Ho, :, :]            # matching parity half
    acc = acc + jnp.dot(slab.reshape(Ho * Wo, KW_PACK), w_ref[kh],
                        preferred_element_type=jnp.float32)
  y = jnp.maximum(acc + b_ref[...], 0.0)                # bias + ReLU, (Ho*Wo, C)

  # ---- MaxPool2d(3, stride=2, padding=1) fused epilogue ----
  # Padding with 0 is exact here: y >= 0 after ReLU and every pool window
  # contains at least its (always valid) centre element.
  c3 = y.reshape(Ho, Wo, C)
  zrow = jnp.zeros((1, Wo, C), jnp.float32)
  up = jnp.concatenate([zrow, c3[:-1]], axis=0)         # row h-1
  dn = jnp.concatenate([c3[1:], zrow], axis=0)          # row h+1
  rmax = jnp.maximum(jnp.maximum(up, c3), dn)           # 3-max over rows at h
  rmax = rmax.reshape(Hp, 2, Wo, C)[:, 0]               # keep rows h = 2*hp

  # columns: 3-max over cols {2wp-1, 2wp, 2wp+1} via three tiny selection
  # matmuls (out-of-range row of the selector is all-zero -> contributes 0).
  rows_i = lax.broadcasted_iota(jnp.int32, (Hp, Wp, Wo), 1)
  cols_i = lax.broadcasted_iota(jnp.int32, (Hp, Wp, Wo), 2)
  pooled = None
  for off in (-1, 0, 1):
    selb = (cols_i == 2 * rows_i + off).astype(jnp.float32)   # (Hp, Wp, Wo)
    cand = jnp.einsum("hpw,hwc->hpc", selb, rmax,
                      preferred_element_type=jnp.float32)     # (Hp, Wp, C)
    pooled = cand if pooled is None else jnp.maximum(pooled, cand)

  o_ref[0] = pooled.reshape(Hp * Wp, C).astype(o_ref.dtype)


def conv_pool(xw_par, w_conv, b_conv, *, Ho, Wo, Hp, Wp, Hh):
  N = xw_par.shape[0]
  kernel = functools.partial(_conv_pool_kernel, Ho=Ho, Wo=Wo, Hp=Hp, Wp=Wp, Hh=Hh)
  return pl.pallas_call(
      kernel,
      out_shape=jax.ShapeDtypeStruct((N, Hp * Wp, PRE_CHANNELS), jnp.bfloat16),
      grid_spec=pltpu.PrefetchScalarGridSpec(
          num_scalar_prefetch=0,
          grid=(N,),
          in_specs=[
              pl.BlockSpec((1, 2 * Hh, Wo, KW_PACK), lambda n: (n, 0, 0, 0)),
              pl.BlockSpec((K_TAPS, KW_PACK, PRE_CHANNELS), lambda n: (0, 0, 0)),
              pl.BlockSpec((1, PRE_CHANNELS), lambda n: (0, 0)),
          ],
          out_specs=pl.BlockSpec((1, Hp * Wp, PRE_CHANNELS), lambda n: (n, 0, 0)),
      ),
      compiler_params=pltpu.CompilerParams(dimension_semantics=("parallel",)),
  )(xw_par, w_conv, b_conv)


# ------------------------- Kernel B: fused OffsetBlock + predictor ---------------
def _offset_predict_kernel(x_ref, w1_ref, b1_ref, w2_ref, b2_ref,
                           s1_ref, t1_ref, w3_ref, t2_ref, o_ref):
  """out = bn2(pred(relu(bn1(post(identity(pre(x))) + b2 + x))))  per (tm, C) tile."""
  x_bf = x_ref[...]                                            # (tm, 64) bf16
  # pre_offset: 1x1 conv 64 -> 128 (+ bias)
  h1 = jnp.dot(x_bf, w1_ref[...],
               preferred_element_type=jnp.float32) + b1_ref[...]
  # DisplaceChannel: identity under DISABLE_DISPLACE configuration.
  # post_offset: 1x1 conv 128 -> 64 (+ bias) + shortcut, then BN + ReLU
  h2 = (jnp.dot(h1.astype(jnp.bfloat16), w2_ref[...],
                preferred_element_type=jnp.float32)
        + b2_ref[...] + x_bf.astype(jnp.float32))
  h2 = jnp.maximum(h2 * s1_ref[...] + t1_ref[...], 0.0)
  # predictor: 1x1 conv (no bias, BN scale pre-folded into w3) + BN shift
  out = jnp.dot(h2.astype(jnp.bfloat16), w3_ref[...],
                preferred_element_type=jnp.float32) + t2_ref[...]
  o_ref[...] = out.astype(o_ref.dtype)


def offset_predict(x_flat, params, *, tm=256):
  M, C1 = x_flat.shape
  CD, NC = DISPLACE_PLANES, NUM_CLASS
  Mp = pl.cdiv(M, tm) * tm
  if Mp != M:                                   # pad tail tile (kept unmasked)
    x_flat = jnp.pad(x_flat, ((0, Mp - M), (0, 0)))
  out = pl.pallas_call(
      _offset_predict_kernel,
      out_shape=jax.ShapeDtypeStruct((Mp, NC), jnp.float32),
      grid_spec=pltpu.PrefetchScalarGridSpec(
          num_scalar_prefetch=0,
          grid=(Mp // tm,),
          in_specs=[
              pl.BlockSpec((tm, C1), lambda i: (i, 0)),   # activations
              pl.BlockSpec((C1, CD), lambda i: (0, 0)),   # w_pre_off   (resident)
              pl.BlockSpec((1, CD), lambda i: (0, 0)),    # b_pre_off
              pl.BlockSpec((CD, C1), lambda i: (0, 0)),   # w_post_off  (resident)
              pl.BlockSpec((1, C1), lambda i: (0, 0)),    # b_post_off
              pl.BlockSpec((1, C1), lambda i: (0, 0)),    # bn scale
              pl.BlockSpec((1, C1), lambda i: (0, 0)),    # bn shift
              pl.BlockSpec((C1, NC), lambda i: (0, 0)),   # w_pred * bn2_scale
              pl.BlockSpec((1, NC), lambda i: (0, 0)),    # bn2 shift
          ],
          out_specs=pl.BlockSpec((tm, NC), lambda i: (i, 0)),
      ),
      compiler_params=pltpu.CompilerParams(dimension_semantics=("parallel",)),
  )(x_flat, params["w_pre_off"], params["b_pre_off"],
    params["w_post_off"], params["b_post_off"],
    params["bn_blk_scale"], params["bn_blk_shift"],
    params["w_pred_folded"], params["bn_pred_shift"])
  return out[:M]


# ------------------------- parameter init (deterministic) -------------------------
def init_params(key):
  def uniform(k, shape, fan_in):
    bound = 1.0 / jnp.sqrt(jnp.float32(fan_in))
    return jax.random.uniform(k, shape, jnp.float32, -bound, bound)

  ks = jax.random.split(key, 8)
  params = {}

  # pre: Conv2d(3, 64, k=7, s=2, p=3, bias=True); torch layout (Cout, Cin, 7, 7)
  w_pre = uniform(ks[0], (PRE_CHANNELS, CIN, K_TAPS, K_TAPS), CIN * K_TAPS * K_TAPS)
  w_pre = jnp.transpose(w_pre, (2, 3, 1, 0)).reshape(K_TAPS, K_TAPS * CIN, PRE_CHANNELS)
  w_pre = jnp.pad(w_pre, ((0, 0), (0, KW_PACK - K_TAPS * CIN), (0, 0)))
  params["w_pre_conv"] = w_pre.astype(jnp.bfloat16)                 # (7, 24, 64)
  params["b_pre_conv"] = uniform(ks[1], (1, PRE_CHANNELS), CIN * K_TAPS * K_TAPS)

  # OffsetBlock.pre_offset: Conv2d(64, 128, 1)
  params["w_pre_off"] = uniform(ks[2], (PRE_CHANNELS, DISPLACE_PLANES),
                                PRE_CHANNELS).astype(jnp.bfloat16)
  params["b_pre_off"] = uniform(ks[3], (1, DISPLACE_PLANES), PRE_CHANNELS)

  # OffsetBlock.post_offset: Conv2d(128, 64, 1)
  params["w_post_off"] = uniform(ks[4], (DISPLACE_PLANES, NUM_OUT_CHANNEL),
                                 DISPLACE_PLANES).astype(jnp.bfloat16)
  params["b_post_off"] = uniform(ks[5], (1, NUM_OUT_CHANNEL), DISPLACE_PLANES)

  # OffsetBlock.bn (eval mode, torch defaults) -> scale/shift (applied AFTER skip add,
  # matching the reference: out_final = relu(bn(shortcut + post_offset(...))))
  params["bn_blk_scale"] = jnp.full((1, NUM_OUT_CHANNEL), 1.0 / jnp.sqrt(1.0 + BN_EPS),
                                    jnp.float32)
  params["bn_blk_shift"] = jnp.zeros((1, NUM_OUT_CHANNEL), jnp.float32)

  # predictor: Conv2d(64, num_class, 1, bias=False) + BatchNorm2d(num_class)
  w_pred = uniform(ks[6], (NUM_OUT_CHANNEL, NUM_CLASS), NUM_OUT_CHANNEL)
  bn2_scale = jnp.full((NUM_CLASS,), 1.0 / jnp.sqrt(1.0 + BN_EPS), jnp.float32)
  params["w_pred_folded"] = (w_pred * bn2_scale[None, :]).astype(jnp.bfloat16)
  params["bn_pred_shift"] = jnp.zeros((1, NUM_CLASS), jnp.float32)
  return params


# ------------------------- forward pass -------------------------
@jax.jit
def simple_estimator_forward(params, x_nchw):
  # layout: x_nchw is (N, 3, H, W) NCHW; output is (N, num_class, H//4, W//4) NCHW.
  N, Cin, H, W = x_nchw.shape
  assert Cin == CIN
  x = jnp.transpose(x_nchw, (0, 2, 3, 1)).astype(jnp.bfloat16)       # NHWC, bf16
  x_pad = jnp.pad(x, ((0, 0), (3, 3), (3, 3), (0, 0)))               # conv pad 3

  Ho = (H + 6 - 7) // 2 + 1
  Wo = (W + 6 - 7) // 2 + 1
  assert Ho % 2 == 0 and Wo % 2 == 0, "pool epilogue assumes even conv output size"
  Hp, Wp = Ho // 2, Wo // 2                                          # maxpool(3,2,1)

  # width-only im2col (stride 2): xw[n, r, wo, kw*CIN + c] = x_pad[n, r, 2*wo + kw, c]
  xw = jnp.concatenate(
      [x_pad[:, :, kw:kw + 2 * Wo:2, :] for kw in range(K_TAPS)], axis=-1)
  xw = jnp.pad(xw, ((0, 0), (0, 0), (0, 0), (0, KW_PACK - K_TAPS * CIN)))
  Hpad = xw.shape[1]
  if Hpad % 2:
    xw = jnp.pad(xw, ((0, 0), (0, 1), (0, 0), (0, 0)))
    Hpad += 1
  Hh = Hpad // 2
  # row-parity packing: even input rows first, odd rows after, so every conv row
  # tap becomes a contiguous leading-dim slice inside the kernel.
  xw_par = jnp.concatenate([xw[:, 0::2], xw[:, 1::2]], axis=1)       # (N, 2*Hh, Wo, 24)

  # Kernel A: fused conv + bias + ReLU + max-pool  -> (N, Hp*Wp, 64) bf16
  feat = conv_pool(xw_par, params["w_pre_conv"], params["b_pre_conv"],
                   Ho=Ho, Wo=Wo, Hp=Hp, Wp=Wp, Hh=Hh)
  x_flat = feat.reshape(N * Hp * Wp, PRE_CHANNELS)

  # Kernel B: fused OffsetBlock (pre_offset -> displace(identity) -> post_offset
  #           + shortcut -> BN -> ReLU) and predictor (1x1 conv + BN)
  out = offset_predict(x_flat, params)                               # (M, 16) f32

  out = out.reshape(N, Hp, Wp, NUM_CLASS)
  return jnp.transpose(out, (0, 3, 1, 2))                            # back to NCHW


# ------------------------- main -------------------------
if __name__ == "__main__":
  key = jax.random.PRNGKey(0)
  pkey, xkey = jax.random.split(key)
  params = init_params(pkey)

  # Input: (batch=2, channels=3, 64, 64) NCHW -> output spatial 16x16.
  x = jax.random.normal(xkey, (2, 3, 64, 64), dtype=jnp.float32)
  transform_features = None  # TRANSFORMER disabled in this configuration

  out = simple_estimator_forward(params, x)
  jax.block_until_ready(out)
  assert out.shape == (2, NUM_CLASS, 16, 16), out.shape
  print("KERNEL_OK")
</pallas_src>

<mosaic_0001>
module attributes {stable_mosaic.version = 11 : i64} {
  func.func @_conv_pool_kernel(%arg0: i32, %arg1: memref<1x70x32x24xbf16, #tpu.memory_space<vmem>>, %arg2: memref<7x24x64xbf16, #tpu.memory_space<vmem>>, %arg3: memref<1x64xf32, #tpu.memory_space<vmem>>, %arg4: memref<1x256x64xbf16, #tpu.memory_space<vmem>>) attributes {dimension_semantics = [#tpu.dimension_semantics<parallel>], iteration_bounds = array<i64: 2>, scalar_prefetch = 0 : i64, scratch_operands = 0 : i64, tpu.core_type = #tpu.core_type<tc>, window_params = [{transform_indices = @transform_0, window_bounds = array<i64: 1, 70, 32, 24>}, {pipeline_mode = #tpu.pipeline_mode<synchronous>, transform_indices = @transform_1, window_bounds = array<i64: 7, 24, 64>}, {pipeline_mode = #tpu.pipeline_mode<synchronous>, transform_indices = @transform_2, window_bounds = array<i64: 1, 64>}, {transform_indices = @transform_3, window_bounds = array<i64: 1, 256, 64>}]} {
    %cst = arith.constant 0.000000e+00 : f32
    %0 = vector.broadcast %cst : f32 to vector<1024x64xf32>
    %c0 = arith.constant 0 : index
    %c0_0 = arith.constant 0 : index
    %c0_1 = arith.constant 0 : index
    %c0_2 = arith.constant 0 : index
    %1 = vector.load %arg1[%c0, %c0_0, %c0_1, %c0_2] : memref<1x70x32x24xbf16, #tpu.memory_space<vmem>>, vector<1x32x32x24xbf16>
    %2 = vector.shape_cast %1 : vector<1x32x32x24xbf16> to vector<32x32x24xbf16>
    %3 = vector.shape_cast %2 : vector<32x32x24xbf16> to vector<1024x24xbf16>
    %c0_3 = arith.constant 0 : index
    %c0_4 = arith.constant 0 : index
    %c0_5 = arith.constant 0 : index
    %4 = vector.load %arg2[%c0_3, %c0_4, %c0_5] : memref<7x24x64xbf16, #tpu.memory_space<vmem>>, vector<1x24x64xbf16>
    %5 = vector.shape_cast %4 : vector<1x24x64xbf16> to vector<24x64xbf16>
    %cst_6 = arith.constant dense<0.000000e+00> : vector<1024x64xf32>
    %6 = tpu.matmul %3, %5, %cst_6 {dimension_numbers = #tpu.dot_dimension_numbers<[1], [0], [0], [1], [0, 0, 1, 1], [], []>} : vector<1024x24xbf16>, vector<24x64xbf16>, vector<1024x64xf32> -> vector<1024x64xf32>
    %7 = arith.addf %0, %6 : vector<1024x64xf32>
    %c0_7 = arith.constant 0 : index
    %c35 = arith.constant 35 : index
    %c0_8 = arith.constant 0 : index
    %c0_9 = arith.constant 0 : index
    %8 = vector.load %arg1[%c0_7, %c35, %c0_8, %c0_9] : memref<1x70x32x24xbf16, #tpu.memory_space<vmem>>, vector<1x32x32x24xbf16>
    %9 = vector.shape_cast %8 : vector<1x32x32x24xbf16> to vector<32x32x24xbf16>
    %10 = vector.shape_cast %9 : vector<32x32x24xbf16> to vector<1024x24xbf16>
    %c1 = arith.constant 1 : index
    %c0_10 = arith.constant 0 : index
    %c0_11 = arith.constant 0 : index
    %11 = vector.load %arg2[%c1, %c0_10, %c0_11] : memref<7x24x64xbf16, #tpu.memory_space<vmem>>, vector<1x24x64xbf16>
    %12 = vector.shape_cast %11 : vector<1x24x64xbf16> to vector<24x64xbf16>
    %cst_12 = arith.constant dense<0.000000e+00> : vector<1024x64xf32>
    %13 = tpu.matmul %10, %12, %cst_12 {dimension_numbers = #tpu.dot_dimension_numbers<[1], [0], [0], [1], [0, 0, 1, 1], [], []>} : vector<1024x24xbf16>, vector<24x64xbf16>, vector<1024x64xf32> -> vector<1024x64xf32>
    %14 = arith.addf %7, %13 : vector<1024x64xf32>
    %c0_13 = arith.constant 0 : index
    %c1_14 = arith.constant 1 : index
    %c0_15 = arith.constant 0 : index
    %c0_16 = arith.constant 0 : index
    %15 = vector.load %arg1[%c0_13, %c1_14, %c0_15, %c0_16] : memref<1x70x32x24xbf16, #tpu.memory_space<vmem>>, vector<1x32x32x24xbf16>
    %16 = vector.shape_cast %15 : vector<1x32x32x24xbf16> to vector<32x32x24xbf16>
    %17 = vector.shape_cast %16 : vector<32x32x24xbf16> to vector<1024x24xbf16>
    %c2 = arith.constant 2 : index
    %c0_17 = arith.constant 0 : index
    %c0_18 = arith.constant 0 : index
    %18 = vector.load %arg2[%c2, %c0_17, %c0_18] : memref<7x24x64xbf16, #tpu.memory_space<vmem>>, vector<1x24x64xbf16>
    %19 = vector.shape_cast %18 : vector<1x24x64xbf16> to vector<24x64xbf16>
    %cst_19 = arith.constant dense<0.000000e+00> : vector<1024x64xf32>
    %20 = tpu.matmul %17, %19, %cst_19 {dimension_numbers = #tpu.dot_dimension_numbers<[1], [0], [0], [1], [0, 0, 1, 1], [], []>} : vector<1024x24xbf16>, vector<24x64xbf16>, vector<1024x64xf32> -> vector<1024x64xf32>
    %21 = arith.addf %14, %20 : vector<1024x64xf32>
    %c0_20 = arith.constant 0 : index
    %c36 = arith.constant 36 : index
    %c0_21 = arith.constant 0 : index
    %c0_22 = arith.constant 0 : index
    %22 = vector.load %arg1[%c0_20, %c36, %c0_21, %c0_22] : memref<1x70x32x24xbf16, #tpu.memory_space<vmem>>, vector<1x32x32x24xbf16>
    %23 = vector.shape_cast %22 : vector<1x32x32x24xbf16> to vector<32x32x24xbf16>
    %24 = vector.shape_cast %23 : vector<32x32x24xbf16> to vector<1024x24xbf16>
    %c3 = arith.constant 3 : index
    %c0_23 = arith.constant 0 : index
    %c0_24 = arith.constant 0 : index
    %25 = vector.load %arg2[%c3, %c0_23, %c0_24] : memref<7x24x64xbf16, #tpu.memory_space<vmem>>, vector<1x24x64xbf16>
    %26 = vector.shape_cast %25 : vector<1x24x64xbf16> to vector<24x64xbf16>
    %cst_25 = arith.constant dense<0.000000e+00> : vector<1024x64xf32>
    %27 = tpu.matmul %24, %26, %cst_25 {dimension_numbers = #tpu.dot_dimension_numbers<[1], [0], [0], [1], [0, 0, 1, 1], [], []>} : vector<1024x24xbf16>, vector<24x64xbf16>, vector<1024x64xf32> -> vector<1024x64xf32>
    %28 = arith.addf %21, %27 : vector<1024x64xf32>
    %c0_26 = arith.constant 0 : index
    %c2_27 = arith.constant 2 : index
    %c0_28 = arith.constant 0 : index
    %c0_29 = arith.constant 0 : index
    %29 = vector.load %arg1[%c0_26, %c2_27, %c0_28, %c0_29] : memref<1x70x32x24xbf16, #tpu.memory_space<vmem>>, vector<1x32x32x24xbf16>
    %30 = vector.shape_cast %29 : vector<1x32x32x24xbf16> to vector<32x32x24xbf16>
    %31 = vector.shape_cast %30 : vector<32x32x24xbf16> to vector<1024x24xbf16>
    %c4 = arith.constant 4 : index
    %c0_30 = arith.constant 0 : index
    %c0_31 = arith.constant 0 : index
    %32 = vector.load %arg2[%c4, %c0_30, %c0_31] : memref<7x24x64xbf16, #tpu.memory_space<vmem>>, vector<1x24x64xbf16>
    %33 = vector.shape_cast %32 : vector<1x24x64xbf16> to vector<24x64xbf16>
    %cst_32 = arith.constant dense<0.000000e+00> : vector<1024x64xf32>
    %34 = tpu.matmul %31, %33, %cst_32 {dimension_numbers = #tpu.dot_dimension_numbers<[1], [0], [0], [1], [0, 0, 1, 1], [], []>} : vector<1024x24xbf16>, vector<24x64xbf16>, vector<1024x64xf32> -> vector<1024x64xf32>
    %35 = arith.addf %28, %34 : vector<1024x64xf32>
    %c0_33 = arith.constant 0 : index
    %c37 = arith.constant 37 : index
    %c0_34 = arith.constant 0 : index
    %c0_35 = arith.constant 0 : index
    %36 = vector.load %arg1[%c0_33, %c37, %c0_34, %c0_35] : memref<1x70x32x24xbf16, #tpu.memory_space<vmem>>, vector<1x32x32x24xbf16>
    %37 = vector.shape_cast %36 : vector<1x32x32x24xbf16> to vector<32x32x24xbf16>
    %38 = vector.shape_cast %37 : vector<32x32x24xbf16> to vector<1024x24xbf16>
    %c5 = arith.constant 5 : index
    %c0_36 = arith.constant 0 : index
    %c0_37 = arith.constant 0 : index
    %39 = vector.load %arg2[%c5, %c0_36, %c0_37] : memref<7x24x64xbf16, #tpu.memory_space<vmem>>, vector<1x24x64xbf16>
    %40 = vector.shape_cast %39 : vector<1x24x64xbf16> to vector<24x64xbf16>
    %cst_38 = arith.constant dense<0.000000e+00> : vector<1024x64xf32>
    %41 = tpu.matmul %38, %40, %cst_38 {dimension_numbers = #tpu.dot_dimension_numbers<[1], [0], [0], [1], [0, 0, 1, 1], [], []>} : vector<1024x24xbf16>, vector<24x64xbf16>, vector<1024x64xf32> -> vector<1024x64xf32>
    %42 = arith.addf %35, %41 : vector<1024x64xf32>
    %c0_39 = arith.constant 0 : index
    %c3_40 = arith.constant 3 : index
    %c0_41 = arith.constant 0 : index
    %c0_42 = arith.constant 0 : index
    %43 = vector.load %arg1[%c0_39, %c3_40, %c0_41, %c0_42] : memref<1x70x32x24xbf16, #tpu.memory_space<vmem>>, vector<1x32x32x24xbf16>
    %44 = vector.shape_cast %43 : vector<1x32x32x24xbf16> to vector<32x32x24xbf16>
    %45 = vector.shape_cast %44 : vector<32x32x24xbf16> to vector<1024x24xbf16>
    %c6 = arith.constant 6 : index
    %c0_43 = arith.constant 0 : index
    %c0_44 = arith.constant 0 : index
    %46 = vector.load %arg2[%c6, %c0_43, %c0_44] : memref<7x24x64xbf16, #tpu.memory_space<vmem>>, vector<1x24x64xbf16>
    %47 = vector.shape_cast %46 : vector<1x24x64xbf16> to vector<24x64xbf16>
    %cst_45 = arith.constant dense<0.000000e+00> : vector<1024x64xf32>
    %48 = tpu.matmul %45, %47, %cst_45 {dimension_numbers = #tpu.dot_dimension_numbers<[1], [0], [0], [1], [0, 0, 1, 1], [], []>} : vector<1024x24xbf16>, vector<24x64xbf16>, vector<1024x64xf32> -> vector<1024x64xf32>
    %49 = arith.addf %42, %48 : vector<1024x64xf32>
    %c0_46 = arith.constant 0 : index
    %c0_47 = arith.constant 0 : index
    %50 = vector.load %arg3[%c0_46, %c0_47] : memref<1x64xf32, #tpu.memory_space<vmem>>, vector<1x64xf32>
    %51 = vector.broadcast %50 : vector<1x64xf32> to vector<1024x64xf32>
    %52 = arith.addf %49, %51 : vector<1024x64xf32>
    %cst_48 = arith.constant 0.000000e+00 : f32
    %53 = vector.broadcast %cst_48 : f32 to vector<1024x64xf32>
    %54 = arith.maximumf %52, %53 : vector<1024x64xf32>
    %55 = vector.shape_cast %54 : vector<1024x64xf32> to vector<32x32x64xf32>
    %cst_49 = arith.constant 0.000000e+00 : f32
    %56 = vector.broadcast %cst_49 : f32 to vector<1x32x64xf32>
    %57 = vector.extract_strided_slice %55 {offsets = [0, 0, 0], sizes = [31, 32, 64], strides = [1, 1, 1]} : vector<32x32x64xf32> to vector<31x32x64xf32>
    %58 = tpu.concatenate %56, %57 in 0 : vector<1x32x64xf32>, vector<31x32x64xf32> -> vector<32x32x64xf32>
    %59 = vector.extract_strided_slice %55 {offsets = [1, 0, 0], sizes = [31, 32, 64], strides = [1, 1, 1]} : vector<32x32x64xf32> to vector<31x32x64xf32>
    %60 = tpu.concatenate %59, %56 in 0 : vector<31x32x64xf32>, vector<1x32x64xf32> -> vector<32x32x64xf32>
    %61 = arith.maximumf %58, %55 : vector<32x32x64xf32>
    %62 = arith.maximumf %61, %60 : vector<32x32x64xf32>
    %63 = vector.shape_cast %62 : vector<32x32x64xf32> to vector<16x2x32x64xf32>
    %64 = vector.extract_strided_slice %63 {offsets = [0, 0, 0, 0], sizes = [16, 1, 32, 64], strides = [1, 1, 1, 1]} : vector<16x2x32x64xf32> to vector<16x1x32x64xf32>
    %65 = vector.shape_cast %64 : vector<16x1x32x64xf32> to vector<16x32x64xf32>
    %66 = tpu.iota {dimensions = array<i32: 1>} : vector<16x16x32xi32>
    %67 = tpu.iota {dimensions = array<i32: 2>} : vector<16x16x32xi32>
    %c2_i32 = arith.constant 2 : i32
    %68 = vector.broadcast %c2_i32 : i32 to vector<16x16x32xi32>
    %69 = arith.muli %68, %66 : vector<16x16x32xi32>
    %c-1_i32 = arith.constant -1 : i32
    %70 = vector.broadcast %c-1_i32 : i32 to vector<16x16x32xi32>
    %71 = arith.addi %69, %70 : vector<16x16x32xi32>
    %72 = arith.cmpi eq, %67, %71 : vector<16x16x32xi32>
    %73 = arith.extui %72 : vector<16x16x32xi1> to vector<16x16x32xi32>
    %74 = arith.sitofp %73 : vector<16x16x32xi32> to vector<16x16x32xf32>
    "tpu.trace_start"() <{level = 10 : i32, message = "hpw,hwc->hpc"}> : () -> ()
    %cst_50 = arith.constant dense<0.000000e+00> : vector<16x16x64xf32>
    %75 = tpu.matmul %74, %65, %cst_50 {dimension_numbers = #tpu.dot_dimension_numbers<[2], [1], [1], [2], [0, 0, 0, 1, 1, 2], [0], [0]>} : vector<16x16x32xf32>, vector<16x32x64xf32>, vector<16x16x64xf32> -> vector<16x16x64xf32>
    "tpu.trace_stop"() : () -> ()
    %c2_i32_51 = arith.constant 2 : i32
    %76 = vector.broadcast %c2_i32_51 : i32 to vector<16x16x32xi32>
    %77 = arith.muli %76, %66 : vector<16x16x32xi32>
    %c0_i32 = arith.constant 0 : i32
    %78 = vector.broadcast %c0_i32 : i32 to vector<16x16x32xi32>
    %79 = arith.addi %77, %78 : vector<16x16x32xi32>
    %80 = arith.cmpi eq, %67, %79 : vector<16x16x32xi32>
    %81 = arith.extui %80 : vector<16x16x32xi1> to vector<16x16x32xi32>
    %82 = arith.sitofp %81 : vector<16x16x32xi32> to vector<16x16x32xf32>
    "tpu.trace_start"() <{level = 10 : i32, message = "hpw,hwc->hpc"}> : () -> ()
    %cst_52 = arith.constant dense<0.000000e+00> : vector<16x16x64xf32>
    %83 = tpu.matmul %82, %65, %cst_52 {dimension_numbers = #tpu.dot_dimension_numbers<[2], [1], [1], [2], [0, 0, 0, 1, 1, 2], [0], [0]>} : vector<16x16x32xf32>, vector<16x32x64xf32>, vector<16x16x64xf32> -> vector<16x16x64xf32>
    "tpu.trace_stop"() : () -> ()
    %84 = arith.maximumf %75, %83 : vector<16x16x64xf32>
    %c2_i32_53 = arith.constant 2 : i32
    %85 = vector.broadcast %c2_i32_53 : i32 to vector<16x16x32xi32>
    %86 = arith.muli %85, %66 : vector<16x16x32xi32>
    %c1_i32 = arith.constant 1 : i32
    %87 = vector.broadcast %c1_i32 : i32 to vector<16x16x32xi32>
    %88 = arith.addi %86, %87 : vector<16x16x32xi32>
    %89 = arith.cmpi eq, %67, %88 : vector<16x16x32xi32>
    %90 = arith.extui %89 : vector<16x16x32xi1> to vector<16x16x32xi32>
    %91 = arith.sitofp %90 : vector<16x16x32xi32> to vector<16x16x32xf32>
    "tpu.trace_start"() <{level = 10 : i32, message = "hpw,hwc->hpc"}> : () -> ()
    %cst_54 = arith.constant dense<0.000000e+00> : vector<16x16x64xf32>
    %92 = tpu.matmul %91, %65, %cst_54 {dimension_numbers = #tpu.dot_dimension_numbers<[2], [1], [1], [2], [0, 0, 0, 1, 1, 2], [0], [0]>} : vector<16x16x32xf32>, vector<16x32x64xf32>, vector<16x16x64xf32> -> vector<16x16x64xf32>
    "tpu.trace_stop"() : () -> ()
    %93 = arith.maximumf %84, %92 : vector<16x16x64xf32>
    %94 = vector.shape_cast %93 : vector<16x16x64xf32> to vector<256x64xf32>
    %95 = arith.truncf %94 : vector<256x64xf32> to vector<256x64xbf16>
    %c0_55 = arith.constant 0 : index
    %c0_56 = arith.constant 0 : index
    %c0_57 = arith.constant 0 : index
    %96 = vector.load %arg4[%c0_55, %c0_56, %c0_57] : memref<1x256x64xbf16, #tpu.memory_space<vmem>>, vector<1x256x64xbf16>
    %97 = vector.shape_cast %96 : vector<1x256x64xbf16> to vector<256x64xbf16>
    %98 = vector.shape_cast %95 : vector<256x64xbf16> to vector<1x256x64xbf16>
    tpu.vector_store %arg4[%c0_55, %c0_56, %c0_57], %98 {strides = array<i32>} : memref<1x256x64xbf16, #tpu.memory_space<vmem>>, vector<1x256x64xbf16>,
    return
  }
  func.func @transform_0(%arg0: i32) -> (i32, i32, i32, i32) {
    %c0_i32 = arith.constant 0 : i32
    %c0_i32_0 = arith.constant 0 : i32
    %c0_i32_1 = arith.constant 0 : i32
    %c0_i32_2 = arith.constant 0 : i32
    return %arg0, %c0_i32, %c0_i32_0, %c0_i32_1 : i32, i32, i32, i32
  }
  func.func @transform_1(%arg0: i32) -> (i32, i32, i32) {
    %c0_i32 = arith.constant 0 : i32
    %c0_i32_0 = arith.constant 0 : i32
    %c0_i32_1 = arith.constant 0 : i32
    %c0_i32_2 = arith.constant 0 : i32
    return %c0_i32, %c0_i32_0, %c0_i32_1 : i32, i32, i32
  }
  func.func @transform_2(%arg0: i32) -> (i32, i32) {
    %c0_i32 = arith.constant 0 : i32
    %c0_i32_0 = arith.constant 0 : i32
    %c0_i32_1 = arith.constant 0 : i32
    return %c0_i32, %c0_i32_0 : i32, i32
  }
  func.func @transform_3(%arg0: i32) -> (i32, i32, i32) {
    %c0_i32 = arith.constant 0 : i32
    %c0_i32_0 = arith.constant 0 : i32
    %c0_i32_1 = arith.constant 0 : i32
    return %arg0, %c0_i32, %c0_i32_0 : i32, i32, i32
  }
}

module attributes {stable_mosaic.version = 11 : i64} {
  func.func @_offset_predict_kernel(%arg0: i32, %arg1: memref<256x64xbf16, #tpu.memory_space<vmem>>, %arg2: memref<64x128xbf16, #tpu.memory_space<vmem>>, %arg3: memref<1x128xf32, #tpu.memory_space<vmem>>, %arg4: memref<128x64xbf16, #tpu.memory_space<vmem>>, %arg5: memref<1x64xf32, #tpu.memory_space<vmem>>, %arg6: memref<1x64xf32, #tpu.memory_space<vmem>>, %arg7: memref<1x64xf32, #tpu.memory_space<vmem>>, %arg8: memref<64x16xbf16, #tpu.memory_space<vmem>>, %arg9: memref<1x16xf32, #tpu.memory_space<vmem>>, %arg10: memref<256x16xf32, #tpu.memory_space<vmem>>) attributes {dimension_semantics = [#tpu.dimension_semantics<parallel>], iteration_bounds = array<i64: 2>, scalar_prefetch = 0 : i64, scratch_operands = 0 : i64, tpu.core_type = #tpu.core_type<tc>, window_params = [{transform_indices = @transform_0, window_bounds = array<i64: 256, 64>}, {pipeline_mode = #tpu.pipeline_mode<synchronous>, transform_indices = @transform_1, window_bounds = array<i64: 64, 128>}, {pipeline_mode = #tpu.pipeline_mode<synchronous>, transform_indices = @transform_2, window_bounds = array<i64: 1, 128>}, {pipeline_mode = #tpu.pipeline_mode<synchronous>, transform_indices = @transform_3, window_bounds = array<i64: 128, 64>}, {pipeline_mode = #tpu.pipeline_mode<synchronous>, transform_indices = @transform_4, window_bounds = array<i64: 1, 64>}, {pipeline_mode = #tpu.pipeline_mode<synchronous>, transform_indices = @transform_5, window_bounds = array<i64: 1, 64>}, {pipeline_mode = #tpu.pipeline_mode<synchronous>, transform_indices = @transform_6, window_bounds = array<i64: 1, 64>}, {pipeline_mode = #tpu.pipeline_mode<synchronous>, transform_indices = @transform_7, window_bounds = array<i64: 64, 16>}, {pipeline_mode = #tpu.pipeline_mode<synchronous>, transform_indices = @transform_8, window_bounds = array<i64: 1, 16>}, {transform_indices = @transform_9, window_bounds = array<i64: 256, 16>}]} {
    %c0 = arith.constant 0 : index
    %c0_0 = arith.constant 0 : index
    %0 = vector.load %arg1[%c0, %c0_0] : memref<256x64xbf16, #tpu.memory_space<vmem>>, vector<256x64xbf16>
    %c0_1 = arith.constant 0 : index
    %c0_2 = arith.constant 0 : index
    %1 = vector.load %arg2[%c0_1, %c0_2] : memref<64x128xbf16, #tpu.memory_space<vmem>>, vector<64x128xbf16>
    %cst = arith.constant dense<0.000000e+00> : vector<256x128xf32>
    %2 = tpu.matmul %0, %1, %cst {dimension_numbers = #tpu.dot_dimension_numbers<[1], [0], [0], [1], [0, 0, 1, 1], [], []>} : vector<256x64xbf16>, vector<64x128xbf16>, vector<256x128xf32> -> vector<256x128xf32>
    %c0_3 = arith.constant 0 : index
    %c0_4 = arith.constant 0 : index
    %3 = vector.load %arg3[%c0_3, %c0_4] : memref<1x128xf32, #tpu.memory_space<vmem>>, vector<1x128xf32>
    %4 = vector.broadcast %3 : vector<1x128xf32> to vector<256x128xf32>
    %5 = arith.addf %2, %4 : vector<256x128xf32>
    %6 = arith.truncf %5 : vector<256x128xf32> to vector<256x128xbf16>
    %c0_5 = arith.constant 0 : index
    %c0_6 = arith.constant 0 : index
    %7 = vector.load %arg4[%c0_5, %c0_6] : memref<128x64xbf16, #tpu.memory_space<vmem>>, vector<128x64xbf16>
    %cst_7 = arith.constant dense<0.000000e+00> : vector<256x64xf32>
    %8 = tpu.matmul %6, %7, %cst_7 {dimension_numbers = #tpu.dot_dimension_numbers<[1], [0], [0], [1], [0, 0, 1, 1], [], []>} : vector<256x128xbf16>, vector<128x64xbf16>, vector<256x64xf32> -> vector<256x64xf32>
    %c0_8 = arith.constant 0 : index
    %c0_9 = arith.constant 0 : index
    %9 = vector.load %arg5[%c0_8, %c0_9] : memref<1x64xf32, #tpu.memory_space<vmem>>, vector<1x64xf32>
    %10 = vector.broadcast %9 : vector<1x64xf32> to vector<256x64xf32>
    %11 = arith.addf %8, %10 : vector<256x64xf32>
    %12 = arith.extf %0 : vector<256x64xbf16> to vector<256x64xf32>
    %13 = arith.addf %11, %12 : vector<256x64xf32>
    %c0_10 = arith.constant 0 : index
    %c0_11 = arith.constant 0 : index
    %14 = vector.load %arg6[%c0_10, %c0_11] : memref<1x64xf32, #tpu.memory_space<vmem>>, vector<1x64xf32>
    %15 = vector.broadcast %14 : vector<1x64xf32> to vector<256x64xf32>
    %16 = arith.mulf %13, %15 : vector<256x64xf32>
    %c0_12 = arith.constant 0 : index
    %c0_13 = arith.constant 0 : index
    %17 = vector.load %arg7[%c0_12, %c0_13] : memref<1x64xf32, #tpu.memory_space<vmem>>, vector<1x64xf32>
    %18 = vector.broadcast %17 : vector<1x64xf32> to vector<256x64xf32>
    %19 = arith.addf %16, %18 : vector<256x64xf32>
    %cst_14 = arith.constant 0.000000e+00 : f32
    %20 = vector.broadcast %cst_14 : f32 to vector<256x64xf32>
    %21 = arith.maximumf %19, %20 : vector<256x64xf32>
    %22 = arith.truncf %21 : vector<256x64xf32> to vector<256x64xbf16>
    %c0_15 = arith.constant 0 : index
    %c0_16 = arith.constant 0 : index
    %23 = vector.load %arg8[%c0_15, %c0_16] : memref<64x16xbf16, #tpu.memory_space<vmem>>, vector<64x16xbf16>
    %cst_17 = arith.constant dense<0.000000e+00> : vector<256x16xf32>
    %24 = tpu.matmul %22, %23, %cst_17 {dimension_numbers = #tpu.dot_dimension_numbers<[1], [0], [0], [1], [0, 0, 1, 1], [], []>} : vector<256x64xbf16>, vector<64x16xbf16>, vector<256x16xf32> -> vector<256x16xf32>
    %c0_18 = arith.constant 0 : index
    %c0_19 = arith.constant 0 : index
    %25 = vector.load %arg9[%c0_18, %c0_19] : memref<1x16xf32, #tpu.memory_space<vmem>>, vector<1x16xf32>
    %26 = vector.broadcast %25 : vector<1x16xf32> to vector<256x16xf32>
    %27 = arith.addf %24, %26 : vector<256x16xf32>
    %c0_20 = arith.constant 0 : index
    %c0_21 = arith.constant 0 : index
    %28 = vector.load %arg10[%c0_20, %c0_21] : memref<256x16xf32, #tpu.memory_space<vmem>>, vector<256x16xf32>
    tpu.vector_store %arg10[%c0_20, %c0_21], %27 {strides = array<i32>} : memref<256x16xf32, #tpu.memory_space<vmem>>, vector<256x16xf32>,
    return
  }
  func.func @transform_0(%arg0: i32) -> (i32, i32) {
    %c0_i32 = arith.constant 0 : i32
    %c0_i32_0 = arith.constant 0 : i32
    return %arg0, %c0_i32 : i32, i32
  }
  func.func @transform_1(%arg0: i32) -> (i32, i32) {
    %c0_i32 = arith.constant 0 : i32
    %c0_i32_0 = arith.constant 0 : i32
    %c0_i32_1 = arith.constant 0 : i32
    return %c0_i32, %c0_i32_0 : i32, i32
  }
  func.func @transform_2(%arg0: i32) -> (i32, i32) {
    %c0_i32 = arith.constant 0 : i32
    %c0_i32_0 = arith.constant 0 : i32
    %c0_i32_1 = arith.constant 0 : i32
    return %c0_i32, %c0_i32_0 : i32, i32
  }
  func.func @transform_3(%arg0: i32) -> (i32, i32) {
    %c0_i32 = arith.constant 0 : i32
    %c0_i32_0 = arith.constant 0 : i32
    %c0_i32_1 = arith.constant 0 : i32
    return %c0_i32, %c0_i32_0 : i32, i32
  }
  func.func @transform_4(%arg0: i32) -> (i32, i32) {
    %c0_i32 = arith.constant 0 : i32
    %c0_i32_0 = arith.constant 0 : i32
    %c0_i32_1 = arith.constant 0 : i32
    return %c0_i32, %c0_i32_0 : i32, i32
  }
  func.func @transform_5(%arg0: i32) -> (i32, i32) {
    %c0_i32 = arith.constant 0 : i32
    %c0_i32_0 = arith.constant 0 : i32
    %c0_i32_1 = arith.constant 0 : i32
    return %c0_i32, %c0_i32_0 : i32, i32
  }
  func.func @transform_6(%arg0: i32) -> (i32, i32) {
    %c0_i32 = arith.constant 0 : i32
    %c0_i32_0 = arith.constant 0 : i32
    %c0_i32_1 = arith.constant 0 : i32
    return %c0_i32, %c0_i32_0 : i32, i32
  }
  func.func @transform_7(%arg0: i32) -> (i32, i32) {
    %c0_i32 = arith.constant 0 : i32
    %c0_i32_0 = arith.constant 0 : i32
    %c0_i32_1 = arith.constant 0 : i32
    return %c0_i32, %c0_i32_0 : i32, i32
  }
  func.func @transform_8(%arg0: i32) -> (i32, i32) {
    %c0_i32 = arith.constant 0 : i32
    %c0_i32_0 = arith.constant 0 : i32
    %c0_i32_1 = arith.constant 0 : i32
    return %c0_i32, %c0_i32_0 : i32, i32
  }
  func.func @transform_9(%arg0: i32) -> (i32, i32) {
    %c0_i32 = arith.constant 0 : i32
    %c0_i32_0 = arith.constant 0 : i32
    return %arg0, %c0_i32 : i32, i32
  }
}

</mosaic_0001>

<bundles_post_ra>
// kernel: simple_estimator_forward.3
= control target key start
LH: loop header
LB: loop body
LE: loop exit
PB: predicated region body
PF: predicated region fallthrough
CT: control target
= control target key end

     0   :  { %s1867_s30 = smov 0   ;;  %s2338_s0 = inlined_call_operand.vmem [shape: bf16[512,64], index: 0, kind: input, shape index: {}]   ;;  %s2339_s1 = inlined_call_operand.vmem [shape: bf16[64,128], index: 1, kind: input, shape index: {}]   ;;  %s2340_s2 = inlined_call_operand.vmem [shape: f32[1,128], index: 2, kind: input, shape index: {}]   ;;  %s2341_s3 = inlined_call_operand.vmem [shape: bf16[128,64], index: 3, kind: input, shape index: {}]   ;;  %s2342_s4 = inlined_call_operand.vmem [shape: f32[1,64], index: 4, kind: input, shape index: {}]   ;;  %s2343_s5 = inlined_call_operand.vmem [shape: f32[1,64], index: 5, kind: input, shape index: {}]   ;;  %s2344_s6 = inlined_call_operand.vmem [shape: f32[1,64], index: 6, kind: input, shape index: {}]   ;;  %s2345_s7 = inlined_call_operand.vmem [shape: bf16[64,16], index: 7, kind: input, shape index: {}]   ;;  %s2346_s8 = inlined_call_operand.vmem [shape: f32[1,16], index: 8, kind: input, shape index: {}]   ;;  %s2347_s9 = inlined_call_operand.vmem [shape: f32[512,16], index: 9, kind: output, shape index: {}]  }
   0x1 LB: > { %s1473_s10 = sadd.s32 4294967295, %s1815_s30   ;;  %p1477_p0 = scmp.ge.s32.totalorder %s1815_s30, 1  ;;  %s1815_s30 = sphi %s1867_s30, %s19_s30  }
   0x2   : > { %p288_p1 = scmp.lt.s32.totalorder %s1815_s30, 3 }
   0x4   : > { %p289_p2 = pnand %p1477_p0, %p288_p1 }
   0x5   : > { %v1761_v0 = vld [vmem:[%s2339_s1] sm:$0xff] (!%p289_p2)   ;;  %s1478_s13 = sshll.u32 (!%p289_p2), %s1473_s10, 5  ;;  %v1762_v1 = vld [vmem:[%s2339_s1 + $0x8] sm:$0xff] (!%p289_p2)   ;;  %v1763_v2 = vld [vmem:[%s2339_s1 + $0x10] sm:$0xff] (!%p289_p2)   ;;  %vm488_vm0 = vcmask (!%p289_p2), 523264   ;;  %vm1384_vm1 = vcmask (!%p289_p2), 130048  }
   0x6   : > { %292 = sbr.rel (%p289_p2) target bundleno = 744 (0x2e8), region = 56  ;;  %p325_p3 = scmp.lt.s32.totalorder (!%p289_p2), %s1478_s13, 63  ;;  %1617 = vmatprep.subr.bf16.mxu0 (!%p289_p2), %v1761_v0  ;;  %1745 = vmatprep.subr.bf16.mxu1 (!%p289_p2), %v1761_v0  ;;  %v1764_v4 = vld [vmem:[%s2339_s1 + $0x18] sm:$0xff] (!%p289_p2)   ;;  %v1781_v6 = vld [vmem:[%s2341_s3] sm:$0xff] (!%p289_p2)   ;;  %v1782_v11 = vld [vmem:[%s2341_s3 + $0x8] sm:$0xff] (!%p289_p2)  }
   0x7   : > { %1618 = vmatpush3.bf16.msra.mxu0 (!%p289_p2), %v1761_v0  ;;  %1749 = vmatpush3.bf16.msra.mxu1 (!%p289_p2), %v1761_v0  ;;  %v1783_v16 = vld [vmem:[%s2341_s3 + $0x10] sm:$0xff] (!%p289_p2)   ;;  %v1784_v17 = vld [vmem:[%s2341_s3 + $0x18] sm:$0xff] (!%p289_p2)   ;;  %v1785_v22 = vld [vmem:[%s2341_s3 + $0x20] sm:$0xff] (!%p289_p2)  }
   0x8   : > { %1619 = vmatprep.subr.bf16.mxu0 (!%p289_p2), %v1762_v1  ;;  %1746 = vmatprep.subr.bf16.mxu1 (!%p289_p2), %v1762_v1  ;;  %v1786_v23 = vld [vmem:[%s2341_s3 + $0x28] sm:$0xff] (!%p289_p2)   ;;  %v1787_v26 = vld [vmem:[%s2341_s3 + $0x30] sm:$0xff] (!%p289_p2)   ;;  %v1788_v27 = vld [vmem:[%s2341_s3 + $0x38] sm:$0xff] (!%p289_p2)  }
   0x9   : > { %v1789_v28 = vld [vmem:[%s2345_s7] sm:$0xff] (!%p289_p2)   ;;  %v1790_v29 = vld [vmem:[%s2345_s7 + $0x8] sm:$0xff] (!%p289_p2)  }
   0xa   : > { %v2008_v31 = vld [vmem:[%s2340_s2] ss:$0 sm:$0xff] (!%p289_p2) }
   0xb   : > { %1620 = vmatpush3.bf16.msra.mxu0 (!%p289_p2), %v1762_v1  ;;  %1750 = vmatpush3.bf16.msra.mxu1 (!%p289_p2), %v1762_v1 }
   0xc   : > { %1621 = vmatprep.subr.bf16.mxu0 (!%p289_p2), %v1763_v2  ;;  %1747 = vmatprep.subr.bf16.mxu1 (!%p289_p2), %v1763_v2 }
   0xd   : > { %s2349_s13 = smov (!%p325_p3, %s1478_s13), 63 }
   0xe   : > { %s1479_s18 = sshll.u32 %s2349_s13, 2 }
   0xf   : > { %s1890_s21 = scalar_lea.vmem %s2338_s0, %s1479_s18  ;;  %1622 = vmatpush3.bf16.msra.mxu0 %v1763_v2  ;;  %1751 = vmatpush3.bf16.msra.mxu1 %v1763_v2  ;;  %s1481_s18 = sshll.u32 %s2349_s13, 3 }
  0x10   : > { %v1893_v3 = vld [vmem:[%s1890_s21] sm:$0xff]   ;;  %v1907_v7 = vld [vmem:[%s1890_s21 + $0x8] sm:$0xff]   ;;  %v1910_v8 = vld [vmem:[%s1890_s21 + $0x10] sm:$0xff]   ;;  %1623 = vmatprep.subr.bf16.mxu0 %v1764_v4  ;;  %1748 = vmatprep.subr.bf16.mxu1 %v1764_v4  ;;  %s2237_s23 = scalar_lea.vmem %s2347_s9, %s1481_s18 }
  0x11   : > { %v1899_v5 = vld [vmem:[%s1890_s21 + $0x40] sm:$0xff]   ;;  %1625 = vmatprep.mubr.msk.bf16.mxu0 %vm488_vm0, %v1893_v3  ;;  %v1913_v9 = vld [vmem:[%s1890_s21 + $0x48] sm:$0xff]   ;;  %v1916_v10 = vld [vmem:[%s1890_s21 + $0x50] sm:$0xff]  }
  0x12   : > { %1641 = vmatprep.mubr.msk.bf16.mxu1 %vm488_vm0, %v1899_v5  ;;  %v1930_v12 = vld [vmem:[%s1890_s21 + $0x18] sm:$0xff]   ;;  %v1938_v14 = vld [vmem:[%s1890_s21 + $0x20] sm:$0xff]   ;;  %v1956_v18 = vld [vmem:[%s1890_s21 + $0x28] sm:$0xff]  }
  0x13   : > { %1624 = vmatpush3.bf16.msra.mxu0 %v1764_v4  ;;  %1752 = vmatpush3.bf16.msra.mxu1 %v1764_v4  ;;  %v1935_v13 = vld [vmem:[%s1890_s21 + $0x58] sm:$0xff]   ;;  %v1941_v15 = vld [vmem:[%s1890_s21 + $0x60] sm:$0xff]   ;;  %v1961_v19 = vld [vmem:[%s1890_s21 + $0x68] sm:$0xff]  }
  0x14   : > { %1657 = vmatprep.subr.bf16.mxu1 %v1781_v6  ;;  %v1964_v20 = vld [vmem:[%s1890_s21 + $0x30] sm:$0xff]   ;;  %v1982_v24 = vld [vmem:[%s1890_s21 + $0x38] sm:$0xff]   ;;  %1705 = vmatprep.subr.bf16.mxu0 %v1789_v28 }
  0x15   : > { %v1967_v21 = vld [vmem:[%s1890_s21 + $0x70] sm:$0xff]   ;;  %v1987_v25 = vld [vmem:[%s1890_s21 + $0x78] sm:$0xff]  }
  0x16   : > { %1626 = vmatmul.mubr.msk.bf16.vlgmr.msra.gmra.mrb[0].mxu0 %vm488_vm0, %v1907_v7  ;;  %1642 = vmatmul.mubr.msk.bf16.vlgmr.msra.gmra.mrb[0].mxu1 %vm488_vm0, %v1913_v9 }
  0x17   : > { %1629 = vmatprep.mubr.msk.bf16.mxu0 %vm488_vm0, %v1910_v8  ;;  %1645 = vmatprep.mubr.msk.bf16.mxu1 %vm488_vm0, %v1916_v10 }
  0x18   : > { %1658 = vmatpush3.bf16.msra.mxu1 %v1781_v6  ;;  %1706 = vmatpush3.bf16.msra.mxu0 %v1789_v28 }
  0x19   : > { %1659 = vmatprep.subr.bf16.mxu1 %v1782_v11  ;;  %1707 = vmatprep.subr.bf16.mxu0 %v1790_v29 }
  0x1c   : > { %1660 = vmatpush3.bf16.msra.mxu1 %v1782_v11  ;;  %1708 = vmatpush3.bf16.msra.mxu0 %v1790_v29 }
  0x1d   : > { %1661 = vmatprep.subr.bf16.mxu1 %v1783_v16 }
  0x1e   : > { %1630 = vmatmul.mubr.msk.bf16.gmra.mrb[4].mxu0 %vm488_vm0, %v1930_v12  ;;  %1646 = vmatmul.mubr.msk.bf16.gmra.mrb[4].mxu1 %vm488_vm0, %v1935_v13 }
  0x1f   : > { %1633 = vmatprep.mubr.msk.bf16.mxu0 %vm488_vm0, %v1938_v14  ;;  %1649 = vmatprep.mubr.msk.bf16.mxu1 %vm488_vm0, %v1941_v15 }
  0x20   : > { %1662 = vmatpush3.bf16.msra.mxu1 %v1783_v16 }
  0x21   : > { %1663 = vmatprep.subr.bf16.mxu1 %v1784_v17 }
  0x24   : > { %1664 = vmatpush3.bf16.msra.mxu1 %v1784_v17 }
  0x25   : > { %1665 = vmatprep.subr.bf16.mxu1 %v1785_v22 }
  0x26   : > { %1634 = vmatmul.mubr.msk.bf16.gmra.mrb[8].mxu0 %vm488_vm0, %v1956_v18  ;;  %1650 = vmatmul.mubr.msk.bf16.gmra.mrb[8].mxu1 %vm488_vm0, %v1961_v19 }
  0x27   : > { %1637 = vmatprep.mubr.msk.bf16.mxu0 %vm488_vm0, %v1964_v20  ;;  %1653 = vmatprep.mubr.msk.bf16.mxu1 %vm488_vm0, %v1967_v21 }
  0x28   : > { %1666 = vmatpush3.bf16.msra.mxu1 %v1785_v22 }
  0x29   : > { %1667 = vmatprep.subr.bf16.mxu1 %v1786_v23 }
  0x2c   : > { %1668 = vmatpush3.bf16.msra.mxu1 %v1786_v23 }
  0x2d   : > { %1669 = vmatprep.subr.bf16.mxu1 %v1787_v26 }
  0x2e   : > { %1638 = vmatmul.mubr.msk.bf16.gmra.mrb[12].mxu0 %vm488_vm0, %v1982_v24  ;;  %1654 = vmatmul.mubr.msk.bf16.gmra.mrb[12].mxu1 %vm488_vm0, %v1987_v25 }
  0x30   : > { %1670 = vmatpush3.bf16.msra.mxu1 %v1787_v26 }
  0x31   : > { %1671 = vmatprep.subr.bf16.mxu1 %v1788_v27 }
  0x34   : > { %1672 = vmatpush3.bf16.msra.mxu1 %v1788_v27 }
  0xe9   : > { %v1627_v30 = vpop.f32.mrb[0].mxu0  ;;  %v1643_v32 = vpop.f32.mrb[0].mxu1 }
  0xea   : > { %v571_v33 = vpop.f32.mrb[1].mxu0  ;;  %v2011_v34 = vadd.f32 %v1643_v32, %v2008_v31  ;;  %v635_v35 = vpop.f32.mrb[1].mxu1  ;;  %v580_v39 = vadd.f32 %v1627_v30, %v2008_v31 }
  0xeb   : > { %v1628_v36 = vpop.f32.mrb[2].mxu0  ;;  %v2014_v37 = vadd.f32 %v2008_v31, %v635_v35  ;;  %v1644_v38 = vpop.f32.mrb[2].mxu1  ;;  %v572_v44 = vadd.f32 %v2008_v31, %v571_v33 }
  0xec   : > { %v583_v40 = vadd.f32 %v1628_v36, %v2008_v31  ;;  %v574_v41 = vpop.f32.mrb[3].mxu0  ;;  %v2019_v42 = vadd.f32 %v1644_v38, %v2008_v31  ;;  %v638_v43 = vpop.f32.mrb[3].mxu1 }
  0xed   : > { %v575_v45 = vadd.f32 %v2008_v31, %v574_v41  ;;  %v2024_v46 = vadd.f32 %v2008_v31, %v638_v43 }
  0xee   : > { %v699_v47 = vpack.c.bf16 %v583_v40, %v580_v39  ;;  %v707_v48 = vpack.c.bf16 %v2019_v42, %v2011_v34  ;;  %v2072_v34 = vld [vmem:[%s2342_s4] ss:$0 sm:$0xff]  ;;  %v948_v42 = vunpack.c.l.bf16 %v1907_v7 }
  0xef   : > { %v698_v49 = vpack.c.bf16 %v575_v45, %v572_v44  ;;  %v706_v50 = vpack.c.bf16 %v2024_v46, %v2014_v37  ;;  %v1792_v37 = vld [vmem:[%s2345_s7 + $0x18] sm:$0xff]   ;;  %v946_v46 = vunpack.c.l.bf16 %v1893_v3 }
  0xf1   : > { %v1631_v51 = vpop.f32.mrb[4].mxu0  ;;  %1673 = vmatprep.mubr.bf16.mxu1 %v698_v49  ;;  %v1647_v52 = vpop.f32.mrb[4].mxu1 }
  0xf2   : > { %v587_v53 = vpop.f32.mrb[5].mxu0  ;;  %1674 = vmatmul.mubr.bf16.vlgmr.msra.gmra.mrb[16].mxu1 %v699_v47  ;;  %v2031_v54 = vadd.f32 %v1647_v52, %v2008_v31  ;;  %v651_v55 = vpop.f32.mrb[5].mxu1  ;;  %v596_v59 = vadd.f32 %v1631_v51, %v2008_v31 }
  0xf3   : > { %v1632_v56 = vpop.f32.mrb[6].mxu0  ;;  %v652_v57 = vadd.f32 %v2008_v31, %v651_v55  ;;  %v1648_v58 = vpop.f32.mrb[6].mxu1  ;;  %v588_v0 = vadd.f32 %v2008_v31, %v587_v53 }
  0xf4   : > { %v599_v60 = vadd.f32 %v1632_v56, %v2008_v31  ;;  %v590_v61 = vpop.f32.mrb[7].mxu0  ;;  %v663_v62 = vadd.f32 %v1648_v58, %v2008_v31  ;;  %v654_v63 = vpop.f32.mrb[7].mxu1 }
  0xf5   : > { %v591_v1 = vadd.f32 %v2008_v31, %v590_v61  ;;  %v655_v2 = vadd.f32 %v2008_v31, %v654_v63 }
  0xf6   : > { %v701_v4 = vpack.c.bf16 %v599_v60, %v596_v59  ;;  %v709_v6 = vpack.c.bf16 %v663_v62, %v2031_v54 }
  0xf7   : > { %v700_v11 = vpack.c.bf16 %v591_v1, %v588_v0  ;;  %v708_v16 = vpack.c.bf16 %v655_v2, %v652_v57 }
  0xf9   : > { %v1635_v17 = vpop.f32.mrb[8].mxu0  ;;  %1677 = vmatprep.mubr.bf16.mxu1 %v700_v11  ;;  %v1651_v22 = vpop.f32.mrb[8].mxu1 }
  0xfa   : > { %v603_v23 = vpop.f32.mrb[9].mxu0  ;;  %1678 = vmatmul.mubr.bf16.gmra.mrb[20].mxu1 %v701_v4  ;;  %v676_v26 = vadd.f32 %v1651_v22, %v2008_v31  ;;  %v667_v27 = vpop.f32.mrb[9].mxu1  ;;  %v612_v32 = vadd.f32 %v1635_v17, %v2008_v31  ;;  %v947_v22 = vunpack.c.h.bf16 %v1893_v3 }
  0xfb   : > { %v1636_v28 = vpop.f32.mrb[10].mxu0  ;;  %v668_v29 = vadd.f32 %v2008_v31, %v667_v27  ;;  %v1652_v30 = vpop.f32.mrb[10].mxu1  ;;  %v604_v39 = vadd.f32 %v2008_v31, %v603_v23  ;;  %v2082_v23 = vld [vmem:[%s2343_s5] ss:$0 sm:$0xff] }
  0xfc   : > { %v615_v33 = vadd.f32 %v1636_v28, %v2008_v31  ;;  %v606_v35 = vpop.f32.mrb[11].mxu0  ;;  %v679_v36 = vadd.f32 %v1652_v30, %v2008_v31  ;;  %v670_v38 = vpop.f32.mrb[11].mxu1 }
  0xfd   : > { %v607_v40 = vadd.f32 %v2008_v31, %v606_v35  ;;  %v671_v41 = vadd.f32 %v2008_v31, %v670_v38 }
  0xfe   : > { %v703_v43 = vpack.c.bf16 %v615_v33, %v612_v32  ;;  %v711_v44 = vpack.c.bf16 %v679_v36, %v676_v26  ;;  %v2089_v32 = vld [vmem:[%s2344_s6] ss:$0 sm:$0xff] }
  0xff   : > { %v702_v45 = vpack.c.bf16 %v607_v40, %v604_v39  ;;  %v710_v47 = vpack.c.bf16 %v671_v41, %v668_v29  ;;  %v952_v41 = vunpack.c.l.bf16 %v1930_v12 }
 0x101   : > { %v1639_v49 = vpop.f32.mrb[12].mxu0  ;;  %1681 = vmatprep.mubr.bf16.mxu1 %v702_v45  ;;  %v1655_v51 = vpop.f32.mrb[12].mxu1 }
 0x102   : > { %v619_v52 = vpop.f32.mrb[13].mxu0  ;;  %1682 = vmatmul.mubr.bf16.gmra.mrb[24].mxu1 %v703_v43  ;;  %v692_v53 = vadd.f32 %v1655_v51, %v2008_v31  ;;  %v683_v54 = vpop.f32.mrb[13].mxu1  ;;  %v628_v58 = vadd.f32 %v1639_v49, %v2008_v31 }
 0x103   : > { %v1640_v55 = vpop.f32.mrb[14].mxu0  ;;  %v684_v56 = vadd.f32 %v2008_v31, %v683_v54  ;;  %v1656_v57 = vpop.f32.mrb[14].mxu1  ;;  %v620_v63 = vadd.f32 %v2008_v31, %v619_v52 }
 0x104   : > { %v631_v59 = vadd.f32 %v1640_v55, %v2008_v31  ;;  %v622_v60 = vpop.f32.mrb[15].mxu0  ;;  %v695_v61 = vadd.f32 %v1656_v57, %v2008_v31  ;;  %v686_v62 = vpop.f32.mrb[15].mxu1  ;;  %v951_v57 = vunpack.c.h.bf16 %v1910_v8 }
 0x105   : > { %v623_v0 = vadd.f32 %v2008_v31, %v622_v60  ;;  %v687_v1 = vadd.f32 %v2008_v31, %v686_v62  ;;  %v1791_v31 = vld [vmem:[%s2345_s7 + $0x10] sm:$0xff]  }
 0x106   : > { %v705_v2 = vpack.c.bf16 %v631_v59, %v628_v58  ;;  %v713_v4 = vpack.c.bf16 %v695_v61, %v692_v53  ;;  %1709 = vmatprep.subr.bf16.mxu0 %v1791_v31  ;;  %v953_v53 = vunpack.c.h.bf16 %v1930_v12 }
 0x107   : > { %v704_v11 = vpack.c.bf16 %v623_v0, %v620_v63  ;;  %v712_v17 = vpack.c.bf16 %v687_v1, %v684_v56  ;;  %1710 = vmatpush3.bf16.msra.mxu0 %v1791_v31 }
 0x108   : > { %1711 = vmatprep.subr.bf16.mxu0 %v1792_v37 }
 0x109   : > { %1685 = vmatprep.mubr.bf16.mxu1 %v704_v11 }
 0x10a   : > { %1686 = vmatmul.mubr.bf16.gmra.mrb[28].mxu1 %v705_v2 }
 0x10b   : > { %1689 = vmatprep.mubr.bf16.mxu1 %v706_v50  ;;  %1712 = vmatpush3.bf16.msra.mxu0 %v1792_v37 }
 0x112   : > { %1690 = vmatmul.mubr.bf16.gmra.mrb[32].mxu1 %v707_v48 }
 0x113   : > { %1693 = vmatprep.mubr.bf16.mxu1 %v708_v16  ;;  %v949_v16 = vunpack.c.h.bf16 %v1907_v7 }
 0x11a   : > { %1694 = vmatmul.mubr.bf16.gmra.mrb[36].mxu1 %v709_v6 }
 0x11b   : > { %1697 = vmatprep.mubr.bf16.mxu1 %v710_v47  ;;  %v950_v47 = vunpack.c.l.bf16 %v1910_v8 }
 0x122   : > { %1698 = vmatmul.mubr.bf16.gmra.mrb[40].mxu1 %v711_v44 }
 0x123   : > { %1701 = vmatprep.mubr.bf16.mxu1 %v712_v17 }
 0x12a   : > { %1702 = vmatmul.mubr.bf16.gmra.mrb[44].mxu1 %v713_v4 }
 0x1c5   : > { %v1675_v48 = vpop.f32.mrb[16].mxu1 }
 0x1c6   : > { %v828_v50 = vadd.f32 %v1675_v48, %v2072_v34  ;;  %v819_v6 = vpop.f32.mrb[17].mxu1 }
 0x1c7   : > { %v820_v26 = vadd.f32 %v2072_v34, %v819_v6  ;;  %v1676_v27 = vpop.f32.mrb[18].mxu1 }
 0x1c8   : > { %v980_v28 = vadd.f32 %v948_v42, %v828_v50  ;;  %v831_v29 = vadd.f32 %v1676_v27, %v2072_v34  ;;  %v822_v30 = vpop.f32.mrb[19].mxu1 }
 0x1c9   : > { %v978_v7 = vadd.f32 %v946_v46, %v820_v26  ;;  %v823_v3 = vadd.f32 %v2072_v34, %v822_v30  ;;  %v956_v46 = vunpack.c.l.bf16 %v1956_v18 }
 0x1ca   : > { %v1019_v33 = vmul.f32 %v2082_v23, %v980_v28  ;;  %v981_v35 = vadd.f32 %v949_v16, %v831_v29  ;;  %v954_v16 = vunpack.c.l.bf16 %v1938_v14  ;;  %v957_v28 = vunpack.c.h.bf16 %v1956_v18 }
 0x1cb   : > { %v1017_v36 = vmul.f32 %v2082_v23, %v978_v7  ;;  %v979_v38 = vadd.f32 %v947_v22, %v823_v3  ;;  %v955_v3 = vunpack.c.h.bf16 %v1938_v14 }
 0x1cc   : > { %v1058_v39 = vadd.f32 %v2089_v32, %v1019_v33  ;;  %v1020_v40 = vmul.f32 %v2082_v23, %v981_v35 }
 0x1cd   : > { %v1056_v43 = vadd.f32 %v2089_v32, %v1017_v36  ;;  %v1018_v44 = vmul.f32 %v2082_v23, %v979_v38  ;;  %v1679_v45 = vpop.f32.mrb[20].mxu1 }
 0x1ce   : > { %v1059_v49 = vadd.f32 %v2089_v32, %v1020_v40  ;;  %v844_v51 = vadd.f32 %v1679_v45, %v2072_v34  ;;  %v835_v52 = vpop.f32.mrb[21].mxu1  ;;  %v1090_v58 = vmax.f32 %v1058_v39, 0.0 }
 0x1cf   : > { %v1057_v54 = vadd.f32 %v2089_v32, %v1018_v44  ;;  %v836_v55 = vadd.f32 %v2072_v34, %v835_v52  ;;  %v1680_v56 = vpop.f32.mrb[22].mxu1  ;;  %v1088_v63 = vmax.f32 %v1056_v43, 0.0 }
 0x1d0   : > { %v1091_v59 = vmax.f32 %v1059_v49, 0.0  ;;  %v984_v60 = vadd.f32 %v952_v41, %v844_v51  ;;  %v847_v61 = vadd.f32 %v1680_v56, %v2072_v34  ;;  %v838_v62 = vpop.f32.mrb[23].mxu1 }
 0x1d1   : > { %v1089_v0 = vmax.f32 %v1057_v54, 0.0  ;;  %v982_v1 = vadd.f32 %v950_v47, %v836_v55  ;;  %v839_v2 = vadd.f32 %v2072_v34, %v838_v62  ;;  %v960_v54 = vunpack.c.l.bf16 %v1982_v24 }
 0x1d2   : > { %v1121_v4 = vpack.c.bf16 %v1091_v59, %v1090_v58  ;;  %v1023_v12 = vmul.f32 %v2082_v23, %v984_v60  ;;  %v985_v11 = vadd.f32 %v953_v53, %v847_v61  ;;  %v958_v58 = vunpack.c.l.bf16 %v1964_v20 }
 0x1d3   : > { %v1021_v17 = vmul.f32 %v2082_v23, %v982_v1  ;;  %v983_v31 = vadd.f32 %v951_v57, %v839_v2  ;;  %v1120_v37 = vpack.c.bf16 %v1089_v0, %v1088_v63  ;;  %v961_v62 = vunpack.c.h.bf16 %v1982_v24 }
 0x1d4   : > { %v1062_v8 = vadd.f32 %v2089_v32, %v1023_v12  ;;  %v1024_v42 = vmul.f32 %v2082_v23, %v985_v11  ;;  %v959_v2 = vunpack.c.h.bf16 %v1964_v20 }
 0x1d5   : > { %v1060_v48 = vadd.f32 %v2089_v32, %v1021_v17  ;;  %v1022_v50 = vmul.f32 %v2082_v23, %v983_v31  ;;  %v1683_v6 = vpop.f32.mrb[24].mxu1  ;;  %1713 = vmatprep.mubr.msk.bf16.mxu0 %vm488_vm0, %v1120_v37 }
 0x1d6   : > { %v1063_v22 = vadd.f32 %v2089_v32, %v1024_v42  ;;  %v860_v26 = vadd.f32 %v1683_v6, %v2072_v34  ;;  %v851_v27 = vpop.f32.mrb[25].mxu1  ;;  %1714 = vmatmul.mubr.msk.bf16.vlgmr.msra.gmra.mrb[16].mxu0 %vm488_vm0, %v1121_v4  ;;  %v1094_v33 = vmax.f32 %v1062_v8, 0.0 }
 0x1d7   : > { %v1061_v29 = vadd.f32 %v2089_v32, %v1022_v50  ;;  %v852_v30 = vadd.f32 %v2072_v34, %v851_v27  ;;  %v1684_v7 = vpop.f32.mrb[26].mxu1  ;;  %v1092_v40 = vmax.f32 %v1060_v48, 0.0  ;;  %v964_v27 = vunpack.c.l.bf16 %v1913_v9 }
 0x1d8   : > { %v1095_v35 = vmax.f32 %v1063_v22, 0.0  ;;  %v988_v36 = vadd.f32 %v956_v46, %v860_v26  ;;  %v863_v38 = vadd.f32 %v1684_v7, %v2072_v34  ;;  %v854_v39 = vpop.f32.mrb[27].mxu1 }
 0x1d9   : > { %v1093_v41 = vmax.f32 %v1061_v29, 0.0  ;;  %v986_v43 = vadd.f32 %v954_v16, %v852_v30  ;;  %v855_v44 = vadd.f32 %v2072_v34, %v854_v39 }
 0x1da   : > { %v1027_v18 = vmul.f32 %v2082_v23, %v988_v36  ;;  %v989_v45 = vadd.f32 %v957_v28, %v863_v38  ;;  %v1123_v47 = vpack.c.bf16 %v1095_v35, %v1094_v33  ;;  %v962_v28 = vunpack.c.l.bf16 %v1899_v5 }
 0x1db   : > { %v1025_v49 = vmul.f32 %v2082_v23, %v986_v43  ;;  %v987_v51 = vadd.f32 %v955_v3, %v855_v44  ;;  %v1122_v52 = vpack.c.bf16 %v1093_v41, %v1092_v40  ;;  %v965_v36 = vunpack.c.h.bf16 %v1913_v9 }
 0x1dc   : > { %v1066_v14 = vadd.f32 %v2089_v32, %v1027_v18  ;;  %v1028_v53 = vmul.f32 %v2082_v23, %v989_v45  ;;  %v963_v38 = vunpack.c.h.bf16 %v1899_v5 }
 0x1dd   : > { %v1064_v55 = vadd.f32 %v2089_v32, %v1025_v49  ;;  %v1026_v56 = vmul.f32 %v2082_v23, %v987_v51  ;;  %v1687_v57 = vpop.f32.mrb[28].mxu1  ;;  %1717 = vmatprep.mubr.msk.bf16.mxu0 %vm488_vm0, %v1122_v52 }
 0x1de   : > { %v1067_v59 = vadd.f32 %v2089_v32, %v1028_v53  ;;  %v876_v60 = vadd.f32 %v1687_v57, %v2072_v34  ;;  %v867_v61 = vpop.f32.mrb[29].mxu1  ;;  %1718 = vmatmul.mubr.msk.bf16.gmra.mrb[20].mxu0 %vm488_vm0, %v1123_v47  ;;  %v1098_v4 = vmax.f32 %v1066_v14, 0.0 }
 0x1df   : > { %v1065_v63 = vadd.f32 %v2089_v32, %v1026_v56  ;;  %v868_v0 = vadd.f32 %v2072_v34, %v867_v61  ;;  %v1688_v1 = vpop.f32.mrb[30].mxu1  ;;  %v1096_v37 = vmax.f32 %v1064_v55, 0.0 }
 0x1e0   : > { %v1099_v12 = vmax.f32 %v1067_v59, 0.0  ;;  %v992_v11 = vadd.f32 %v960_v54, %v876_v60  ;;  %v879_v17 = vadd.f32 %v1688_v1, %v2072_v34  ;;  %v870_v31 = vpop.f32.mrb[31].mxu1  ;;  %v968_v59 = vunpack.c.l.bf16 %v1935_v13 }
 0x1e1   : > { %v1097_v8 = vmax.f32 %v1065_v63, 0.0  ;;  %v990_v42 = vadd.f32 %v958_v58, %v868_v0  ;;  %v871_v46 = vadd.f32 %v2072_v34, %v870_v31  ;;  %v966_v63 = vunpack.c.l.bf16 %v1916_v10 }
 0x1e2   : > { %v1031_v24 = vmul.f32 %v2082_v23, %v992_v11  ;;  %v993_v48 = vadd.f32 %v961_v62, %v879_v17  ;;  %v1125_v50 = vpack.c.bf16 %v1099_v12, %v1098_v4  ;;  %v969_v4 = vunpack.c.h.bf16 %v1935_v13 }
 0x1e3   : > { %v1029_v6 = vmul.f32 %v2082_v23, %v990_v42  ;;  %v991_v16 = vadd.f32 %v959_v2, %v871_v46  ;;  %v1124_v22 = vpack.c.bf16 %v1097_v8, %v1096_v37  ;;  %v967_v31 = vunpack.c.h.bf16 %v1916_v10 }
 0x1e4   : > { %v1070_v20 = vadd.f32 %v2089_v32, %v1031_v24  ;;  %v1032_v26 = vmul.f32 %v2082_v23, %v993_v48 }
 0x1e5   : > { %v1068_v29 = vadd.f32 %v2089_v32, %v1029_v6  ;;  %v1030_v30 = vmul.f32 %v2082_v23, %v991_v16  ;;  %v1691_v7 = vpop.f32.mrb[32].mxu1  ;;  %1721 = vmatprep.mubr.msk.bf16.mxu0 %vm488_vm0, %v1124_v22 }
 0x1e6   : > { %v1071_v3 = vadd.f32 %v2089_v32, %v1032_v26  ;;  %v892_v33 = vadd.f32 %v1691_v7, %v2072_v34  ;;  %v883_v35 = vpop.f32.mrb[33].mxu1  ;;  %1722 = vmatmul.mubr.msk.bf16.gmra.mrb[24].mxu0 %vm488_vm0, %v1125_v50  ;;  %v1102_v43 = vmax.f32 %v1070_v20, 0.0 }
 0x1e7   : > { %v1069_v39 = vadd.f32 %v2089_v32, %v1030_v30  ;;  %v884_v40 = vadd.f32 %v2072_v34, %v883_v35  ;;  %v1692_v41 = vpop.f32.mrb[34].mxu1  ;;  %v1100_v49 = vmax.f32 %v1068_v29, 0.0  ;;  %v972_v30 = vunpack.c.l.bf16 %v1961_v19 }
 0x1e8   : > { %v1103_v44 = vmax.f32 %v1071_v3, 0.0  ;;  %v996_v18 = vadd.f32 %v964_v27, %v892_v33  ;;  %v895_v45 = vadd.f32 %v1692_v41, %v2072_v34  ;;  %v886_v47 = vpop.f32.mrb[35].mxu1  ;;  %v970_v35 = vunpack.c.l.bf16 %v1941_v15 }
 0x1e9   : > { %v1101_v51 = vmax.f32 %v1069_v39, 0.0  ;;  %v994_v52 = vadd.f32 %v962_v28, %v884_v40  ;;  %v887_v14 = vadd.f32 %v2072_v34, %v886_v47  ;;  %v973_v40 = vunpack.c.h.bf16 %v1961_v19 }
 0x1ea   : > { %v1035_v9 = vmul.f32 %v2082_v23, %v996_v18  ;;  %v997_v53 = vadd.f32 %v965_v36, %v895_v45  ;;  %v1127_v5 = vpack.c.bf16 %v1103_v44, %v1102_v43  ;;  %v971_v18 = vunpack.c.h.bf16 %v1941_v15 }
 0x1eb   : > { %v1033_v54 = vmul.f32 %v2082_v23, %v994_v52  ;;  %v995_v55 = vadd.f32 %v963_v38, %v887_v14  ;;  %v1126_v56 = vpack.c.bf16 %v1101_v51, %v1100_v49 }
 0x1ec   : > { %v1074_v57 = vadd.f32 %v2089_v32, %v1035_v9  ;;  %v1036_v58 = vmul.f32 %v2082_v23, %v997_v53 }
 0x1ed   : > { %v1072_v60 = vadd.f32 %v2089_v32, %v1033_v54  ;;  %v1034_v61 = vmul.f32 %v2082_v23, %v995_v55  ;;  %v1695_v62 = vpop.f32.mrb[36].mxu1  ;;  %1725 = vmatprep.mubr.msk.bf16.mxu0 %vm488_vm0, %v1126_v56 }
 0x1ee   : > { %v1075_v0 = vadd.f32 %v2089_v32, %v1036_v58  ;;  %v908_v1 = vadd.f32 %v1695_v62, %v2072_v34  ;;  %v899_v2 = vpop.f32.mrb[37].mxu1  ;;  %1726 = vmatmul.mubr.msk.bf16.gmra.mrb[28].mxu0 %vm488_vm0, %v1127_v5  ;;  %v1106_v37 = vmax.f32 %v1074_v57, 0.0 }
 0x1ef   : > { %v1073_v12 = vadd.f32 %v2089_v32, %v1034_v61  ;;  %v900_v11 = vadd.f32 %v2072_v34, %v899_v2  ;;  %v1696_v17 = vpop.f32.mrb[38].mxu1  ;;  %v1104_v48 = vmax.f32 %v1072_v60, 0.0  ;;  %v976_v60 = vunpack.c.l.bf16 %v1987_v25 }
 0x1f0   : > { %v1107_v8 = vmax.f32 %v1075_v0, 0.0  ;;  %v1000_v42 = vadd.f32 %v968_v59, %v908_v1  ;;  %v911_v46 = vadd.f32 %v1696_v17, %v2072_v34  ;;  %v902_v24 = vpop.f32.mrb[39].mxu1  ;;  %v974_v0 = vunpack.c.l.bf16 %v1967_v21 }
 0x1f1   : > { %v1105_v50 = vmax.f32 %v1073_v12, 0.0  ;;  %v998_v6 = vadd.f32 %v966_v63, %v900_v11  ;;  %v903_v16 = vadd.f32 %v2072_v34, %v902_v24  ;;  %v977_v12 = vunpack.c.h.bf16 %v1987_v25 }
 0x1f2   : > { %v1039_v13 = vmul.f32 %v2082_v23, %v1000_v42  ;;  %v1001_v22 = vadd.f32 %v969_v4, %v911_v46  ;;  %v1129_v20 = vpack.c.bf16 %v1107_v8, %v1106_v37  ;;  %v975_v37 = vunpack.c.h.bf16 %v1967_v21 }
 0x1f3   : > { %v1037_v26 = vmul.f32 %v2082_v23, %v998_v6  ;;  %v999_v27 = vadd.f32 %v967_v31, %v903_v16  ;;  %v1128_v28 = vpack.c.bf16 %v1105_v50, %v1104_v48 }
 0x1f4   : > { %v1078_v10 = vadd.f32 %v2089_v32, %v1039_v13  ;;  %v1040_v29 = vmul.f32 %v2082_v23, %v1001_v22 }
 0x1f5   : > { %v1076_v7 = vadd.f32 %v2089_v32, %v1037_v26  ;;  %v1038_v3 = vmul.f32 %v2082_v23, %v999_v27  ;;  %v1699_v33 = vpop.f32.mrb[40].mxu1  ;;  %1729 = vmatprep.mubr.msk.bf16.mxu0 %vm488_vm0, %v1128_v28 }
 0x1f6   : > { %v1079_v36 = vadd.f32 %v2089_v32, %v1040_v29  ;;  %v924_v38 = vadd.f32 %v1699_v33, %v2072_v34  ;;  %v915_v39 = vpop.f32.mrb[41].mxu1  ;;  %1730 = vmatmul.mubr.msk.bf16.gmra.mrb[32].mxu0 %vm488_vm0, %v1129_v20  ;;  %v1110_v45 = vmax.f32 %v1078_v10, 0.0 }
 0x1f7   : > { %v1077_v41 = vadd.f32 %v2089_v32, %v1038_v3  ;;  %v916_v43 = vadd.f32 %v2072_v34, %v915_v39  ;;  %v1700_v44 = vpop.f32.mrb[42].mxu1  ;;  %v1108_v14 = vmax.f32 %v1076_v7, 0.0 }
 0x1f8   : > { %v1111_v47 = vmax.f32 %v1079_v36, 0.0  ;;  %v1004_v49 = vadd.f32 %v972_v30, %v924_v38  ;;  %v927_v51 = vadd.f32 %v1700_v44, %v2072_v34  ;;  %v918_v52 = vpop.f32.mrb[43].mxu1 }
 0x1f9   : > { %v1109_v9 = vmax.f32 %v1077_v41, 0.0  ;;  %v1002_v53 = vadd.f32 %v970_v35, %v916_v43  ;;  %v919_v5 = vadd.f32 %v2072_v34, %v918_v52 }
 0x1fa   : > { %v1043_v19 = vmul.f32 %v2082_v23, %v1004_v49  ;;  %v1005_v54 = vadd.f32 %v973_v40, %v927_v51  ;;  %v1131_v55 = vpack.c.bf16 %v1111_v47, %v1110_v45 }
 0x1fb   : > { %v1041_v56 = vmul.f32 %v2082_v23, %v1002_v53  ;;  %v1003_v57 = vadd.f32 %v971_v18, %v919_v5  ;;  %v1130_v58 = vpack.c.bf16 %v1109_v9, %v1108_v14 }
 0x1fc   : > { %v1082_v15 = vadd.f32 %v2089_v32, %v1043_v19  ;;  %v1044_v59 = vmul.f32 %v2082_v23, %v1005_v54 }
 0x1fd   : > { %v1080_v61 = vadd.f32 %v2089_v32, %v1041_v56  ;;  %v1042_v62 = vmul.f32 %v2082_v23, %v1003_v57  ;;  %v1703_v63 = vpop.f32.mrb[44].mxu1  ;;  %1733 = vmatprep.mubr.msk.bf16.mxu0 %vm488_vm0, %v1130_v58 }
 0x1fe   : > { %v1083_v1 = vadd.f32 %v2089_v32, %v1044_v59  ;;  %v940_v2 = vadd.f32 %v1703_v63, %v2072_v34  ;;  %v931_v4 = vpop.f32.mrb[45].mxu1  ;;  %1734 = vmatmul.mubr.msk.bf16.gmra.mrb[36].mxu0 %vm488_vm0, %v1131_v55  ;;  %v1114_v8 = vmax.f32 %v1082_v15, 0.0 }
 0x1ff   : > { %v1081_v11 = vadd.f32 %v2089_v32, %v1042_v62  ;;  %v932_v17 = vadd.f32 %v2072_v34, %v931_v4  ;;  %v1704_v31 = vpop.f32.mrb[46].mxu1  ;;  %v1112_v50 = vmax.f32 %v1080_v61, 0.0 }
 0x200   : > { %v1115_v42 = vmax.f32 %v1083_v1, 0.0  ;;  %v1008_v46 = vadd.f32 %v976_v60, %v940_v2  ;;  %v943_v24 = vadd.f32 %v1704_v31, %v2072_v34  ;;  %v934_v48 = vpop.f32.mrb[47].mxu1 }
 0x201   : > { %v1113_v6 = vmax.f32 %v1081_v11, 0.0  ;;  %v1006_v16 = vadd.f32 %v974_v0, %v932_v17  ;;  %v935_v13 = vadd.f32 %v2072_v34, %v934_v48 }
 0x202   : > { %v1047_v25 = vmul.f32 %v2082_v23, %v1008_v46  ;;  %v1009_v22 = vadd.f32 %v977_v12, %v943_v24  ;;  %v1133_v20 = vpack.c.bf16 %v1115_v42, %v1114_v8 }
 0x203   : > { %v1045_v26 = vmul.f32 %v2082_v23, %v1006_v16  ;;  %v1007_v27 = vadd.f32 %v975_v37, %v935_v13  ;;  %v1132_v28 = vpack.c.bf16 %v1113_v6, %v1112_v50 }
 0x204   : > { %v1086_v21 = vadd.f32 %v2089_v32, %v1047_v25  ;;  %v1048_v10 = vmul.f32 %v2082_v23, %v1009_v22 }
 0x205   : > { %v1084_v29 = vadd.f32 %v2089_v32, %v1045_v26  ;;  %v1046_v30 = vmul.f32 %v2082_v23, %v1007_v27  ;;  %1737 = vmatprep.mubr.msk.bf16.mxu0 %vm488_vm0, %v1132_v28  ;;  %v2232_v23 = vld [vmem:[%s2346_s8] ss:$0 sm:$0xff] }
 0x206   : > { %v1087_v34 = vadd.f32 %v2089_v32, %v1048_v10  ;;  %1738 = vmatmul.mubr.msk.bf16.gmra.mrb[40].mxu0 %vm488_vm0, %v1133_v20  ;;  %v1118_v3 = vmax.f32 %v1086_v21, 0.0 }
 0x207   : > { %v1085_v7 = vadd.f32 %v2089_v32, %v1046_v30  ;;  %v1116_v35 = vmax.f32 %v1084_v29, 0.0 }
 0x208   : > { %v1119_v33 = vmax.f32 %v1087_v34, 0.0 }
 0x209   : > { %v1117_v36 = vmax.f32 %v1085_v7, 0.0 }
 0x20a   : > { %v1135_v38 = vpack.c.bf16 %v1119_v33, %v1118_v3 }
 0x20b   : > { %v1134_v39 = vpack.c.bf16 %v1117_v36, %v1116_v35 }
 0x20d   : > { %1741 = vmatprep.mubr.msk.bf16.mxu0 %vm488_vm0, %v1134_v39 }
 0x20e   : > { %1742 = vmatmul.mubr.msk.bf16.gmra.mrb[44].mxu0 %vm488_vm0, %v1135_v38 }
 0x2a9   : > { %v1715_v32 = vpop.f32.mrb[16].mxu0 }
 0x2aa   : > { %v1266_v40 = vadd.f32 %v1715_v32, %v2232_v23  ;;  %v1257_v41 = vpop.f32.mrb[17].mxu0 }
 0x2ab   : > { %v1258_v43 = vadd.f32 %v2232_v23, %v1257_v41  ;;  %v1716_v44 = vpop.f32.mrb[18].mxu0 }
 0x2ac   : > { %1387 = vst.msk [vmem:[%s2237_s23 + $0x10] sm:$0xff] %vm1384_vm1, %v1266_v40  ;;  %v1269_v18 = vadd.f32 %v1716_v44, %v2232_v23  ;;  %v1260_v45 = vpop.f32.mrb[19].mxu0 }
 0x2ad   : > { %1385 = vst.msk [vmem:[%s2237_s23] sm:$0xff] %vm1384_vm1, %v1258_v43  ;;  %v1261_v47 = vadd.f32 %v2232_v23, %v1260_v45 }
 0x2ae   : > { %1388 = vst.msk [vmem:[%s2237_s23 + $0x18] sm:$0xff] %vm1384_vm1, %v1269_v18 }
 0x2af   : > { %1386 = vst.msk [vmem:[%s2237_s23 + $0x8] sm:$0xff] %vm1384_vm1, %v1261_v47 }
 0x2b1   : > { %v1719_v49 = vpop.f32.mrb[20].mxu0 }
 0x2b2   : > { %v1282_v51 = vadd.f32 %v1719_v49, %v2232_v23  ;;  %v1273_v52 = vpop.f32.mrb[21].mxu0 }
 0x2b3   : > { %v1274_v14 = vadd.f32 %v2232_v23, %v1273_v52  ;;  %v1720_v9 = vpop.f32.mrb[22].mxu0 }
 0x2b4   : > { %1391 = vst.msk [vmem:[%s2237_s23 + $0x30] sm:$0xff] %vm1384_vm1, %v1282_v51  ;;  %v1285_v53 = vadd.f32 %v1720_v9, %v2232_v23  ;;  %v1276_v5 = vpop.f32.mrb[23].mxu0 }
 0x2b5   : > { %1389 = vst.msk [vmem:[%s2237_s23 + $0x20] sm:$0xff] %vm1384_vm1, %v1274_v14  ;;  %v1277_v19 = vadd.f32 %v2232_v23, %v1276_v5 }
 0x2b6   : > { %1392 = vst.msk [vmem:[%s2237_s23 + $0x38] sm:$0xff] %vm1384_vm1, %v1285_v53 }
 0x2b7   : > { %1390 = vst.msk [vmem:[%s2237_s23 + $0x28] sm:$0xff] %vm1384_vm1, %v1277_v19 }
 0x2b9   : > { %v1723_v54 = vpop.f32.mrb[24].mxu0 }
 0x2ba   : > { %v1298_v55 = vadd.f32 %v1723_v54, %v2232_v23  ;;  %v1289_v56 = vpop.f32.mrb[25].mxu0 }
 0x2bb   : > { %v1290_v57 = vadd.f32 %v2232_v23, %v1289_v56  ;;  %v1724_v58 = vpop.f32.mrb[26].mxu0 }
 0x2bc   : > { %1395 = vst.msk [vmem:[%s2237_s23 + $0x50] sm:$0xff] %vm1384_vm1, %v1298_v55  ;;  %v1301_v15 = vadd.f32 %v1724_v58, %v2232_v23  ;;  %v1292_v59 = vpop.f32.mrb[27].mxu0 }
 0x2bd   : > { %1393 = vst.msk [vmem:[%s2237_s23 + $0x40] sm:$0xff] %vm1384_vm1, %v1290_v57  ;;  %v1293_v60 = vadd.f32 %v2232_v23, %v1292_v59 }
 0x2be   : > { %1396 = vst.msk [vmem:[%s2237_s23 + $0x58] sm:$0xff] %vm1384_vm1, %v1301_v15 }
 0x2bf   : > { %1394 = vst.msk [vmem:[%s2237_s23 + $0x48] sm:$0xff] %vm1384_vm1, %v1293_v60 }
 0x2c1   : > { %v1727_v61 = vpop.f32.mrb[28].mxu0 }
 0x2c2   : > { %v1314_v62 = vadd.f32 %v1727_v61, %v2232_v23  ;;  %v1305_v63 = vpop.f32.mrb[29].mxu0 }
 0x2c3   : > { %v1306_v0 = vadd.f32 %v2232_v23, %v1305_v63  ;;  %v1728_v1 = vpop.f32.mrb[30].mxu0 }
 0x2c4   : > { %1399 = vst.msk [vmem:[%s2237_s23 + $0x70] sm:$0xff] %vm1384_vm1, %v1314_v62  ;;  %v1317_v2 = vadd.f32 %v1728_v1, %v2232_v23  ;;  %v1308_v4 = vpop.f32.mrb[31].mxu0 }
 0x2c5   : > { %1397 = vst.msk [vmem:[%s2237_s23 + $0x60] sm:$0xff] %vm1384_vm1, %v1306_v0  ;;  %v1309_v12 = vadd.f32 %v2232_v23, %v1308_v4 }
 0x2c6   : > { %1400 = vst.msk [vmem:[%s2237_s23 + $0x78] sm:$0xff] %vm1384_vm1, %v1317_v2 }
 0x2c7   : > { %1398 = vst.msk [vmem:[%s2237_s23 + $0x68] sm:$0xff] %vm1384_vm1, %v1309_v12 }
 0x2c9   : > { %v1731_v11 = vpop.f32.mrb[32].mxu0 }
 0x2ca   : > { %v1330_v17 = vadd.f32 %v1731_v11, %v2232_v23  ;;  %v1321_v31 = vpop.f32.mrb[33].mxu0 }
 0x2cb   : > { %v1322_v37 = vadd.f32 %v2232_v23, %v1321_v31  ;;  %v1732_v8 = vpop.f32.mrb[34].mxu0 }
 0x2cc   : > { %1403 = vst.msk [vmem:[%s2237_s23 + $0x90] sm:$0xff] %vm1384_vm1, %v1330_v17  ;;  %v1333_v42 = vadd.f32 %v1732_v8, %v2232_v23  ;;  %v1324_v46 = vpop.f32.mrb[35].mxu0 }
 0x2cd   : > { %1401 = vst.msk [vmem:[%s2237_s23 + $0x80] sm:$0xff] %vm1384_vm1, %v1322_v37  ;;  %v1325_v24 = vadd.f32 %v2232_v23, %v1324_v46 }
 0x2ce   : > { %1404 = vst.msk [vmem:[%s2237_s23 + $0x98] sm:$0xff] %vm1384_vm1, %v1333_v42 }
 0x2cf   : > { %1402 = vst.msk [vmem:[%s2237_s23 + $0x88] sm:$0xff] %vm1384_vm1, %v1325_v24 }
 0x2d1   : > { %v1735_v48 = vpop.f32.mrb[36].mxu0 }
 0x2d2   : > { %v1346_v50 = vadd.f32 %v1735_v48, %v2232_v23  ;;  %v1337_v6 = vpop.f32.mrb[37].mxu0 }
 0x2d3   : > { %v1338_v16 = vadd.f32 %v2232_v23, %v1337_v6  ;;  %v1736_v13 = vpop.f32.mrb[38].mxu0 }
 0x2d4   : > { %1407 = vst.msk [vmem:[%s2237_s23 + $0xb0] sm:$0xff] %vm1384_vm1, %v1346_v50  ;;  %v1349_v25 = vadd.f32 %v1736_v13, %v2232_v23  ;;  %v1340_v22 = vpop.f32.mrb[39].mxu0 }
 0x2d5   : > { %1405 = vst.msk [vmem:[%s2237_s23 + $0xa0] sm:$0xff] %vm1384_vm1, %v1338_v16  ;;  %v1341_v20 = vadd.f32 %v2232_v23, %v1340_v22 }
 0x2d6   : > { %1408 = vst.msk [vmem:[%s2237_s23 + $0xb8] sm:$0xff] %vm1384_vm1, %v1349_v25 }
 0x2d7   : > { %1406 = vst.msk [vmem:[%s2237_s23 + $0xa8] sm:$0xff] %vm1384_vm1, %v1341_v20 }
 0x2d9   : > { %v1739_v26 = vpop.f32.mrb[40].mxu0 }
 0x2da   : > { %v1362_v27 = vadd.f32 %v1739_v26, %v2232_v23  ;;  %v1353_v28 = vpop.f32.mrb[41].mxu0 }
 0x2db   : > { %v1354_v21 = vadd.f32 %v2232_v23, %v1353_v28  ;;  %v1740_v10 = vpop.f32.mrb[42].mxu0 }
 0x2dc   : > { %1411 = vst.msk [vmem:[%s2237_s23 + $0xd0] sm:$0xff] %vm1384_vm1, %v1362_v27  ;;  %v1365_v29 = vadd.f32 %v1740_v10, %v2232_v23  ;;  %v1356_v30 = vpop.f32.mrb[43].mxu0 }
 0x2dd   : > { %1409 = vst.msk [vmem:[%s2237_s23 + $0xc0] sm:$0xff] %vm1384_vm1, %v1354_v21  ;;  %v1357_v34 = vadd.f32 %v2232_v23, %v1356_v30 }
 0x2de   : > { %1412 = vst.msk [vmem:[%s2237_s23 + $0xd8] sm:$0xff] %vm1384_vm1, %v1365_v29 }
 0x2df   : > { %1410 = vst.msk [vmem:[%s2237_s23 + $0xc8] sm:$0xff] %vm1384_vm1, %v1357_v34 }
 0x2e1   : > { %v1743_v7 = vpop.f32.mrb[44].mxu0 }
 0x2e2   : > { %v1378_v3 = vadd.f32 %v1743_v7, %v2232_v23  ;;  %v1369_v33 = vpop.f32.mrb[45].mxu0 }
 0x2e3   : > { %v1370_v35 = vadd.f32 %v2232_v23, %v1369_v33  ;;  %v1744_v36 = vpop.f32.mrb[46].mxu0 }
 0x2e4   : > { %1415 = vst.msk [vmem:[%s2237_s23 + $0xf0] sm:$0xff] %vm1384_vm1, %v1378_v3  ;;  %v1381_v38 = vadd.f32 %v1744_v36, %v2232_v23  ;;  %v1372_v39 = vpop.f32.mrb[47].mxu0 }
 0x2e5   : > { %1413 = vst.msk [vmem:[%s2237_s23 + $0xe0] sm:$0xff] %vm1384_vm1, %v1370_v35  ;;  %v1373_v32 = vadd.f32 %v2232_v23, %v1372_v39 }
 0x2e6   : > { %1416 = vst.msk [vmem:[%s2237_s23 + $0xf8] sm:$0xff] %vm1384_vm1, %v1381_v38 }
 0x2e7   : > { %1414 = vst.msk [vmem:[%s2237_s23 + $0xe8] sm:$0xff] %vm1384_vm1, %v1373_v32 }
 0x2e8 PF: > { %s19_s30 = sadd.s32 1, %s1815_s30  }
 0x2e9   : > { %p16_p4 = scmp.ge.s32.totalorder %s19_s30, 4  }
 0x2eb   :  { %18 = sbr.rel (!%p16_p4) target bundleno = 1 (0x1), region = 86 }

// kernel: simple_estimator_forward.2
= control target key start
LH: loop header
LB: loop body
LE: loop exit
PB: predicated region body
PF: predicated region fallthrough
CT: control target
= control target key end

     0   :  { %s19289_s12 = smov 0   ;;  %s21656_s0 = inlined_call_operand.vmem [shape: bf16[2,70,32,24], index: 0, kind: input, shape index: {}]   ;;  %s21657_s1 = inlined_call_operand.vmem [shape: bf16[7,24,64], index: 1, kind: input, shape index: {}]   ;;  %s21658_s2 = inlined_call_operand.vmem [shape: f32[1,64], index: 2, kind: input, shape index: {}]   ;;  %s21659_s3 = inlined_call_operand.vmem [shape: bf16[2,256,64], index: 3, kind: output, shape index: {}]  }
   0x1 LB: > { %s13545_s13 = sadd.s32 4294967295, %s19266_s12   ;;  %p13549_p0 = scmp.ge.s32.totalorder %s19266_s12, 1  ;;  %s19266_s12 = sphi %s19289_s12, %s13_s12  }
   0x2   : > { %p137_p1 = scmp.lt.s32.totalorder %s19266_s12, 3 }
   0x4   : > { %p138_p2 = pnand %p13549_p0, %p137_p1 }
   0x6   : > { %141 = sbr.rel (%p138_p2) target bundleno = 1809 (0x711), region = 32 }
   0xd   : > { %v18795_v0 = vld [vmem:[%s21657_s1 + $0xc] sm:$0xff]   ;;  %vm958_vm0 = vcmask 1043456   ;;  %v19303_v1 = vld [vmem:[%s21657_s1 + $0x18] sm:$0xff]   ;;  %p161_p3 = scmp.lt.s32.totalorder %s13545_s13, 1  ;;  %v18797_v2 = vld [vmem:[%s21657_s1 + $0x14] ss:$0 sps:$4 sm:$0xff]  }
   0xe   : > { %16169 = vmatprep.subr.bf16.mxu1 %v18795_v0  ;;  %16433 = vmatprep.subr.bf16.mxu0 %v19303_v1  ;;  %v18798_v3 = vld [vmem:[%s21657_s1 + $0x20] ss:$0 sps:$4 sm:$0xff]   ;;  %v960_v4 = vsel %vm958_vm0, %v18797_v2, 0  ;;  %v18831_v6 = vld [vmem:[%s21657_s1 + $0x24] sm:$0xff]   ;;  %vm765_vm1 = vcmask 195584   ;;  %v19348_v14 = vld [vmem:[%s21657_s1 + $0x30] sm:$0xff]  }
   0xf   : > { %16170 = vmatpush3.bf16.msra.mxu1 %v18795_v0  ;;  %s21900_s13 = smov (!%p161_p3, %s13545_s13), 1  ;;  %16434 = vmatpush3.bf16.msra.mxu0 %v19303_v1  ;;  %v19319_v5 = vsel %vm958_vm0, %v18798_v3, 0  ;;  %v18832_v9 = vld [vmem:[%s21657_s1 + $0x2c] ss:$0 sps:$4 sm:$0xff]   ;;  %vm9632_vm3 = vcmask 261120   ;;  %vm13457_vm9 = vcmask 519168  }
  0x10   : > { %18777 = vmatprep.subr.msk.bf16.mxu1 %vm958_vm0, %v18797_v2  ;;  %18779 = vmatprep.subr.msk.bf16.mxu0 %vm958_vm0, %v18798_v3  ;;  %s18785_s22 = smul.u32 1120, %s21900_s13  ;;  %v4561_v16 = vsel %vm958_vm0, %v18832_v9, 0  ;;  %s15386_s29 = sshll.u32 %s21900_s13, 7 }
  0x11   : > { %s21494_s5 = scalar_lea.vmem %s21659_s3, %s15386_s29 }
  0x12   : > { %s19328_s27 = scalar_lea.vmem %s21656_s0, %s18785_s22 }
  0x13   : > { %16172 = vmatpush3.bf16.msra.mxu1 %v960_v4  ;;  %16436 = vmatpush3.bf16.msra.mxu0 %v19319_v5  ;;  %v18799_v7 = vld [vmem:[%s19328_s27 + $0x230] sm:$0xff]   ;;  %v18801_v10 = vld [vmem:[%s19328_s27 + $0x238] sm:$0xff]   ;;  %v18803_v12 = vld [vmem:[%s19328_s27 + $0x240] sm:$0xff]  }
  0x14   : > { %v18800_v8 = vld [vmem:[%s19328_s27 + $0x10] sm:$0xff]   ;;  %16565 = vmatprep.subr.bf16.mxu0 %v18831_v6  ;;  %16173 = vmatprep.mubr.msk.bf16.mxu1 %vm765_vm1, %v18799_v7  ;;  %v18802_v11 = vld [vmem:[%s19328_s27 + $0x18] sm:$0xff]   ;;  %v18804_v13 = vld [vmem:[%s19328_s27 + $0x20] sm:$0xff]  }
  0x15   : > { %16437 = vmatprep.mubr.msk.bf16.mxu0 %vm765_vm1, %v18800_v8  ;;  %v18805_v15 = vld [vmem:[%s19328_s27 + $0x248] sm:$0xff]   ;;  %v18807_v18 = vld [vmem:[%s19328_s27 + $0x250] sm:$0xff]   ;;  %v18809_v20 = vld [vmem:[%s19328_s27 + $0x258] sm:$0xff]  }
  0x16   : > { %16174 = vmatmul.mubr.msk.bf16.vlgmr.msra.gmra.mrb[0].mxu1 %vm765_vm1, %v18801_v10  ;;  %16438 = vmatmul.mubr.msk.bf16.vlgmr.msra.gmra.mrb[0].mxu0 %vm765_vm1, %v18802_v11  ;;  %v18806_v17 = vld [vmem:[%s19328_s27 + $0x28] sm:$0xff]   ;;  %v18808_v19 = vld [vmem:[%s19328_s27 + $0x30] sm:$0xff]   ;;  %v18810_v21 = vld [vmem:[%s19328_s27 + $0x38] sm:$0xff]  }
  0x17   : > { %16177 = vmatprep.mubr.msk.bf16.mxu1 %vm765_vm1, %v18803_v12  ;;  %16566 = vmatpush3.bf16.msra.mxu0 %v18831_v6  ;;  %v18811_v22 = vld [vmem:[%s19328_s27 + $0x260] sm:$0xff]   ;;  %v18813_v24 = vld [vmem:[%s19328_s27 + $0x268] sm:$0xff]   ;;  %v18815_v26 = vld [vmem:[%s19328_s27 + $0x270] sm:$0xff]  }
  0x18   : > { %16441 = vmatprep.mubr.msk.bf16.mxu0 %vm765_vm1, %v18804_v13  ;;  %18781 = vmatprep.subr.msk.bf16.mxu0 %vm958_vm0, %v18832_v9  ;;  %v18812_v23 = vld [vmem:[%s19328_s27 + $0x40] sm:$0xff]   ;;  %v18814_v25 = vld [vmem:[%s19328_s27 + $0x48] sm:$0xff]   ;;  %v18816_v27 = vld [vmem:[%s19328_s27 + $0x50] sm:$0xff]  }
  0x19   : > { %v18817_v28 = vld [vmem:[%s19328_s27 + $0x278] sm:$0xff]   ;;  %v18819_v30 = vld [vmem:[%s19328_s27 + $0x280] sm:$0xff]   ;;  %v18821_v32 = vld [vmem:[%s19328_s27 + $0x288] sm:$0xff]  }
  0x1a   : > { %v18818_v29 = vld [vmem:[%s19328_s27 + $0x58] sm:$0xff]   ;;  %v18820_v31 = vld [vmem:[%s19328_s27 + $0x60] sm:$0xff]   ;;  %v18822_v33 = vld [vmem:[%s19328_s27 + $0x68] sm:$0xff]  }
  0x1b   : > { %16568 = vmatpush3.bf16.msra.mxu0 %v4561_v16  ;;  %v18823_v34 = vld [vmem:[%s19328_s27 + $0x290] sm:$0xff]   ;;  %v18825_v36 = vld [vmem:[%s19328_s27 + $0x298] sm:$0xff]   ;;  %v18827_v38 = vld [vmem:[%s19328_s27 + $0x2a0] sm:$0xff]  }
  0x1c   : > { %16697 = vmatprep.subr.bf16.mxu0 %v19348_v14  ;;  %v18824_v35 = vld [vmem:[%s19328_s27 + $0x70] sm:$0xff]   ;;  %v18826_v37 = vld [vmem:[%s19328_s27 + $0x78] sm:$0xff]   ;;  %v18828_v39 = vld [vmem:[%s19328_s27 + $0x80] sm:$0xff]  }
  0x1d   : > { %v18829_v40 = vld [vmem:[%s19328_s27 + $0x2a8] sm:$0xff]   ;;  %v18833_v42 = vld [vmem:[%s19328_s27 + $0x2b0] sm:$0xff]   ;;  %v18834_v43 = vld [vmem:[%s19328_s27 + $0x240] sm:$0xff]  }
  0x1e   : > { %16178 = vmatmul.mubr.msk.bf16.gmra.mrb[4].mxu1 %vm765_vm1, %v18805_v15  ;;  %16442 = vmatmul.mubr.msk.bf16.gmra.mrb[4].mxu0 %vm765_vm1, %v18806_v17  ;;  %v18830_v41 = vld [vmem:[%s19328_s27 + $0x88] sm:$0xff]   ;;  %v18835_v44 = vld [vmem:[%s19328_s27 + $0x2b8] sm:$0xff]   ;;  %v18837_v46 = vld [vmem:[%s19328_s27 + $0x2c0] sm:$0xff]  }
  0x1f   : > { %16181 = vmatprep.mubr.msk.bf16.mxu1 %vm765_vm1, %v18807_v18  ;;  %16445 = vmatprep.mubr.msk.bf16.mxu0 %vm765_vm1, %v18808_v19  ;;  %v18836_v45 = vld [vmem:[%s19328_s27 + $0x248] sm:$0xff]   ;;  %v18838_v47 = vld [vmem:[%s19328_s27 + $0x250] sm:$0xff]   ;;  %v18840_v49 = vld [vmem:[%s19328_s27 + $0x258] sm:$0xff]  }
  0x20   : > { %v18839_v48 = vld [vmem:[%s19328_s27 + $0x2c8] sm:$0xff]   ;;  %v18841_v50 = vld [vmem:[%s19328_s27 + $0x2d0] sm:$0xff]   ;;  %v18842_v51 = vld [vmem:[%s19328_s27 + $0x260] sm:$0xff]  }
  0x21   : > { %v18843_v52 = vld [vmem:[%s19328_s27 + $0x2d8] sm:$0xff]   ;;  %v18844_v53 = vld [vmem:[%s19328_s27 + $0x268] sm:$0xff]   ;;  %v18845_v54 = vld [vmem:[%s19328_s27 + $0x2e0] sm:$0xff]  }
  0x22   : > { %v18846_v55 = vld [vmem:[%s19328_s27 + $0x270] sm:$0xff]   ;;  %v18847_v56 = vld [vmem:[%s19328_s27 + $0x2e8] sm:$0xff]   ;;  %v18848_v57 = vld [vmem:[%s19328_s27 + $0x278] sm:$0xff]  }
  0x23   : > { %v18849_v58 = vld [vmem:[%s19328_s27 + $0x2f0] sm:$0xff]   ;;  %v18850_v59 = vld [vmem:[%s19328_s27 + $0x280] sm:$0xff]   ;;  %v18851_v60 = vld [vmem:[%s19328_s27 + $0x2f8] sm:$0xff]  }
  0x24   : > { %v18852_v61 = vld [vmem:[%s19328_s27 + $0x288] sm:$0xff]   ;;  %v18853_v62 = vld [vmem:[%s19328_s27 + $0x300] sm:$0xff]   ;;  %v18854_v63 = vld [vmem:[%s19328_s27 + $0x290] sm:$0xff]  }
  0x25   : > { %v18855_v0 = vld [vmem:[%s19328_s27 + $0x308] sm:$0xff]   ;;  %v18856_v2 = vld [vmem:[%s19328_s27 + $0x298] sm:$0xff]   ;;  %v18857_v3 = vld [vmem:[%s19328_s27 + $0x310] sm:$0xff]  }
  0x26   : > { %16182 = vmatmul.mubr.msk.bf16.gmra.mrb[8].mxu1 %vm765_vm1, %v18809_v20  ;;  %16446 = vmatmul.mubr.msk.bf16.gmra.mrb[8].mxu0 %vm765_vm1, %v18810_v21  ;;  %v18858_v4 = vld [vmem:[%s19328_s27 + $0x2a0] sm:$0xff]   ;;  %v18859_v6 = vld [vmem:[%s19328_s27 + $0x318] sm:$0xff]   ;;  %v18860_v7 = vld [vmem:[%s19328_s27 + $0x2a8] sm:$0xff]  }
  0x27   : > { %16185 = vmatprep.mubr.msk.bf16.mxu1 %vm765_vm1, %v18811_v22  ;;  %16449 = vmatprep.mubr.msk.bf16.mxu0 %vm765_vm1, %v18812_v23  ;;  %v18861_v8 = vld [vmem:[%s19328_s27 + $0x320] sm:$0xff]   ;;  %v18862_v9 = vld [vmem:[%s19328_s27 + $0x2b0] sm:$0xff]   ;;  %v18863_v10 = vld [vmem:[%s19328_s27 + $0x328] sm:$0xff]  }
  0x28   : > { %v18864_v11 = vld [vmem:[%s19328_s27 + $0x2b8] sm:$0xff]   ;;  %v18865_v12 = vld [vmem:[%s19328_s27 + $0x330] sm:$0xff]   ;;  %v18866_v13 = vld [vmem:[%s19328_s27 + $0x2c0] sm:$0xff]  }
  0x29   : > { %v18929_v15 = vld [vmem:[%s21657_s1] sm:$0xff]   ;;  %v18869_v16 = vld [vmem:[%s19328_s27 + $0x2c8] sm:$0xff]   ;;  %v18871_v19 = vld [vmem:[%s19328_s27 + $0x2d0] sm:$0xff]  }
  0x2a   : > { %v18931_v17 = vld [vmem:[%s21657_s1 + $0x8] ss:$0 sps:$4 sm:$0xff]   ;;  %v18870_v18 = vld [vmem:[%s19328_s27 + $0x340] sm:$0xff]   ;;  %16301 = vmatprep.subr.bf16.mxu1 %v18929_v15  ;;  %v18934_v21 = vld [vmem:[%s21657_s1 + $0x38] ss:$0 sps:$4 sm:$0xff]  }
  0x2b   : > { %16302 = vmatpush3.bf16.msra.mxu1 %v18929_v15  ;;  %v2029_v20 = vsel %vm958_vm0, %v18931_v17, 0  ;;  %v5891_v22 = vsel %vm958_vm0, %v18934_v21, 0  ;;  %v18872_v23 = vld [vmem:[%s19328_s27 + $0x348] sm:$0xff]   ;;  %v18927_v15 = vld [vmem:[%s19328_s27 + $0x3b0] sm:$0xff]  }
  0x2c   : > { %18778 = vmatprep.subr.msk.bf16.mxu1 %vm958_vm0, %v18931_v17  ;;  %v18930_v17 = vld [vmem:[%s19328_s27 + $0x3b8] sm:$0xff]  }
  0x2e   : > { %16186 = vmatmul.mubr.msk.bf16.gmra.mrb[12].mxu1 %vm765_vm1, %v18813_v24  ;;  %16450 = vmatmul.mubr.msk.bf16.gmra.mrb[12].mxu0 %vm765_vm1, %v18814_v25  ;;  %v18873_v24 = vld [vmem:[%s19328_s27 + $0x2d8] sm:$0xff]   ;;  %v18874_v25 = vld [vmem:[%s19328_s27 + $0x350] sm:$0xff]  }
  0x2f   : > { %16189 = vmatprep.mubr.msk.bf16.mxu1 %vm765_vm1, %v18815_v26  ;;  %16453 = vmatprep.mubr.msk.bf16.mxu0 %vm765_vm1, %v18816_v27  ;;  %v18875_v26 = vld [vmem:[%s19328_s27 + $0x2e0] sm:$0xff]   ;;  %v18876_v27 = vld [vmem:[%s19328_s27 + $0x358] sm:$0xff]  }
  0x30   : > { %16304 = vmatpush3.bf16.msra.mxu1 %v2029_v20  ;;  %v18935_v20 = vld [vmem:[%s19328_s27 + $0x8] sm:$0xff]  }
  0x31   : > { %18005 = vmatprep.subr.bf16.mxu1 %v19303_v1  ;;  %v18879_v1 = vld [vmem:[%s19328_s27 + $0x2f0] sm:$0xff]  }
  0x36   : > { %16190 = vmatmul.mubr.msk.bf16.gmra.mrb[16].mxu1 %vm765_vm1, %v18817_v28  ;;  %16454 = vmatmul.mubr.msk.bf16.gmra.mrb[16].mxu0 %vm765_vm1, %v18818_v29  ;;  %v18877_v28 = vld [vmem:[%s19328_s27 + $0x2e8] sm:$0xff]   ;;  %v18878_v29 = vld [vmem:[%s19328_s27 + $0x360] sm:$0xff]  }
  0x37   : > { %16193 = vmatprep.mubr.msk.bf16.mxu1 %vm765_vm1, %v18819_v30  ;;  %16457 = vmatprep.mubr.msk.bf16.mxu0 %vm765_vm1, %v18820_v31  ;;  %v18880_v30 = vld [vmem:[%s19328_s27 + $0x368] sm:$0xff]   ;;  %v18881_v31 = vld [vmem:[%s19328_s27 + $0x2f8] sm:$0xff]  }
  0x3e   : > { %16194 = vmatmul.mubr.msk.bf16.gmra.mrb[20].mxu1 %vm765_vm1, %v18821_v32  ;;  %16458 = vmatmul.mubr.msk.bf16.gmra.mrb[20].mxu0 %vm765_vm1, %v18822_v33  ;;  %v18882_v32 = vld [vmem:[%s19328_s27 + $0x370] sm:$0xff]   ;;  %v18883_v33 = vld [vmem:[%s19328_s27 + $0x300] sm:$0xff]  }
  0x3f   : > { %16197 = vmatprep.mubr.msk.bf16.mxu1 %vm765_vm1, %v18823_v34  ;;  %16461 = vmatprep.mubr.msk.bf16.mxu0 %vm765_vm1, %v18824_v35  ;;  %v18884_v34 = vld [vmem:[%s19328_s27 + $0x378] sm:$0xff]   ;;  %v18885_v35 = vld [vmem:[%s19328_s27 + $0x308] sm:$0xff]  }
  0x46   : > { %16198 = vmatmul.mubr.msk.bf16.gmra.mrb[24].mxu1 %vm765_vm1, %v18825_v36  ;;  %16462 = vmatmul.mubr.msk.bf16.gmra.mrb[24].mxu0 %vm765_vm1, %v18826_v37  ;;  %v18886_v36 = vld [vmem:[%s19328_s27 + $0x380] sm:$0xff]   ;;  %v18887_v37 = vld [vmem:[%s19328_s27 + $0x310] sm:$0xff]  }
  0x47   : > { %16201 = vmatprep.mubr.msk.bf16.mxu1 %vm765_vm1, %v18827_v38  ;;  %16465 = vmatprep.mubr.msk.bf16.mxu0 %vm765_vm1, %v18828_v39  ;;  %v18888_v38 = vld [vmem:[%s19328_s27 + $0x388] sm:$0xff]   ;;  %v18889_v39 = vld [vmem:[%s19328_s27 + $0x318] sm:$0xff]  }
  0x4e   : > { %16202 = vmatmul.mubr.msk.bf16.gmra.mrb[28].mxu1 %vm765_vm1, %v18829_v40  ;;  %16466 = vmatmul.mubr.msk.bf16.gmra.mrb[28].mxu0 %vm765_vm1, %v18830_v41  ;;  %v18890_v40 = vld [vmem:[%s19328_s27 + $0x390] sm:$0xff]   ;;  %v18891_v41 = vld [vmem:[%s19328_s27 + $0x320] sm:$0xff]  }
  0x4f   : > { %16205 = vmatprep.mubr.msk.bf16.mxu1 %vm765_vm1, %v18833_v42  ;;  %16569 = vmatprep.mubr.msk.bf16.mxu0 %vm765_vm1, %v18834_v43  ;;  %v18892_v42 = vld [vmem:[%s19328_s27 + $0x398] sm:$0xff]   ;;  %v18893_v43 = vld [vmem:[%s19328_s27 + $0x328] sm:$0xff]  }
  0x56   : > { %16206 = vmatmul.mubr.msk.bf16.gmra.mrb[32].mxu1 %vm765_vm1, %v18835_v44  ;;  %16570 = vmatmul.mubr.msk.bf16.vlgmr.msra.gmra.mrb[0].mxu0 %vm765_vm1, %v18836_v45  ;;  %v18894_v44 = vld [vmem:[%s19328_s27 + $0x3a0] sm:$0xff]   ;;  %v18895_v45 = vld [vmem:[%s19328_s27 + $0x330] sm:$0xff]  }
  0x57   : > { %16209 = vmatprep.mubr.msk.bf16.mxu1 %vm765_vm1, %v18837_v46  ;;  %16573 = vmatprep.mubr.msk.bf16.mxu0 %vm765_vm1, %v18838_v47  ;;  %v18896_v46 = vld [vmem:[%s19328_s27 + $0x3a8] sm:$0xff]   ;;  %v18897_v47 = vld [vmem:[%s19328_s27 + $0x338] sm:$0xff]  }
  0x58   : > { %16698 = vmatpush3.bf16.msra.mxu0 %v19348_v14  ;;  %v18868_v14 = vld [vmem:[%s19328_s27 + $0x338] sm:$0xff]  }
  0x59   : > { %18782 = vmatprep.subr.msk.bf16.mxu0 %vm958_vm0, %v18934_v21  ;;  %v19621_v21 = vld [vmem:[%s21657_s1 + $0x3c] sm:$0xff]  }
  0x5c   : > { %16700 = vmatpush3.bf16.msra.mxu0 %v5891_v22  ;;  %v18936_v22 = vld [vmem:[%s19328_s27 + $0x3c8] sm:$0xff]  }
  0x5d   : > { %16829 = vmatprep.subr.bf16.mxu0 %v19621_v21 }
  0x5e   : > { %16210 = vmatmul.mubr.msk.bf16.gmra.mrb[36].mxu1 %vm765_vm1, %v18839_v48  ;;  %16574 = vmatmul.mubr.msk.bf16.gmra.mrb[4].mxu0 %vm765_vm1, %v18840_v49  ;;  %v18898_v48 = vld [vmem:[%s19328_s27 + $0x3b0] sm:$0xff]   ;;  %v18899_v49 = vld [vmem:[%s19328_s27 + $0x340] sm:$0xff]  }
  0x5f   : > { %16213 = vmatprep.mubr.msk.bf16.mxu1 %vm765_vm1, %v18841_v50  ;;  %16577 = vmatprep.mubr.msk.bf16.mxu0 %vm765_vm1, %v18842_v51  ;;  %v18900_v50 = vld [vmem:[%s19328_s27 + $0x3b8] sm:$0xff]   ;;  %v18901_v51 = vld [vmem:[%s19328_s27 + $0x348] sm:$0xff]  }
  0x66   : > { %16214 = vmatmul.mubr.msk.bf16.gmra.mrb[40].mxu1 %vm765_vm1, %v18843_v52  ;;  %16578 = vmatmul.mubr.msk.bf16.gmra.mrb[8].mxu0 %vm765_vm1, %v18844_v53  ;;  %v18902_v52 = vld [vmem:[%s19328_s27 + $0x3c0] sm:$0xff]   ;;  %v18903_v53 = vld [vmem:[%s19328_s27 + $0x350] sm:$0xff]  }
  0x67   : > { %16217 = vmatprep.mubr.msk.bf16.mxu1 %vm765_vm1, %v18845_v54  ;;  %16581 = vmatprep.mubr.msk.bf16.mxu0 %vm765_vm1, %v18846_v55  ;;  %v18904_v54 = vld [vmem:[%s19328_s27 + $0x3c8] sm:$0xff]   ;;  %v18905_v55 = vld [vmem:[%s19328_s27 + $0x358] sm:$0xff]  }
  0x6e   : > { %16218 = vmatmul.mubr.msk.bf16.gmra.mrb[44].mxu1 %vm765_vm1, %v18847_v56  ;;  %16582 = vmatmul.mubr.msk.bf16.gmra.mrb[12].mxu0 %vm765_vm1, %v18848_v57  ;;  %v18906_v56 = vld [vmem:[%s19328_s27 + $0x3d0] sm:$0xff]   ;;  %v18907_v57 = vld [vmem:[%s19328_s27 + $0x360] sm:$0xff]  }
  0x6f   : > { %16221 = vmatprep.mubr.msk.bf16.mxu1 %vm765_vm1, %v18849_v58  ;;  %16585 = vmatprep.mubr.msk.bf16.mxu0 %vm765_vm1, %v18850_v59  ;;  %v18908_v58 = vld [vmem:[%s19328_s27 + $0x3d8] sm:$0xff]   ;;  %v18909_v59 = vld [vmem:[%s19328_s27 + $0x368] sm:$0xff]  }
  0x76   : > { %16222 = vmatmul.mubr.msk.bf16.gmra.mrb[48].mxu1 %vm765_vm1, %v18851_v60  ;;  %16586 = vmatmul.mubr.msk.bf16.gmra.mrb[16].mxu0 %vm765_vm1, %v18852_v61  ;;  %v18910_v60 = vld [vmem:[%s19328_s27 + $0x3e0] sm:$0xff]   ;;  %v18911_v61 = vld [vmem:[%s19328_s27 + $0x370] sm:$0xff]  }
  0x77   : > { %16225 = vmatprep.mubr.msk.bf16.mxu1 %vm765_vm1, %v18853_v62  ;;  %16589 = vmatprep.mubr.msk.bf16.mxu0 %vm765_vm1, %v18854_v63  ;;  %v18912_v62 = vld [vmem:[%s19328_s27 + $0x3e8] sm:$0xff]   ;;  %v18913_v63 = vld [vmem:[%s19328_s27 + $0x378] sm:$0xff]  }
  0x7e   : > { %16226 = vmatmul.mubr.msk.bf16.gmra.mrb[52].mxu1 %vm765_vm1, %v18855_v0  ;;  %16590 = vmatmul.mubr.msk.bf16.gmra.mrb[20].mxu0 %vm765_vm1, %v18856_v2  ;;  %v18914_v0 = vld [vmem:[%s19328_s27 + $0x3f0] sm:$0xff]   ;;  %v18915_v2 = vld [vmem:[%s19328_s27 + $0x380] sm:$0xff]  }
  0x7f   : > { %16229 = vmatprep.mubr.msk.bf16.mxu1 %vm765_vm1, %v18857_v3  ;;  %16593 = vmatprep.mubr.msk.bf16.mxu0 %vm765_vm1, %v18858_v4  ;;  %v18916_v3 = vld [vmem:[%s19328_s27 + $0x3f8] sm:$0xff]   ;;  %v18917_v4 = vld [vmem:[%s19328_s27 + $0x388] sm:$0xff]  }
  0x86   : > { %16230 = vmatmul.mubr.msk.bf16.gmra.mrb[56].mxu1 %vm765_vm1, %v18859_v6  ;;  %16594 = vmatmul.mubr.msk.bf16.gmra.mrb[24].mxu0 %vm765_vm1, %v18860_v7  ;;  %v18918_v6 = vld [vmem:[%s19328_s27 + $0x400] sm:$0xff]   ;;  %v18919_v7 = vld [vmem:[%s19328_s27 + $0x390] sm:$0xff]  }
  0x87   : > { %16233 = vmatprep.mubr.msk.bf16.mxu1 %vm765_vm1, %v18861_v8  ;;  %16597 = vmatprep.mubr.msk.bf16.mxu0 %vm765_vm1, %v18862_v9  ;;  %v18920_v8 = vld [vmem:[%s19328_s27 + $0x408] sm:$0xff]   ;;  %v18921_v9 = vld [vmem:[%s19328_s27 + $0x398] sm:$0xff]  }
  0x8e   : > { %16234 = vmatmul.mubr.msk.bf16.gmra.mrb[60].mxu1 %vm765_vm1, %v18863_v10  ;;  %16598 = vmatmul.mubr.msk.bf16.gmra.mrb[28].mxu0 %vm765_vm1, %v18864_v11  ;;  %v18922_v10 = vld [vmem:[%s19328_s27 + $0x410] sm:$0xff]   ;;  %v18923_v11 = vld [vmem:[%s19328_s27 + $0x3a0] sm:$0xff]  }
  0x8f   : > { %16237 = vmatprep.mubr.msk.bf16.mxu1 %vm765_vm1, %v18865_v12  ;;  %16601 = vmatprep.mubr.msk.bf16.mxu0 %vm765_vm1, %v18866_v13  ;;  %v18924_v12 = vld [vmem:[%s19328_s27 + $0x418] sm:$0xff]   ;;  %v18925_v13 = vld [vmem:[%s19328_s27 + $0x3a8] sm:$0xff]  }
  0x96   : > { %16238 = vmatmul.mubr.msk.bf16.gmra.mrb[64].mxu1 %vm765_vm1, %v18868_v14  ;;  %16602 = vmatmul.mubr.msk.bf16.gmra.mrb[32].mxu0 %vm765_vm1, %v18869_v16  ;;  %v18926_v14 = vld [vmem:[%s19328_s27 + $0x420] sm:$0xff]   ;;  %v18928_v16 = vld [vmem:[%s19328_s27 + $0x428] sm:$0xff]  }
  0x97   : > { %16241 = vmatprep.mubr.msk.bf16.mxu1 %vm765_vm1, %v18870_v18  ;;  %16605 = vmatprep.mubr.msk.bf16.mxu0 %vm765_vm1, %v18871_v19  ;;  %v18932_v18 = vld [vmem:[%s19328_s27] sm:$0xff]  }
  0x98   : > { %v18933_v19 = vld [vmem:[%s19328_s27 + $0x3c0] sm:$0xff]  }
  0x9e   : > { %16242 = vmatmul.mubr.msk.bf16.gmra.mrb[68].mxu1 %vm765_vm1, %v18872_v23  ;;  %16606 = vmatmul.mubr.msk.bf16.gmra.mrb[36].mxu0 %vm765_vm1, %v18873_v24  ;;  %v18937_v23 = vld [vmem:[%s19328_s27 + $0x10] sm:$0xff]  }
  0x9f   : > { %16245 = vmatprep.mubr.msk.bf16.mxu1 %vm765_vm1, %v18874_v25  ;;  %16609 = vmatprep.mubr.msk.bf16.mxu0 %vm765_vm1, %v18875_v26  ;;  %v18938_v24 = vld [vmem:[%s19328_s27 + $0x3d0] sm:$0xff]   ;;  %v18939_v25 = vld [vmem:[%s19328_s27 + $0x18] sm:$0xff]  }
  0xa0   : > { %v19257_v26 = vld [vmem:[%s21657_s1 + $0x18] sm:$0xff]  }
  0xa6   : > { %16246 = vmatmul.mubr.msk.bf16.gmra.mrb[72].mxu1 %vm765_vm1, %v18876_v27  ;;  %16610 = vmatmul.mubr.msk.bf16.gmra.mrb[40].mxu0 %vm765_vm1, %v18877_v28  ;;  %v18940_v27 = vld [vmem:[%s19328_s27 + $0x3d8] sm:$0xff]   ;;  %v18941_v28 = vld [vmem:[%s19328_s27 + $0x20] sm:$0xff]  }
  0xa7   : > { %16249 = vmatprep.mubr.msk.bf16.mxu1 %vm765_vm1, %v18878_v29  ;;  %16613 = vmatprep.mubr.msk.bf16.mxu0 %vm765_vm1, %v18879_v1  ;;  %v19258_v29 = vld [vmem:[%s21657_s1 + $0x20] ss:$0 sps:$4 sm:$0xff]  }
  0xa8   : > { %v18942_v1 = vld [vmem:[%s19328_s27 + $0x3e0] sm:$0xff]  }
  0xae   : > { %16250 = vmatmul.mubr.msk.bf16.gmra.mrb[76].mxu1 %vm765_vm1, %v18880_v30  ;;  %16614 = vmatmul.mubr.msk.bf16.gmra.mrb[44].mxu0 %vm765_vm1, %v18881_v31  ;;  %v18943_v30 = vld [vmem:[%s19328_s27 + $0x28] sm:$0xff]  }
  0xaf   : > { %16253 = vmatprep.mubr.msk.bf16.mxu1 %vm765_vm1, %v18882_v32  ;;  %16617 = vmatprep.mubr.msk.bf16.mxu0 %vm765_vm1, %v18883_v33  ;;  %v18944_v31 = vld [vmem:[%s19328_s27 + $0x3e8] sm:$0xff]   ;;  %v18945_v32 = vld [vmem:[%s19328_s27 + $0x30] sm:$0xff]  }
  0xb0   : > { %v18946_v33 = vld [vmem:[%s19328_s27 + $0x3f0] sm:$0xff]  }
  0xb6   : > { %16254 = vmatmul.mubr.msk.bf16.gmra.mrb[80].mxu1 %vm765_vm1, %v18884_v34  ;;  %16618 = vmatmul.mubr.msk.bf16.gmra.mrb[48].mxu0 %vm765_vm1, %v18885_v35  ;;  %v18948_v34 = vld [vmem:[%s19328_s27 + $0x3f8] sm:$0xff]   ;;  %v18949_v35 = vld [vmem:[%s19328_s27 + $0x40] sm:$0xff]  }
  0xb7   : > { %16257 = vmatprep.mubr.msk.bf16.mxu1 %vm765_vm1, %v18886_v36  ;;  %16621 = vmatprep.mubr.msk.bf16.mxu0 %vm765_vm1, %v18887_v37  ;;  %v18950_v36 = vld [vmem:[%s19328_s27 + $0x400] sm:$0xff]   ;;  %v18951_v37 = vld [vmem:[%s19328_s27 + $0x48] sm:$0xff]  }
  0xbe   : > { %16258 = vmatmul.mubr.msk.bf16.gmra.mrb[84].mxu1 %vm765_vm1, %v18888_v38  ;;  %16622 = vmatmul.mubr.msk.bf16.gmra.mrb[52].mxu0 %vm765_vm1, %v18889_v39  ;;  %v18952_v38 = vld [vmem:[%s19328_s27 + $0x408] sm:$0xff]   ;;  %v18953_v39 = vld [vmem:[%s19328_s27 + $0x50] sm:$0xff]  }
  0xbf   : > { %16261 = vmatprep.mubr.msk.bf16.mxu1 %vm765_vm1, %v18890_v40  ;;  %16625 = vmatprep.mubr.msk.bf16.mxu0 %vm765_vm1, %v18891_v41  ;;  %v18954_v40 = vld [vmem:[%s19328_s27 + $0x410] sm:$0xff]   ;;  %v18955_v41 = vld [vmem:[%s19328_s27 + $0x58] sm:$0xff]  }
  0xc6   : > { %16262 = vmatmul.mubr.msk.bf16.gmra.mrb[88].mxu1 %vm765_vm1, %v18892_v42  ;;  %16626 = vmatmul.mubr.msk.bf16.gmra.mrb[56].mxu0 %vm765_vm1, %v18893_v43  ;;  %v18956_v42 = vld [vmem:[%s19328_s27 + $0x418] sm:$0xff]   ;;  %v18957_v43 = vld [vmem:[%s19328_s27 + $0x60] sm:$0xff]  }
  0xc7   : > { %16265 = vmatprep.mubr.msk.bf16.mxu1 %vm765_vm1, %v18894_v44  ;;  %16629 = vmatprep.mubr.msk.bf16.mxu0 %vm765_vm1, %v18895_v45  ;;  %v18958_v44 = vld [vmem:[%s19328_s27 + $0x420] sm:$0xff]   ;;  %v18959_v45 = vld [vmem:[%s19328_s27 + $0x68] sm:$0xff]  }
  0xce   : > { %16266 = vmatmul.mubr.msk.bf16.gmra.mrb[92].mxu1 %vm765_vm1, %v18896_v46  ;;  %16630 = vmatmul.mubr.msk.bf16.gmra.mrb[60].mxu0 %vm765_vm1, %v18897_v47  ;;  %v18960_v46 = vld [vmem:[%s19328_s27 + $0x428] sm:$0xff]   ;;  %v18961_v47 = vld [vmem:[%s19328_s27 + $0x70] sm:$0xff]  }
  0xcf   : > { %16269 = vmatprep.mubr.msk.bf16.mxu1 %vm765_vm1, %v18898_v48  ;;  %16633 = vmatprep.mubr.msk.bf16.mxu0 %vm765_vm1, %v18899_v49  ;;  %v18962_v48 = vld [vmem:[%s19328_s27 + $0x430] sm:$0xff]   ;;  %v18963_v49 = vld [vmem:[%s19328_s27 + $0x78] sm:$0xff]  }
  0xd6   : > { %16270 = vmatmul.mubr.msk.bf16.gmra.mrb[96].mxu1 %vm765_vm1, %v18900_v50  ;;  %16634 = vmatmul.mubr.msk.bf16.gmra.mrb[64].mxu0 %vm765_vm1, %v18901_v51  ;;  %v18964_v50 = vld [vmem:[%s19328_s27 + $0x438] sm:$0xff]   ;;  %v18965_v51 = vld [vmem:[%s19328_s27 + $0x80] sm:$0xff]  }
  0xd7   : > { %16273 = vmatprep.mubr.msk.bf16.mxu1 %vm765_vm1, %v18902_v52  ;;  %16637 = vmatprep.mubr.msk.bf16.mxu0 %vm765_vm1, %v18903_v53  ;;  %v18966_v52 = vld [vmem:[%s19328_s27 + $0x20] sm:$0xff]   ;;  %v18967_v53 = vld [vmem:[%s19328_s27 + $0x88] sm:$0xff]  }
  0xde   : > { %16274 = vmatmul.mubr.msk.bf16.gmra.mrb[100].mxu1 %vm765_vm1, %v18904_v54  ;;  %16638 = vmatmul.mubr.msk.bf16.gmra.mrb[68].mxu0 %vm765_vm1, %v18905_v55  ;;  %v18968_v54 = vld [vmem:[%s19328_s27 + $0x28] sm:$0xff]   ;;  %v18969_v55 = vld [vmem:[%s19328_s27 + $0x90] sm:$0xff]  }
  0xdf   : > { %16277 = vmatprep.mubr.msk.bf16.mxu1 %vm765_vm1, %v18906_v56  ;;  %16641 = vmatprep.mubr.msk.bf16.mxu0 %vm765_vm1, %v18907_v57  ;;  %v18970_v56 = vld [vmem:[%s19328_s27 + $0x30] sm:$0xff]   ;;  %v18971_v57 = vld [vmem:[%s19328_s27 + $0x98] sm:$0xff]  }
  0xe6   : > { %16278 = vmatmul.mubr.msk.bf16.gmra.mrb[104].mxu1 %vm765_vm1, %v18908_v58  ;;  %16642 = vmatmul.mubr.msk.bf16.gmra.mrb[72].mxu0 %vm765_vm1, %v18909_v59  ;;  %v18972_v58 = vld [vmem:[%s19328_s27 + $0x38] sm:$0xff]   ;;  %v18973_v59 = vld [vmem:[%s19328_s27 + $0xa0] sm:$0xff]  }
  0xe7   : > { %16281 = vmatprep.mubr.msk.bf16.mxu1 %vm765_vm1, %v18910_v60  ;;  %16645 = vmatprep.mubr.msk.bf16.mxu0 %vm765_vm1, %v18911_v61  ;;  %v18974_v60 = vld [vmem:[%s19328_s27 + $0x40] sm:$0xff]   ;;  %v18975_v61 = vld [vmem:[%s19328_s27 + $0xa8] sm:$0xff]  }
  0xee   : > { %16282 = vmatmul.mubr.msk.bf16.gmra.mrb[108].mxu1 %vm765_vm1, %v18912_v62  ;;  %16646 = vmatmul.mubr.msk.bf16.gmra.mrb[76].mxu0 %vm765_vm1, %v18913_v63  ;;  %v18976_v62 = vld [vmem:[%s19328_s27 + $0x48] sm:$0xff]   ;;  %v18977_v63 = vld [vmem:[%s19328_s27 + $0xb0] sm:$0xff]  }
  0xef   : > { %16285 = vmatprep.mubr.msk.bf16.mxu1 %vm765_vm1, %v18914_v0  ;;  %16649 = vmatprep.mubr.msk.bf16.mxu0 %vm765_vm1, %v18915_v2  ;;  %v18978_v0 = vld [vmem:[%s19328_s27 + $0x50] sm:$0xff]   ;;  %v18979_v2 = vld [vmem:[%s19328_s27 + $0xb8] sm:$0xff]  }
  0xf6   : > { %16286 = vmatmul.mubr.msk.bf16.gmra.mrb[112].mxu1 %vm765_vm1, %v18916_v3  ;;  %16650 = vmatmul.mubr.msk.bf16.gmra.mrb[80].mxu0 %vm765_vm1, %v18917_v4  ;;  %v18980_v3 = vld [vmem:[%s19328_s27 + $0x58] sm:$0xff]   ;;  %v18981_v4 = vld [vmem:[%s19328_s27 + $0xc0] sm:$0xff]  }
  0xf7   : > { %16289 = vmatprep.mubr.msk.bf16.mxu1 %vm765_vm1, %v18918_v6  ;;  %16653 = vmatprep.mubr.msk.bf16.mxu0 %vm765_vm1, %v18919_v7  ;;  %v18982_v6 = vld [vmem:[%s19328_s27 + $0x60] sm:$0xff]   ;;  %v18983_v7 = vld [vmem:[%s19328_s27 + $0xc8] sm:$0xff]  }
  0xfe   : > { %16290 = vmatmul.mubr.msk.bf16.gmra.mrb[116].mxu1 %vm765_vm1, %v18920_v8  ;;  %16654 = vmatmul.mubr.msk.bf16.gmra.mrb[84].mxu0 %vm765_vm1, %v18921_v9  ;;  %v18984_v8 = vld [vmem:[%s19328_s27 + $0x68] sm:$0xff]   ;;  %v18985_v9 = vld [vmem:[%s19328_s27 + $0xd0] sm:$0xff]  }
  0xff   : > { %16293 = vmatprep.mubr.msk.bf16.mxu1 %vm765_vm1, %v18922_v10  ;;  %16657 = vmatprep.mubr.msk.bf16.mxu0 %vm765_vm1, %v18923_v11  ;;  %v18986_v10 = vld [vmem:[%s19328_s27 + $0x70] sm:$0xff]   ;;  %v18987_v11 = vld [vmem:[%s19328_s27 + $0xd8] sm:$0xff]  }
 0x106   : > { %16294 = vmatmul.mubr.msk.bf16.gmra.mrb[120].mxu1 %vm765_vm1, %v18924_v12  ;;  %16658 = vmatmul.mubr.msk.bf16.gmra.mrb[88].mxu0 %vm765_vm1, %v18925_v13  ;;  %v18988_v12 = vld [vmem:[%s19328_s27 + $0x78] sm:$0xff]   ;;  %v18989_v13 = vld [vmem:[%s19328_s27 + $0xe0] sm:$0xff]  }
 0x107   : > { %16297 = vmatprep.mubr.msk.bf16.mxu1 %vm765_vm1, %v18926_v14  ;;  %16661 = vmatprep.mubr.msk.bf16.mxu0 %vm765_vm1, %v18927_v15  ;;  %v18990_v14 = vld [vmem:[%s19328_s27 + $0x80] sm:$0xff]   ;;  %v18991_v15 = vld [vmem:[%s19328_s27 + $0xe8] sm:$0xff]  }
 0x10e   : > { %16298 = vmatmul.mubr.msk.bf16.gmra.mrb[124].mxu1 %vm765_vm1, %v18928_v16  ;;  %16662 = vmatmul.mubr.msk.bf16.gmra.mrb[92].mxu0 %vm765_vm1, %v18930_v17  ;;  %v18992_v16 = vld [vmem:[%s19328_s27 + $0x88] sm:$0xff]   ;;  %v18993_v17 = vld [vmem:[%s19328_s27 + $0xf0] sm:$0xff]  }
 0x10f   : > { %16305 = vmatprep.mubr.msk.bf16.mxu1 %vm765_vm1, %v18932_v18  ;;  %16665 = vmatprep.mubr.msk.bf16.mxu0 %vm765_vm1, %v18933_v19  ;;  %v18994_v18 = vld [vmem:[%s19328_s27 + $0x90] sm:$0xff]   ;;  %v18995_v19 = vld [vmem:[%s19328_s27 + $0xf8] sm:$0xff]  }
 0x116   : > { %16306 = vmatmul.mubr.msk.bf16.vlgmr.msra.gmra.mrb[0].mxu1 %vm765_vm1, %v18935_v20  ;;  %16666 = vmatmul.mubr.msk.bf16.gmra.mrb[96].mxu0 %vm765_vm1, %v18936_v22  ;;  %v18996_v20 = vld [vmem:[%s19328_s27 + $0x98] sm:$0xff]   ;;  %v18998_v22 = vld [vmem:[%s19328_s27 + $0xa0] sm:$0xff]  }
 0x117   : > { %16309 = vmatprep.mubr.msk.bf16.mxu1 %vm765_vm1, %v18937_v23  ;;  %16669 = vmatprep.mubr.msk.bf16.mxu0 %vm765_vm1, %v18938_v24  ;;  %v19000_v23 = vld [vmem:[%s19328_s27 + $0x108] sm:$0xff]   ;;  %v19064_v24 = vld [vmem:[%s21657_s1 + $0x44] ss:$0 sps:$4 sm:$0xff]  }
 0x118   : > { %18007 = vmatpush3.bf16.msra.mxu1 %v19257_v26  ;;  %v19002_v26 = vld [vmem:[%s19328_s27 + $0x110] sm:$0xff]  }
 0x119   : > { %18780 = vmatprep.subr.msk.bf16.mxu1 %vm958_vm0, %v19258_v29  ;;  %v19004_v29 = vld [vmem:[%s19328_s27 + $0x118] sm:$0xff]  }
 0x11c   : > { %18008 = vmatpush3.bf16.msra.mxu1 %v19319_v5  ;;  %v18947_v5 = vld [vmem:[%s19328_s27 + $0x38] sm:$0xff]  }
 0x11e   : > { %16310 = vmatmul.mubr.msk.bf16.gmra.mrb[4].mxu1 %vm765_vm1, %v18939_v25  ;;  %16670 = vmatmul.mubr.msk.bf16.gmra.mrb[100].mxu0 %vm765_vm1, %v18940_v27  ;;  %v19001_v25 = vld [vmem:[%s19328_s27 + $0xa8] sm:$0xff]   ;;  %v19003_v27 = vld [vmem:[%s19328_s27 + $0xb0] sm:$0xff]  }
 0x11f   : > { %16313 = vmatprep.mubr.msk.bf16.mxu1 %vm765_vm1, %v18941_v28  ;;  %16673 = vmatprep.mubr.msk.bf16.mxu0 %vm765_vm1, %v18942_v1  ;;  %v7221_v28 = vsel %vm958_vm0, %v19064_v24, 0  ;;  %v19005_v1 = vld [vmem:[%s19328_s27 + $0xb8] sm:$0xff]  }
 0x126   : > { %16314 = vmatmul.mubr.msk.bf16.gmra.mrb[8].mxu1 %vm765_vm1, %v18943_v30  ;;  %16674 = vmatmul.mubr.msk.bf16.gmra.mrb[104].mxu0 %vm765_vm1, %v18944_v31  ;;  %v19006_v30 = vld [vmem:[%s19328_s27 + $0x120] sm:$0xff]  }
 0x127   : > { %16317 = vmatprep.mubr.msk.bf16.mxu1 %vm765_vm1, %v18945_v32  ;;  %16677 = vmatprep.mubr.msk.bf16.mxu0 %vm765_vm1, %v18946_v33  ;;  %v19007_v31 = vld [vmem:[%s19328_s27 + $0xc0] sm:$0xff]   ;;  %v19008_v32 = vld [vmem:[%s19328_s27 + $0x128] sm:$0xff]  }
 0x128   : > { %v19009_v33 = vld [vmem:[%s19328_s27 + $0xc8] sm:$0xff]  }
 0x12e   : > { %16318 = vmatmul.mubr.msk.bf16.gmra.mrb[12].mxu1 %vm765_vm1, %v18947_v5  ;;  %16678 = vmatmul.mubr.msk.bf16.gmra.mrb[108].mxu0 %vm765_vm1, %v18948_v34  ;;  %v19010_v5 = vld [vmem:[%s19328_s27 + $0x130] sm:$0xff]  }
 0x12f   : > { %16321 = vmatprep.mubr.msk.bf16.mxu1 %vm765_vm1, %v18949_v35  ;;  %16681 = vmatprep.mubr.msk.bf16.mxu0 %vm765_vm1, %v18950_v36  ;;  %v19011_v34 = vld [vmem:[%s19328_s27 + $0xd0] sm:$0xff]   ;;  %v19012_v35 = vld [vmem:[%s19328_s27 + $0x138] sm:$0xff]  }
 0x130   : > { %v19013_v36 = vld [vmem:[%s19328_s27 + $0xd8] sm:$0xff]  }
 0x136   : > { %16322 = vmatmul.mubr.msk.bf16.gmra.mrb[16].mxu1 %vm765_vm1, %v18951_v37  ;;  %16682 = vmatmul.mubr.msk.bf16.gmra.mrb[112].mxu0 %vm765_vm1, %v18952_v38  ;;  %v19014_v37 = vld [vmem:[%s19328_s27 + $0x140] sm:$0xff]  }
 0x137   : > { %16325 = vmatprep.mubr.msk.bf16.mxu1 %vm765_vm1, %v18953_v39  ;;  %16685 = vmatprep.mubr.msk.bf16.mxu0 %vm765_vm1, %v18954_v40  ;;  %v19015_v38 = vld [vmem:[%s19328_s27 + $0xe0] sm:$0xff]   ;;  %v19016_v39 = vld [vmem:[%s19328_s27 + $0x148] sm:$0xff]  }
 0x138   : > { %v19017_v40 = vld [vmem:[%s19328_s27 + $0xe8] sm:$0xff]  }
 0x13e   : > { %16326 = vmatmul.mubr.msk.bf16.gmra.mrb[20].mxu1 %vm765_vm1, %v18955_v41  ;;  %16686 = vmatmul.mubr.msk.bf16.gmra.mrb[116].mxu0 %vm765_vm1, %v18956_v42  ;;  %v19018_v41 = vld [vmem:[%s19328_s27 + $0x150] sm:$0xff]  }
 0x13f   : > { %16329 = vmatprep.mubr.msk.bf16.mxu1 %vm765_vm1, %v18957_v43  ;;  %16689 = vmatprep.mubr.msk.bf16.mxu0 %vm765_vm1, %v18958_v44  ;;  %v19019_v42 = vld [vmem:[%s19328_s27 + $0xf0] sm:$0xff]   ;;  %v19020_v43 = vld [vmem:[%s19328_s27 + $0x158] sm:$0xff]  }
 0x140   : > { %v19021_v44 = vld [vmem:[%s19328_s27 + $0xf8] sm:$0xff]  }
 0x146   : > { %16330 = vmatmul.mubr.msk.bf16.gmra.mrb[24].mxu1 %vm765_vm1, %v18959_v45  ;;  %16690 = vmatmul.mubr.msk.bf16.gmra.mrb[120].mxu0 %vm765_vm1, %v18960_v46  ;;  %v19022_v45 = vld [vmem:[%s19328_s27 + $0x160] sm:$0xff]  }
 0x147   : > { %16333 = vmatprep.mubr.msk.bf16.mxu1 %vm765_vm1, %v18961_v47  ;;  %16693 = vmatprep.mubr.msk.bf16.mxu0 %vm765_vm1, %v18962_v48  ;;  %v19023_v46 = vld [vmem:[%s19328_s27 + $0x100] sm:$0xff]   ;;  %v19024_v47 = vld [vmem:[%s19328_s27 + $0x168] sm:$0xff]  }
 0x148   : > { %v19025_v48 = vld [vmem:[%s19328_s27 + $0x108] sm:$0xff]  }
 0x14e   : > { %16334 = vmatmul.mubr.msk.bf16.gmra.mrb[28].mxu1 %vm765_vm1, %v18963_v49  ;;  %16694 = vmatmul.mubr.msk.bf16.gmra.mrb[124].mxu0 %vm765_vm1, %v18964_v50  ;;  %v19026_v49 = vld [vmem:[%s19328_s27 + $0x170] sm:$0xff]  }
 0x14f   : > { %16337 = vmatprep.mubr.msk.bf16.mxu1 %vm765_vm1, %v18965_v51  ;;  %16701 = vmatprep.mubr.msk.bf16.mxu0 %vm765_vm1, %v18966_v52  ;;  %v19027_v50 = vld [vmem:[%s19328_s27 + $0x110] sm:$0xff]   ;;  %v19028_v51 = vld [vmem:[%s19328_s27 + $0x178] sm:$0xff]  }
 0x150   : > { %v19029_v52 = vld [vmem:[%s19328_s27 + $0x118] sm:$0xff]  }
 0x156   : > { %16338 = vmatmul.mubr.msk.bf16.gmra.mrb[32].mxu1 %vm765_vm1, %v18967_v53  ;;  %16702 = vmatmul.mubr.msk.bf16.vlgmr.msra.gmra.mrb[0].mxu0 %vm765_vm1, %v18968_v54  ;;  %v19030_v53 = vld [vmem:[%s19328_s27 + $0x180] sm:$0xff]  }
 0x157   : > { %16341 = vmatprep.mubr.msk.bf16.mxu1 %vm765_vm1, %v18969_v55  ;;  %16705 = vmatprep.mubr.msk.bf16.mxu0 %vm765_vm1, %v18970_v56  ;;  %v19031_v54 = vld [vmem:[%s19328_s27 + $0x120] sm:$0xff]   ;;  %v19032_v55 = vld [vmem:[%s19328_s27 + $0x188] sm:$0xff]  }
 0x158   : > { %16830 = vmatpush3.bf16.msra.mxu0 %v19621_v21  ;;  %v18997_v21 = vld [vmem:[%s19328_s27 + $0x100] sm:$0xff]   ;;  %v19033_v56 = vld [vmem:[%s19328_s27 + $0x128] sm:$0xff]  }
 0x159   : > { %18783 = vmatprep.subr.msk.bf16.mxu0 %vm958_vm0, %v19064_v24  ;;  %v19053_v24 = vld [vmem:[%s19328_s27 + $0x178] sm:$0xff]  }
 0x15c   : > { %16832 = vmatpush3.bf16.msra.mxu0 %v7221_v28 }
 0x15e   : > { %16342 = vmatmul.mubr.msk.bf16.gmra.mrb[36].mxu1 %vm765_vm1, %v18971_v57  ;;  %16706 = vmatmul.mubr.msk.bf16.gmra.mrb[4].mxu0 %vm765_vm1, %v18972_v58  ;;  %v19034_v57 = vld [vmem:[%s19328_s27 + $0x190] sm:$0xff]  }
 0x15f   : > { %16345 = vmatprep.mubr.msk.bf16.mxu1 %vm765_vm1, %v18973_v59  ;;  %16709 = vmatprep.mubr.msk.bf16.mxu0 %vm765_vm1, %v18974_v60  ;;  %v19035_v58 = vld [vmem:[%s19328_s27 + $0x130] sm:$0xff]   ;;  %v19036_v59 = vld [vmem:[%s19328_s27 + $0x198] sm:$0xff]  }
 0x160   : > { %v19037_v60 = vld [vmem:[%s19328_s27 + $0x138] sm:$0xff]  }
 0x166   : > { %16346 = vmatmul.mubr.msk.bf16.gmra.mrb[40].mxu1 %vm765_vm1, %v18975_v61  ;;  %16710 = vmatmul.mubr.msk.bf16.gmra.mrb[8].mxu0 %vm765_vm1, %v18976_v62  ;;  %v19038_v61 = vld [vmem:[%s19328_s27 + $0x1a0] sm:$0xff]  }
 0x167   : > { %16349 = vmatprep.mubr.msk.bf16.mxu1 %vm765_vm1, %v18977_v63  ;;  %16713 = vmatprep.mubr.msk.bf16.mxu0 %vm765_vm1, %v18978_v0  ;;  %v19039_v62 = vld [vmem:[%s19328_s27 + $0x140] sm:$0xff]   ;;  %v19040_v63 = vld [vmem:[%s19328_s27 + $0x1a8] sm:$0xff]  }
 0x168   : > { %v19041_v0 = vld [vmem:[%s19328_s27 + $0x148] sm:$0xff]  }
 0x16e   : > { %16350 = vmatmul.mubr.msk.bf16.gmra.mrb[44].mxu1 %vm765_vm1, %v18979_v2  ;;  %16714 = vmatmul.mubr.msk.bf16.gmra.mrb[12].mxu0 %vm765_vm1, %v18980_v3  ;;  %v19042_v2 = vld [vmem:[%s19328_s27 + $0x1b0] sm:$0xff]  }
 0x16f   : > { %16353 = vmatprep.mubr.msk.bf16.mxu1 %vm765_vm1, %v18981_v4  ;;  %16717 = vmatprep.mubr.msk.bf16.mxu0 %vm765_vm1, %v18982_v6  ;;  %v19043_v3 = vld [vmem:[%s19328_s27 + $0x150] sm:$0xff]   ;;  %v19044_v6 = vld [vmem:[%s19328_s27 + $0x1b8] sm:$0xff]  }
 0x176   : > { %16354 = vmatmul.mubr.msk.bf16.gmra.mrb[48].mxu1 %vm765_vm1, %v18983_v7  ;;  %16718 = vmatmul.mubr.msk.bf16.gmra.mrb[16].mxu0 %vm765_vm1, %v18984_v8  ;;  %v19045_v8 = vld [vmem:[%s19328_s27 + $0x158] sm:$0xff]  }
 0x177   : > { %16357 = vmatprep.mubr.msk.bf16.mxu1 %vm765_vm1, %v18985_v9  ;;  %16721 = vmatprep.mubr.msk.bf16.mxu0 %vm765_vm1, %v18986_v10  ;;  %v19046_v9 = vld [vmem:[%s19328_s27 + $0x1c0] sm:$0xff]  }
 0x17e   : > { %16358 = vmatmul.mubr.msk.bf16.gmra.mrb[52].mxu1 %vm765_vm1, %v18987_v11  ;;  %16722 = vmatmul.mubr.msk.bf16.gmra.mrb[20].mxu0 %vm765_vm1, %v18988_v12  ;;  %v19047_v11 = vld [vmem:[%s19328_s27 + $0x160] sm:$0xff]  }
 0x17f   : > { %16361 = vmatprep.mubr.msk.bf16.mxu1 %vm765_vm1, %v18989_v13  ;;  %16725 = vmatprep.mubr.msk.bf16.mxu0 %vm765_vm1, %v18990_v14  ;;  %v19048_v14 = vld [vmem:[%s19328_s27 + $0x1c8] sm:$0xff]  }
 0x186   : > { %16362 = vmatmul.mubr.msk.bf16.gmra.mrb[56].mxu1 %vm765_vm1, %v18991_v15  ;;  %16726 = vmatmul.mubr.msk.bf16.gmra.mrb[24].mxu0 %vm765_vm1, %v18992_v16  ;;  %v19049_v16 = vld [vmem:[%s19328_s27 + $0x168] sm:$0xff]  }
 0x187   : > { %16365 = vmatprep.mubr.msk.bf16.mxu1 %vm765_vm1, %v18993_v17  ;;  %16729 = vmatprep.mubr.msk.bf16.mxu0 %vm765_vm1, %v18994_v18  ;;  %v19050_v17 = vld [vmem:[%s19328_s27 + $0x1d0] sm:$0xff]  }
 0x18e   : > { %16366 = vmatmul.mubr.msk.bf16.gmra.mrb[60].mxu1 %vm765_vm1, %v18995_v19  ;;  %16730 = vmatmul.mubr.msk.bf16.gmra.mrb[28].mxu0 %vm765_vm1, %v18996_v20  ;;  %v19051_v19 = vld [vmem:[%s19328_s27 + $0x170] sm:$0xff]  }
 0x18f   : > { %16369 = vmatprep.mubr.msk.bf16.mxu1 %vm765_vm1, %v18997_v21  ;;  %16733 = vmatprep.mubr.msk.bf16.mxu0 %vm765_vm1, %v18998_v22  ;;  %v19052_v22 = vld [vmem:[%s19328_s27 + $0x1d8] sm:$0xff]  }
 0x196   : > { %16370 = vmatmul.mubr.msk.bf16.gmra.mrb[64].mxu1 %vm765_vm1, %v19000_v23  ;;  %16734 = vmatmul.mubr.msk.bf16.gmra.mrb[32].mxu0 %vm765_vm1, %v19001_v25  ;;  %v19054_v25 = vld [vmem:[%s19328_s27 + $0x1e0] sm:$0xff]  }
 0x197   : > { %16373 = vmatprep.mubr.msk.bf16.mxu1 %vm765_vm1, %v19002_v26  ;;  %16737 = vmatprep.mubr.msk.bf16.mxu0 %vm765_vm1, %v19003_v27  ;;  %v19055_v27 = vld [vmem:[%s19328_s27 + $0x180] sm:$0xff]  }
 0x19e   : > { %16374 = vmatmul.mubr.msk.bf16.gmra.mrb[68].mxu1 %vm765_vm1, %v19004_v29  ;;  %16738 = vmatmul.mubr.msk.bf16.gmra.mrb[36].mxu0 %vm765_vm1, %v19005_v1  ;;  %v19056_v1 = vld [vmem:[%s19328_s27 + $0x1e8] sm:$0xff]  }
 0x19f   : > { %16377 = vmatprep.mubr.msk.bf16.mxu1 %vm765_vm1, %v19006_v30  ;;  %16741 = vmatprep.mubr.msk.bf16.mxu0 %vm765_vm1, %v19007_v31  ;;  %v19057_v31 = vld [vmem:[%s19328_s27 + $0x188] sm:$0xff]  }
 0x1a6   : > { %16378 = vmatmul.mubr.msk.bf16.gmra.mrb[72].mxu1 %vm765_vm1, %v19008_v32  ;;  %16742 = vmatmul.mubr.msk.bf16.gmra.mrb[40].mxu0 %vm765_vm1, %v19009_v33  ;;  %v19058_v32 = vld [vmem:[%s19328_s27 + $0x1f0] sm:$0xff]  }
 0x1a7   : > { %16381 = vmatprep.mubr.msk.bf16.mxu1 %vm765_vm1, %v19010_v5  ;;  %16745 = vmatprep.mubr.msk.bf16.mxu0 %vm765_vm1, %v19011_v34  ;;  %v19059_v5 = vld [vmem:[%s19328_s27 + $0x190] sm:$0xff]  }
 0x1ae   : > { %16382 = vmatmul.mubr.msk.bf16.gmra.mrb[76].mxu1 %vm765_vm1, %v19012_v35  ;;  %16746 = vmatmul.mubr.msk.bf16.gmra.mrb[44].mxu0 %vm765_vm1, %v19013_v36  ;;  %v19060_v36 = vld [vmem:[%s19328_s27 + $0x1f8] sm:$0xff]  }
 0x1af   : > { %16385 = vmatprep.mubr.msk.bf16.mxu1 %vm765_vm1, %v19014_v37  ;;  %16749 = vmatprep.mubr.msk.bf16.mxu0 %vm765_vm1, %v19015_v38  ;;  %v19061_v38 = vld [vmem:[%s19328_s27 + $0x198] sm:$0xff]  }
 0x1b6   : > { %16386 = vmatmul.mubr.msk.bf16.gmra.mrb[80].mxu1 %vm765_vm1, %v19016_v39  ;;  %16750 = vmatmul.mubr.msk.bf16.gmra.mrb[48].mxu0 %vm765_vm1, %v19017_v40  ;;  %v19062_v39 = vld [vmem:[%s19328_s27 + $0x90] sm:$0xff]  }
 0x1b7   : > { %16389 = vmatprep.mubr.msk.bf16.mxu1 %vm765_vm1, %v19018_v41  ;;  %16753 = vmatprep.mubr.msk.bf16.mxu0 %vm765_vm1, %v19019_v42  ;;  %v19063_v41 = vld [vmem:[%s19328_s27 + $0x1a0] sm:$0xff]  }
 0x1be   : > { %16390 = vmatmul.mubr.msk.bf16.gmra.mrb[84].mxu1 %vm765_vm1, %v19020_v43  ;;  %16754 = vmatmul.mubr.msk.bf16.gmra.mrb[52].mxu0 %vm765_vm1, %v19021_v44  ;;  %v19936_v43 = vld [vmem:[%s21657_s1 + $0x48] sm:$0xff]  }
 0x1bf   : > { %16393 = vmatprep.mubr.msk.bf16.mxu1 %vm765_vm1, %v19022_v45  ;;  %16757 = vmatprep.mubr.msk.bf16.mxu0 %vm765_vm1, %v19023_v46  ;;  %v19065_v45 = vld [vmem:[%s19328_s27 + $0x98] sm:$0xff]  }
 0x1c0   : > { %16961 = vmatprep.subr.bf16.mxu0 %v19936_v43 }
 0x1c6   : > { %16394 = vmatmul.mubr.msk.bf16.gmra.mrb[88].mxu1 %vm765_vm1, %v19024_v47  ;;  %16758 = vmatmul.mubr.msk.bf16.gmra.mrb[56].mxu0 %vm765_vm1, %v19025_v48  ;;  %v19066_v47 = vld [vmem:[%s19328_s27 + $0x1a8] sm:$0xff]   ;;  %v19067_v48 = vld [vmem:[%s19328_s27 + $0xa0] sm:$0xff]  }
 0x1c7   : > { %16397 = vmatprep.mubr.msk.bf16.mxu1 %vm765_vm1, %v19026_v49  ;;  %16761 = vmatprep.mubr.msk.bf16.mxu0 %vm765_vm1, %v19027_v50  ;;  %v19068_v50 = vld [vmem:[%s19328_s27 + $0x1b0] sm:$0xff]  }
 0x1ce   : > { %16398 = vmatmul.mubr.msk.bf16.gmra.mrb[92].mxu1 %vm765_vm1, %v19028_v51  ;;  %16762 = vmatmul.mubr.msk.bf16.gmra.mrb[60].mxu0 %vm765_vm1, %v19029_v52 }
 0x1cf   : > { %16401 = vmatprep.mubr.msk.bf16.mxu1 %vm765_vm1, %v19030_v53  ;;  %16765 = vmatprep.mubr.msk.bf16.mxu0 %vm765_vm1, %v19031_v54  ;;  %v19069_v53 = vld [vmem:[%s19328_s27 + $0xa8] sm:$0xff]  }
 0x1d6   : > { %16402 = vmatmul.mubr.msk.bf16.gmra.mrb[96].mxu1 %vm765_vm1, %v19032_v55  ;;  %16766 = vmatmul.mubr.msk.bf16.gmra.mrb[64].mxu0 %vm765_vm1, %v19033_v56  ;;  %v19070_v55 = vld [vmem:[%s19328_s27 + $0x1b8] sm:$0xff]   ;;  %v19071_v56 = vld [vmem:[%s19328_s27 + $0xb0] sm:$0xff]  }
 0x1d7   : > { %16405 = vmatprep.mubr.msk.bf16.mxu1 %vm765_vm1, %v19034_v57  ;;  %16769 = vmatprep.mubr.msk.bf16.mxu0 %vm765_vm1, %v19035_v58  ;;  %v19072_v58 = vld [vmem:[%s19328_s27 + $0x1c0] sm:$0xff]  }
 0x1de   : > { %16406 = vmatmul.mubr.msk.bf16.gmra.mrb[100].mxu1 %vm765_vm1, %v19036_v59  ;;  %16770 = vmatmul.mubr.msk.bf16.gmra.mrb[68].mxu0 %vm765_vm1, %v19037_v60 }
 0x1df   : > { %16409 = vmatprep.mubr.msk.bf16.mxu1 %vm765_vm1, %v19038_v61  ;;  %16773 = vmatprep.mubr.msk.bf16.mxu0 %vm765_vm1, %v19039_v62  ;;  %v19073_v61 = vld [vmem:[%s19328_s27 + $0xb8] sm:$0xff]  }
 0x1e6   : > { %16410 = vmatmul.mubr.msk.bf16.gmra.mrb[104].mxu1 %vm765_vm1, %v19040_v63  ;;  %16774 = vmatmul.mubr.msk.bf16.gmra.mrb[72].mxu0 %vm765_vm1, %v19041_v0  ;;  %v19074_v63 = vld [vmem:[%s19328_s27 + $0x1c8] sm:$0xff]   ;;  %v19075_v0 = vld [vmem:[%s19328_s27 + $0xc0] sm:$0xff]  }
 0x1e7   : > { %16413 = vmatprep.mubr.msk.bf16.mxu1 %vm765_vm1, %v19042_v2  ;;  %16777 = vmatprep.mubr.msk.bf16.mxu0 %vm765_vm1, %v19043_v3  ;;  %v19076_v3 = vld [vmem:[%s19328_s27 + $0x1d0] sm:$0xff]  }
 0x1e9   : > { %v19853_v4 = vpop.f32.mrb[0].mxu1 }
 0x1ea   : > { %v19856_v7 = vpop.f32.mrb[1].mxu1 }
 0x1eb   : > { %v19860_v10 = vpop.f32.mrb[2].mxu1 }
 0x1ec   : > { %v19863_v12 = vpop.f32.mrb[3].mxu1 }
 0x1ee   : > { %16414 = vmatmul.mubr.msk.bf16.gmra.mrb[108].mxu1 %vm765_vm1, %v19044_v6  ;;  %16778 = vmatmul.mubr.msk.bf16.gmra.mrb[76].mxu0 %vm765_vm1, %v19045_v8  ;;  %v19077_v8 = vld [vmem:[%s19328_s27 + $0xc8] sm:$0xff]  }
 0x1ef   : > { %16417 = vmatprep.mubr.msk.bf16.mxu1 %vm765_vm1, %v19046_v9  ;;  %16781 = vmatprep.mubr.msk.bf16.mxu0 %vm765_vm1, %v19047_v11  ;;  %v19078_v9 = vld [vmem:[%s19328_s27 + $0x1d8] sm:$0xff]   ;;  %v19079_v11 = vld [vmem:[%s19328_s27 + $0xd0] sm:$0xff]  }
 0x1f1   : > { %v19869_v13 = vpop.f32.mrb[4].mxu1 }
 0x1f2   : > { %v19872_v15 = vpop.f32.mrb[5].mxu1 }
 0x1f3   : > { %v19876_v18 = vpop.f32.mrb[6].mxu1 }
 0x1f4   : > { %v19879_v20 = vpop.f32.mrb[7].mxu1 }
 0x1f6   : > { %16418 = vmatmul.mubr.msk.bf16.gmra.mrb[112].mxu1 %vm765_vm1, %v19048_v14  ;;  %16782 = vmatmul.mubr.msk.bf16.gmra.mrb[80].mxu0 %vm765_vm1, %v19049_v16  ;;  %v19080_v14 = vld [vmem:[%s19328_s27 + $0x1e0] sm:$0xff]   ;;  %v19081_v16 = vld [vmem:[%s19328_s27 + $0xd8] sm:$0xff]  }
 0x1f7   : > { %16421 = vmatprep.mubr.msk.bf16.mxu1 %vm765_vm1, %v19050_v17  ;;  %16785 = vmatprep.mubr.msk.bf16.mxu0 %vm765_vm1, %v19051_v19  ;;  %v19082_v17 = vld [vmem:[%s19328_s27 + $0x1e8] sm:$0xff]   ;;  %v19083_v19 = vld [vmem:[%s19328_s27 + $0xe0] sm:$0xff]  }
 0x1f9   : > { %v19885_v21 = vpop.f32.mrb[8].mxu1 }
 0x1fa   : > { %v19888_v23 = vpop.f32.mrb[9].mxu1 }
 0x1fb   : > { %v19892_v26 = vpop.f32.mrb[10].mxu1 }
 0x1fc   : > { %v19895_v28 = vpop.f32.mrb[11].mxu1 }
 0x1fe   : > { %16422 = vmatmul.mubr.msk.bf16.gmra.mrb[116].mxu1 %vm765_vm1, %v19052_v22  ;;  %16786 = vmatmul.mubr.msk.bf16.gmra.mrb[84].mxu0 %vm765_vm1, %v19053_v24  ;;  %v19084_v22 = vld [vmem:[%s19328_s27 + $0x1f0] sm:$0xff]   ;;  %v19085_v24 = vld [vmem:[%s19328_s27 + $0xe8] sm:$0xff]  }
 0x1ff   : > { %16425 = vmatprep.mubr.msk.bf16.mxu1 %vm765_vm1, %v19054_v25  ;;  %16789 = vmatprep.mubr.msk.bf16.mxu0 %vm765_vm1, %v19055_v27  ;;  %v19086_v25 = vld [vmem:[%s19328_s27 + $0x1f8] sm:$0xff]   ;;  %v19087_v27 = vld [vmem:[%s19328_s27 + $0xf0] sm:$0xff]  }
 0x201   : > { %v19901_v29 = vpop.f32.mrb[12].mxu1 }
 0x202   : > { %v19904_v30 = vpop.f32.mrb[13].mxu1 }
 0x203   : > { %v19908_v33 = vpop.f32.mrb[14].mxu1 }
 0x204   : > { %v19911_v34 = vpop.f32.mrb[15].mxu1 }
 0x206   : > { %16426 = vmatmul.mubr.msk.bf16.gmra.mrb[120].mxu1 %vm765_vm1, %v19056_v1  ;;  %16790 = vmatmul.mubr.msk.bf16.gmra.mrb[88].mxu0 %vm765_vm1, %v19057_v31  ;;  %v19088_v1 = vld [vmem:[%s19328_s27 + $0x200] sm:$0xff]   ;;  %v19089_v31 = vld [vmem:[%s19328_s27 + $0xf8] sm:$0xff]  }
 0x207   : > { %16429 = vmatprep.mubr.msk.bf16.mxu1 %vm765_vm1, %v19058_v32  ;;  %16793 = vmatprep.mubr.msk.bf16.mxu0 %vm765_vm1, %v19059_v5  ;;  %v19090_v32 = vld [vmem:[%s19328_s27 + $0x208] sm:$0xff]   ;;  %v19091_v5 = vld [vmem:[%s19328_s27 + $0x100] sm:$0xff]  }
 0x209   : > { %v19917_v35 = vpop.f32.mrb[16].mxu1 }
 0x20a   : > { %v19920_v37 = vpop.f32.mrb[17].mxu1 }
 0x20b   : > { %v19924_v40 = vpop.f32.mrb[18].mxu1 }
 0x20c   : > { %v19927_v42 = vpop.f32.mrb[19].mxu1 }
 0x20e   : > { %16430 = vmatmul.mubr.msk.bf16.gmra.mrb[124].mxu1 %vm765_vm1, %v19060_v36  ;;  %16794 = vmatmul.mubr.msk.bf16.gmra.mrb[92].mxu0 %vm765_vm1, %v19061_v38  ;;  %v19092_v36 = vld [vmem:[%s19328_s27 + $0x210] sm:$0xff]   ;;  %v19093_v38 = vld [vmem:[%s19328_s27 + $0x108] sm:$0xff]  }
 0x20f   : > { %16469 = vmatprep.mubr.msk.bf16.mxu1 %vm765_vm1, %v19062_v39  ;;  %16797 = vmatprep.mubr.msk.bf16.mxu0 %vm765_vm1, %v19063_v41  ;;  %v19094_v39 = vld [vmem:[%s19328_s27 + $0x218] sm:$0xff]   ;;  %v19095_v41 = vld [vmem:[%s19328_s27 + $0x110] sm:$0xff]  }
 0x211   : > { %v19938_v44 = vpop.f32.mrb[20].mxu1 }
 0x212   : > { %v19942_v46 = vpop.f32.mrb[21].mxu1 }
 0x213   : > { %v19946_v49 = vpop.f32.mrb[22].mxu1 }
 0x214   : > { %v19949_v51 = vpop.f32.mrb[23].mxu1 }
 0x216   : > { %16470 = vmatmul.mubr.msk.bf16.vlgmr.msra.gmra.mrb[32].mxu1 %vm765_vm1, %v19065_v45  ;;  %16798 = vmatmul.mubr.msk.bf16.gmra.mrb[96].mxu0 %vm765_vm1, %v19066_v47  ;;  %v19096_v45 = vld [vmem:[%s19328_s27 + $0x250] sm:$0xff]   ;;  %v19097_v47 = vld [vmem:[%s19328_s27 + $0x118] sm:$0xff]  }
 0x217   : > { %16473 = vmatprep.mubr.msk.bf16.mxu1 %vm765_vm1, %v19067_v48  ;;  %16801 = vmatprep.mubr.msk.bf16.mxu0 %vm765_vm1, %v19068_v50  ;;  %v19098_v48 = vld [vmem:[%s19328_s27 + $0x258] sm:$0xff]   ;;  %v19099_v50 = vld [vmem:[%s19328_s27 + $0x120] sm:$0xff]  }
 0x219   : > { %v19955_v52 = vpop.f32.mrb[24].mxu1 }
 0x21a   : > { %v19958_v54 = vpop.f32.mrb[25].mxu1 }
 0x21b   : > { %v19962_v57 = vpop.f32.mrb[26].mxu1 }
 0x21c   : > { %v19965_v59 = vpop.f32.mrb[27].mxu1 }
 0x21e   : > { %16474 = vmatmul.mubr.msk.bf16.gmra.mrb[36].mxu1 %vm765_vm1, %v19069_v53  ;;  %16802 = vmatmul.mubr.msk.bf16.gmra.mrb[100].mxu0 %vm765_vm1, %v19070_v55  ;;  %v19100_v53 = vld [vmem:[%s19328_s27 + $0x260] sm:$0xff]   ;;  %v19101_v55 = vld [vmem:[%s19328_s27 + $0x128] sm:$0xff]  }
 0x21f   : > { %16477 = vmatprep.mubr.msk.bf16.mxu1 %vm765_vm1, %v19071_v56  ;;  %16805 = vmatprep.mubr.msk.bf16.mxu0 %vm765_vm1, %v19072_v58  ;;  %v19102_v56 = vld [vmem:[%s19328_s27 + $0x268] sm:$0xff]   ;;  %v19103_v58 = vld [vmem:[%s19328_s27 + $0x130] sm:$0xff]  }
 0x221   : > { %v19971_v60 = vpop.f32.mrb[28].mxu1 }
 0x222   : > { %v19974_v62 = vpop.f32.mrb[29].mxu1 }
 0x223   : > { %v19978_v2 = vpop.f32.mrb[30].mxu1 }
 0x224   : > { %v19981_v6 = vpop.f32.mrb[31].mxu1 }
 0x226   : > { %16478 = vmatmul.mubr.msk.bf16.gmra.mrb[40].mxu1 %vm765_vm1, %v19073_v61  ;;  %16806 = vmatmul.mubr.msk.bf16.gmra.mrb[104].mxu0 %vm765_vm1, %v19074_v63  ;;  %v19104_v61 = vld [vmem:[%s19328_s27 + $0x270] sm:$0xff]   ;;  %v19105_v63 = vld [vmem:[%s19328_s27 + $0x138] sm:$0xff]  }
 0x227   : > { %16481 = vmatprep.mubr.msk.bf16.mxu1 %vm765_vm1, %v19075_v0  ;;  %16809 = vmatprep.mubr.msk.bf16.mxu0 %vm765_vm1, %v19076_v3  ;;  %v19106_v0 = vld [vmem:[%s19328_s27 + $0x278] sm:$0xff]   ;;  %v19108_v3 = vld [vmem:[%s19328_s27 + $0x280] sm:$0xff]  }
 0x22e   : > { %16482 = vmatmul.mubr.msk.bf16.gmra.mrb[44].mxu1 %vm765_vm1, %v19077_v8  ;;  %16810 = vmatmul.mubr.msk.bf16.gmra.mrb[108].mxu0 %vm765_vm1, %v19078_v9  ;;  %v19109_v8 = vld [vmem:[%s19328_s27 + $0x148] sm:$0xff]  }
 0x22f   : > { %16485 = vmatprep.mubr.msk.bf16.mxu1 %vm765_vm1, %v19079_v11  ;;  %16813 = vmatprep.mubr.msk.bf16.mxu0 %vm765_vm1, %v19080_v14  ;;  %v19110_v9 = vld [vmem:[%s19328_s27 + $0x288] sm:$0xff]   ;;  %v19111_v11 = vld [vmem:[%s19328_s27 + $0x150] sm:$0xff]  }
 0x230   : > { %v19112_v14 = vld [vmem:[%s19328_s27 + $0x290] sm:$0xff]  }
 0x236   : > { %16486 = vmatmul.mubr.msk.bf16.gmra.mrb[48].mxu1 %vm765_vm1, %v19081_v16  ;;  %16814 = vmatmul.mubr.msk.bf16.gmra.mrb[112].mxu0 %vm765_vm1, %v19082_v17  ;;  %v19113_v16 = vld [vmem:[%s19328_s27 + $0x158] sm:$0xff]  }
 0x237   : > { %16489 = vmatprep.mubr.msk.bf16.mxu1 %vm765_vm1, %v19083_v19  ;;  %16817 = vmatprep.mubr.msk.bf16.mxu0 %vm765_vm1, %v19084_v22  ;;  %v19114_v17 = vld [vmem:[%s19328_s27 + $0x298] sm:$0xff]   ;;  %v19115_v19 = vld [vmem:[%s19328_s27 + $0x160] sm:$0xff]  }
 0x238   : > { %v19116_v22 = vld [vmem:[%s19328_s27 + $0x2a0] sm:$0xff]  }
 0x23e   : > { %16490 = vmatmul.mubr.msk.bf16.gmra.mrb[52].mxu1 %vm765_vm1, %v19085_v24  ;;  %16818 = vmatmul.mubr.msk.bf16.gmra.mrb[116].mxu0 %vm765_vm1, %v19086_v25  ;;  %v19117_v24 = vld [vmem:[%s19328_s27 + $0x168] sm:$0xff]  }
 0x23f   : > { %16493 = vmatprep.mubr.msk.bf16.mxu1 %vm765_vm1, %v19087_v27  ;;  %16821 = vmatprep.mubr.msk.bf16.mxu0 %vm765_vm1, %v19088_v1  ;;  %v19118_v25 = vld [vmem:[%s19328_s27 + $0x2a8] sm:$0xff]   ;;  %v19119_v27 = vld [vmem:[%s19328_s27 + $0x170] sm:$0xff]  }
 0x240   : > { %v19120_v1 = vld [vmem:[%s19328_s27 + $0x2b0] sm:$0xff]  }
 0x246   : > { %16494 = vmatmul.mubr.msk.bf16.gmra.mrb[56].mxu1 %vm765_vm1, %v19089_v31  ;;  %16822 = vmatmul.mubr.msk.bf16.gmra.mrb[120].mxu0 %vm765_vm1, %v19090_v32  ;;  %v19121_v31 = vld [vmem:[%s19328_s27 + $0x178] sm:$0xff]  }
 0x247   : > { %16497 = vmatprep.mubr.msk.bf16.mxu1 %vm765_vm1, %v19091_v5  ;;  %16825 = vmatprep.mubr.msk.bf16.mxu0 %vm765_vm1, %v19092_v36  ;;  %v19122_v32 = vld [vmem:[%s19328_s27 + $0x2b8] sm:$0xff]   ;;  %v19123_v5 = vld [vmem:[%s19328_s27 + $0x180] sm:$0xff]  }
 0x248   : > { %v19124_v36 = vld [vmem:[%s19328_s27 + $0x2c0] sm:$0xff]  }
 0x24e   : > { %16498 = vmatmul.mubr.msk.bf16.gmra.mrb[60].mxu1 %vm765_vm1, %v19093_v38  ;;  %16826 = vmatmul.mubr.msk.bf16.gmra.mrb[124].mxu0 %vm765_vm1, %v19094_v39  ;;  %v19125_v38 = vld [vmem:[%s19328_s27 + $0x188] sm:$0xff]  }
 0x24f   : > { %16501 = vmatprep.mubr.msk.bf16.mxu1 %vm765_vm1, %v19095_v41  ;;  %16833 = vmatprep.mubr.msk.bf16.mxu0 %vm765_vm1, %v19096_v45  ;;  %v19126_v39 = vld [vmem:[%s19328_s27 + $0x2c8] sm:$0xff]   ;;  %v19127_v41 = vld [vmem:[%s19328_s27 + $0x190] sm:$0xff]  }
 0x250   : > { %v19128_v45 = vld [vmem:[%s19328_s27 + $0x2d0] sm:$0xff]  }
 0x256   : > { %16502 = vmatmul.mubr.msk.bf16.gmra.mrb[64].mxu1 %vm765_vm1, %v19097_v47  ;;  %16834 = vmatmul.mubr.msk.bf16.vlgmr.msra.gmra.mrb[0].mxu0 %vm765_vm1, %v19098_v48  ;;  %v19130_v47 = vld [vmem:[%s19328_s27 + $0x198] sm:$0xff]  }
 0x257   : > { %16505 = vmatprep.mubr.msk.bf16.mxu1 %vm765_vm1, %v19099_v50  ;;  %16837 = vmatprep.mubr.msk.bf16.mxu0 %vm765_vm1, %v19100_v53  ;;  %v19131_v48 = vld [vmem:[%s19328_s27 + $0x2d8] sm:$0xff]   ;;  %v19132_v50 = vld [vmem:[%s19328_s27 + $0x1a0] sm:$0xff]  }
 0x258   : > { %16962 = vmatpush3.bf16.msra.mxu0 %v19936_v43  ;;  %v19107_v43 = vld [vmem:[%s19328_s27 + $0x140] sm:$0xff]  }
 0x259   : > { %v19133_v53 = vld [vmem:[%s19328_s27 + $0x2e0] sm:$0xff]  }
 0x25e   : > { %16506 = vmatmul.mubr.msk.bf16.gmra.mrb[68].mxu1 %vm765_vm1, %v19101_v55  ;;  %16838 = vmatmul.mubr.msk.bf16.gmra.mrb[4].mxu0 %vm765_vm1, %v19102_v56  ;;  %v19177_v55 = vld [vmem:[%s21657_s1 + $0x50] ss:$0 sps:$4 sm:$0xff]  }
 0x25f   : > { %16509 = vmatprep.mubr.msk.bf16.mxu1 %vm765_vm1, %v19103_v58  ;;  %16841 = vmatprep.mubr.msk.bf16.mxu0 %vm765_vm1, %v19104_v61  ;;  %v8551_v56 = vsel %vm958_vm0, %v19177_v55, 0  ;;  %v19134_v58 = vld [vmem:[%s19328_s27 + $0x1a8] sm:$0xff]  }
 0x260   : > { %18784 = vmatprep.subr.msk.bf16.mxu0 %vm958_vm0, %v19177_v55  ;;  %v19135_v61 = vld [vmem:[%s19328_s27 + $0x2e8] sm:$0xff]   ;;  %v19164_v55 = vld [vmem:[%s19328_s27 + $0x370] sm:$0xff]  }
 0x261   : > { %16964 = vmatpush3.bf16.msra.mxu0 %v8551_v56  ;;  %v19165_v56 = vld [vmem:[%s19328_s27 + $0x378] sm:$0xff]  }
 0x266   : > { %16510 = vmatmul.mubr.msk.bf16.gmra.mrb[72].mxu1 %vm765_vm1, %v19105_v63  ;;  %16842 = vmatmul.mubr.msk.bf16.gmra.mrb[8].mxu0 %vm765_vm1, %v19106_v0  ;;  %v19136_v63 = vld [vmem:[%s19328_s27 + $0x1b0] sm:$0xff]  }
 0x267   : > { %16513 = vmatprep.mubr.msk.bf16.mxu1 %vm765_vm1, %v19107_v43  ;;  %16845 = vmatprep.mubr.msk.bf16.mxu0 %vm765_vm1, %v19108_v3  ;;  %v19137_v0 = vld [vmem:[%s19328_s27 + $0x2f0] sm:$0xff]   ;;  %v19138_v43 = vld [vmem:[%s19328_s27 + $0x1b8] sm:$0xff]  }
 0x268   : > { %v19139_v3 = vld [vmem:[%s19328_s27 + $0x2f8] sm:$0xff]  }
 0x26e   : > { %16514 = vmatmul.mubr.msk.bf16.gmra.mrb[76].mxu1 %vm765_vm1, %v19109_v8  ;;  %16846 = vmatmul.mubr.msk.bf16.gmra.mrb[12].mxu0 %vm765_vm1, %v19110_v9  ;;  %v19140_v8 = vld [vmem:[%s19328_s27 + $0x1c0] sm:$0xff]  }
 0x26f   : > { %16517 = vmatprep.mubr.msk.bf16.mxu1 %vm765_vm1, %v19111_v11  ;;  %16849 = vmatprep.mubr.msk.bf16.mxu0 %vm765_vm1, %v19112_v14  ;;  %v19141_v9 = vld [vmem:[%s19328_s27 + $0x300] sm:$0xff]   ;;  %v19142_v11 = vld [vmem:[%s19328_s27 + $0x1c8] sm:$0xff]  }
 0x270   : > { %v19143_v14 = vld [vmem:[%s19328_s27 + $0x308] sm:$0xff]  }
 0x276   : > { %16518 = vmatmul.mubr.msk.bf16.gmra.mrb[80].mxu1 %vm765_vm1, %v19113_v16  ;;  %16850 = vmatmul.mubr.msk.bf16.gmra.mrb[16].mxu0 %vm765_vm1, %v19114_v17  ;;  %v19144_v16 = vld [vmem:[%s19328_s27 + $0x1d0] sm:$0xff]  }
 0x277   : > { %16521 = vmatprep.mubr.msk.bf16.mxu1 %vm765_vm1, %v19115_v19  ;;  %16853 = vmatprep.mubr.msk.bf16.mxu0 %vm765_vm1, %v19116_v22  ;;  %v19145_v17 = vld [vmem:[%s19328_s27 + $0x310] sm:$0xff]   ;;  %v19146_v19 = vld [vmem:[%s19328_s27 + $0x1d8] sm:$0xff]  }
 0x278   : > { %v19147_v22 = vld [vmem:[%s19328_s27 + $0x318] sm:$0xff]  }
 0x27e   : > { %16522 = vmatmul.mubr.msk.bf16.gmra.mrb[84].mxu1 %vm765_vm1, %v19117_v24  ;;  %16854 = vmatmul.mubr.msk.bf16.gmra.mrb[20].mxu0 %vm765_vm1, %v19118_v25  ;;  %v19148_v24 = vld [vmem:[%s19328_s27 + $0x1e0] sm:$0xff]  }
 0x27f   : > { %16525 = vmatprep.mubr.msk.bf16.mxu1 %vm765_vm1, %v19119_v27  ;;  %16857 = vmatprep.mubr.msk.bf16.mxu0 %vm765_vm1, %v19120_v1  ;;  %v19149_v25 = vld [vmem:[%s19328_s27 + $0x320] sm:$0xff]   ;;  %v19150_v27 = vld [vmem:[%s19328_s27 + $0x1e8] sm:$0xff]  }
 0x280   : > { %v19151_v1 = vld [vmem:[%s19328_s27 + $0x328] sm:$0xff]  }
 0x286   : > { %16526 = vmatmul.mubr.msk.bf16.gmra.mrb[88].mxu1 %vm765_vm1, %v19121_v31  ;;  %16858 = vmatmul.mubr.msk.bf16.gmra.mrb[24].mxu0 %vm765_vm1, %v19122_v32  ;;  %v19152_v31 = vld [vmem:[%s19328_s27 + $0x1f0] sm:$0xff]  }
 0x287   : > { %16529 = vmatprep.mubr.msk.bf16.mxu1 %vm765_vm1, %v19123_v5  ;;  %16861 = vmatprep.mubr.msk.bf16.mxu0 %vm765_vm1, %v19124_v36  ;;  %v19153_v32 = vld [vmem:[%s19328_s27 + $0x330] sm:$0xff]   ;;  %v19154_v5 = vld [vmem:[%s19328_s27 + $0x1f8] sm:$0xff]  }
 0x288   : > { %v19155_v36 = vld [vmem:[%s19328_s27 + $0x338] sm:$0xff]  }
 0x28e   : > { %16530 = vmatmul.mubr.msk.bf16.gmra.mrb[92].mxu1 %vm765_vm1, %v19125_v38  ;;  %16862 = vmatmul.mubr.msk.bf16.gmra.mrb[28].mxu0 %vm765_vm1, %v19126_v39  ;;  %v19156_v38 = vld [vmem:[%s19328_s27 + $0x200] sm:$0xff]  }
 0x28f   : > { %16533 = vmatprep.mubr.msk.bf16.mxu1 %vm765_vm1, %v19127_v41  ;;  %16865 = vmatprep.mubr.msk.bf16.mxu0 %vm765_vm1, %v19128_v45  ;;  %v19157_v39 = vld [vmem:[%s19328_s27 + $0x340] sm:$0xff]   ;;  %v19158_v41 = vld [vmem:[%s19328_s27 + $0x208] sm:$0xff]  }
 0x290   : > { %v19159_v45 = vld [vmem:[%s19328_s27 + $0x348] sm:$0xff]  }
 0x296   : > { %16534 = vmatmul.mubr.msk.bf16.gmra.mrb[96].mxu1 %vm765_vm1, %v19130_v47  ;;  %16866 = vmatmul.mubr.msk.bf16.gmra.mrb[32].mxu0 %vm765_vm1, %v19131_v48  ;;  %v19160_v47 = vld [vmem:[%s19328_s27 + $0x350] sm:$0xff]   ;;  %v19161_v48 = vld [vmem:[%s19328_s27 + $0x358] sm:$0xff]  }
 0x297   : > { %16537 = vmatprep.mubr.msk.bf16.mxu1 %vm765_vm1, %v19132_v50  ;;  %16869 = vmatprep.mubr.msk.bf16.mxu0 %vm765_vm1, %v19133_v53  ;;  %v19162_v50 = vld [vmem:[%s19328_s27 + $0x360] sm:$0xff]   ;;  %v19163_v53 = vld [vmem:[%s19328_s27 + $0x368] sm:$0xff]  }
 0x29e   : > { %16538 = vmatmul.mubr.msk.bf16.gmra.mrb[100].mxu1 %vm765_vm1, %v19134_v58  ;;  %16870 = vmatmul.mubr.msk.bf16.gmra.mrb[36].mxu0 %vm765_vm1, %v19135_v61  ;;  %v19166_v58 = vld [vmem:[%s19328_s27 + $0x380] sm:$0xff]  }
 0x29f   : > { %16541 = vmatprep.mubr.msk.bf16.mxu1 %vm765_vm1, %v19136_v63  ;;  %16873 = vmatprep.mubr.msk.bf16.mxu0 %vm765_vm1, %v19137_v0 }
 0x2a6   : > { %16542 = vmatmul.mubr.msk.bf16.gmra.mrb[104].mxu1 %vm765_vm1, %v19138_v43  ;;  %16874 = vmatmul.mubr.msk.bf16.gmra.mrb[40].mxu0 %vm765_vm1, %v19139_v3  ;;  %v19167_v43 = vld [vmem:[%s19328_s27 + $0x388] sm:$0xff]  }
 0x2a7   : > { %16545 = vmatprep.mubr.msk.bf16.mxu1 %vm765_vm1, %v19140_v8  ;;  %16877 = vmatprep.mubr.msk.bf16.mxu0 %vm765_vm1, %v19141_v9  ;;  %v19168_v8 = vld [vmem:[%s19328_s27 + $0x390] sm:$0xff]  }
 0x2ae   : > { %16546 = vmatmul.mubr.msk.bf16.gmra.mrb[108].mxu1 %vm765_vm1, %v19142_v11  ;;  %16878 = vmatmul.mubr.msk.bf16.gmra.mrb[44].mxu0 %vm765_vm1, %v19143_v14 }
 0x2af   : > { %16549 = vmatprep.mubr.msk.bf16.mxu1 %vm765_vm1, %v19144_v16  ;;  %16881 = vmatprep.mubr.msk.bf16.mxu0 %vm765_vm1, %v19145_v17  ;;  %v19169_v16 = vld [vmem:[%s19328_s27 + $0x398] sm:$0xff]  }
 0x2b6   : > { %16550 = vmatmul.mubr.msk.bf16.gmra.mrb[112].mxu1 %vm765_vm1, %v19146_v19  ;;  %16882 = vmatmul.mubr.msk.bf16.gmra.mrb[48].mxu0 %vm765_vm1, %v19147_v22  ;;  %v19170_v19 = vld [vmem:[%s19328_s27 + $0x3a0] sm:$0xff]  }
 0x2b7   : > { %16553 = vmatprep.mubr.msk.bf16.mxu1 %vm765_vm1, %v19148_v24  ;;  %16885 = vmatprep.mubr.msk.bf16.mxu0 %vm765_vm1, %v19149_v25 }
 0x2be   : > { %16554 = vmatmul.mubr.msk.bf16.gmra.mrb[116].mxu1 %vm765_vm1, %v19150_v27  ;;  %16886 = vmatmul.mubr.msk.bf16.gmra.mrb[52].mxu0 %vm765_vm1, %v19151_v1  ;;  %v19171_v27 = vld [vmem:[%s19328_s27 + $0x3a8] sm:$0xff]  }
 0x2bf   : > { %16557 = vmatprep.mubr.msk.bf16.mxu1 %vm765_vm1, %v19152_v31  ;;  %16889 = vmatprep.mubr.msk.bf16.mxu0 %vm765_vm1, %v19153_v32  ;;  %v19172_v31 = vld [vmem:[%s19328_s27 + $0x3b0] sm:$0xff]  }
 0x2c6   : > { %16558 = vmatmul.mubr.msk.bf16.gmra.mrb[120].mxu1 %vm765_vm1, %v19154_v5  ;;  %16890 = vmatmul.mubr.msk.bf16.gmra.mrb[56].mxu0 %vm765_vm1, %v19155_v36 }
 0x2c7   : > { %16561 = vmatprep.mubr.msk.bf16.mxu1 %vm765_vm1, %v19156_v38  ;;  %16893 = vmatprep.mubr.msk.bf16.mxu0 %vm765_vm1, %v19157_v39  ;;  %v19173_v38 = vld [vmem:[%s19328_s27 + $0x3b8] sm:$0xff]  }
 0x2ce   : > { %16562 = vmatmul.mubr.msk.bf16.gmra.mrb[124].mxu1 %vm765_vm1, %v19158_v41  ;;  %16894 = vmatmul.mubr.msk.bf16.gmra.mrb[60].mxu0 %vm765_vm1, %v19159_v45  ;;  %v19174_v41 = vld [vmem:[%s19328_s27 + $0x3c0] sm:$0xff]  }
 0x2cf   : > { %16897 = vmatprep.mubr.msk.bf16.mxu0 %vm765_vm1, %v19160_v47 }
 0x2d6   : > { %16898 = vmatmul.mubr.msk.bf16.gmra.mrb[64].mxu0 %vm765_vm1, %v19161_v48 }
 0x2d7   : > { %16901 = vmatprep.mubr.msk.bf16.mxu0 %vm765_vm1, %v19162_v50  ;;  %v19175_v50 = vld [vmem:[%s19328_s27 + $0x3c8] sm:$0xff]  }
 0x2de   : > { %16902 = vmatmul.mubr.msk.bf16.gmra.mrb[68].mxu0 %vm765_vm1, %v19163_v53 }
 0x2df   : > { %16905 = vmatprep.mubr.msk.bf16.mxu0 %vm765_vm1, %v19164_v55  ;;  %v19176_v55 = vld [vmem:[%s19328_s27 + $0x3d0] sm:$0xff]  }
 0x2e6   : > { %16906 = vmatmul.mubr.msk.bf16.gmra.mrb[72].mxu0 %vm765_vm1, %v19165_v56 }
 0x2e7   : > { %16909 = vmatprep.mubr.msk.bf16.mxu0 %vm765_vm1, %v19166_v58 }
 0x2e9   : > { %v20171_v61 = vpop.f32.mrb[32].mxu1 }
 0x2ea   : > { %v20173_v63 = vpop.f32.mrb[33].mxu1 }
 0x2eb   : > { %v20175_v0 = vpop.f32.mrb[34].mxu1 }
 0x2ec   : > { %v20178_v3 = vpop.f32.mrb[35].mxu1 }
 0x2ee   : > { %16910 = vmatmul.mubr.msk.bf16.gmra.mrb[76].mxu0 %vm765_vm1, %v19167_v43 }
 0x2ef   : > { %16913 = vmatprep.mubr.msk.bf16.mxu0 %vm765_vm1, %v19168_v8  ;;  %v19178_v8 = vld [vmem:[%s19328_s27 + $0x3d8] sm:$0xff]  }
 0x2f1   : > { %v20183_v9 = vpop.f32.mrb[36].mxu1 }
 0x2f2   : > { %v20185_v11 = vpop.f32.mrb[37].mxu1 }
 0x2f3   : > { %v20187_v14 = vpop.f32.mrb[38].mxu1 }
 0x2f4   : > { %v20190_v17 = vpop.f32.mrb[39].mxu1 }
 0x2f6   : > { %16914 = vmatmul.mubr.msk.bf16.gmra.mrb[80].mxu0 %vm765_vm1, %v19169_v16 }
 0x2f7   : > { %16917 = vmatprep.mubr.msk.bf16.mxu0 %vm765_vm1, %v19170_v19  ;;  %v19179_v19 = vld [vmem:[%s19328_s27 + $0x3e0] sm:$0xff]  }
 0x2f9   : > { %v20195_v22 = vpop.f32.mrb[40].mxu1 }
 0x2fa   : > { %v20197_v24 = vpop.f32.mrb[41].mxu1 }
 0x2fb   : > { %v20199_v25 = vpop.f32.mrb[42].mxu1 }
 0x2fc   : > { %v20202_v1 = vpop.f32.mrb[43].mxu1 }
 0x2fd   : > { %21674 = vst [vmem:[#allocation2_spill] sm:$0xff] %v20202_v1 }
 0x2fe   : > { %16918 = vmatmul.mubr.msk.bf16.gmra.mrb[84].mxu0 %vm765_vm1, %v19171_v27 }
 0x2ff   : > { %16921 = vmatprep.mubr.msk.bf16.mxu0 %vm765_vm1, %v19172_v31 }
 0x301   : > { %v20207_v32 = vpop.f32.mrb[44].mxu1 }
 0x302   : > { %21675 = vst [vmem:[#allocation3_spill] sm:$0xff] %v20207_v32  ;;  %v20209_v5 = vpop.f32.mrb[45].mxu1 }
 0x303   : > { %21676 = vst [vmem:[#allocation4_spill] sm:$0xff] %v20209_v5  ;;  %v20211_v36 = vpop.f32.mrb[46].mxu1 }
 0x304   : > { %21677 = vst [vmem:[#allocation5_spill] sm:$0xff] %v20211_v36  ;;  %v20214_v39 = vpop.f32.mrb[47].mxu1 }
 0x305   : > { %21678 = vst [vmem:[#allocation6_spill] sm:$0xff] %v20214_v39  ;;  %v19250_v39 = vld [vmem:[%s19328_s27 + $0x1f8] sm:$0xff]  }
 0x306   : > { %16922 = vmatmul.mubr.msk.bf16.gmra.mrb[88].mxu0 %vm765_vm1, %v19173_v38 }
 0x307   : > { %16925 = vmatprep.mubr.msk.bf16.mxu0 %vm765_vm1, %v19174_v41  ;;  %v19180_v41 = vld [vmem:[%s19328_s27 + $0x3e8] sm:$0xff]  }
 0x309   : > { %v20219_v45 = vpop.f32.mrb[48].mxu1 }
 0x30a   : > { %21679 = vst [vmem:[#allocation7_spill] sm:$0xff] %v20219_v45  ;;  %v20221_v47 = vpop.f32.mrb[49].mxu1 }
 0x30b   : > { %21680 = vst [vmem:[#allocation8_spill] sm:$0xff] %v20221_v47  ;;  %v20223_v48 = vpop.f32.mrb[50].mxu1 }
 0x30c   : > { %21681 = vst [vmem:[#allocation9_spill] sm:$0xff] %v20223_v48  ;;  %v20226_v53 = vpop.f32.mrb[51].mxu1 }
 0x30d   : > { %21682 = vst [vmem:[#allocation10_spill] sm:$0xff] %v20226_v53  ;;  %v19249_v53 = vld [vmem:[%s19328_s27 + $0x1f0] sm:$0xff]  }
 0x30e   : > { %16926 = vmatmul.mubr.msk.bf16.gmra.mrb[92].mxu0 %vm765_vm1, %v19175_v50 }
 0x30f   : > { %16929 = vmatprep.mubr.msk.bf16.mxu0 %vm765_vm1, %v19176_v55  ;;  %v19181_v55 = vld [vmem:[%s19328_s27 + $0x3f0] sm:$0xff]  }
 0x311   : > { %v20231_v56 = vpop.f32.mrb[52].mxu1 }
 0x312   : > { %21683 = vst [vmem:[#allocation11_spill] sm:$0xff] %v20231_v56  ;;  %v20233_v58 = vpop.f32.mrb[53].mxu1 }
 0x313   : > { %21684 = vst [vmem:[#allocation12_spill] sm:$0xff] %v20233_v58  ;;  %v20235_v43 = vpop.f32.mrb[54].mxu1  ;;  %v19243_v58 = vld [vmem:[%s19328_s27 + $0x1c0] sm:$0xff]  }
 0x314   : > { %21685 = vst [vmem:[#allocation13_spill] sm:$0xff] %v20235_v43  ;;  %v20238_v16 = vpop.f32.mrb[55].mxu1  ;;  %v19232_v43 = vld [vmem:[%s19328_s27 + $0x168] sm:$0xff]  }
 0x315   : > { %21686 = vst [vmem:[#allocation14_spill] sm:$0xff] %v20238_v16 }
 0x316   : > { %16930 = vmatmul.mubr.msk.bf16.gmra.mrb[96].mxu0 %vm765_vm1, %v19178_v8 }
 0x317   : > { %16933 = vmatprep.mubr.msk.bf16.mxu0 %vm765_vm1, %v19179_v19 }
 0x319   : > { %v20243_v27 = vpop.f32.mrb[56].mxu1 }
 0x31a   : > { %21687 = vst [vmem:[#allocation15_spill] sm:$0xff] %v20243_v27  ;;  %v20245_v31 = vpop.f32.mrb[57].mxu1  ;;  %v19182_v27 = vld [vmem:[%s19328_s27 + $0x3f8] sm:$0xff]  }
 0x31b   : > { %21688 = vst [vmem:[#allocation16_spill] sm:$0xff] %v20245_v31  ;;  %v20247_v38 = vpop.f32.mrb[58].mxu1 }
 0x31c   : > { %21689 = vst [vmem:[#allocation17_spill] sm:$0xff] %v20247_v38  ;;  %v20250_v50 = vpop.f32.mrb[59].mxu1  ;;  %v19183_v38 = vld [vmem:[%s19328_s27 + $0x400] sm:$0xff]  }
 0x31d   : > { %21690 = vst [vmem:[#allocation18_spill] sm:$0xff] %v20250_v50 }
 0x31e   : > { %16934 = vmatmul.mubr.msk.bf16.gmra.mrb[100].mxu0 %vm765_vm1, %v19180_v41 }
 0x31f   : > { %16937 = vmatprep.mubr.msk.bf16.mxu0 %vm765_vm1, %v19181_v55 }
 0x321   : > { %v20255_v16 = vpop.f32.mrb[60].mxu1 }
 0x322   : > { %21691 = vst [vmem:[#allocation19_spill] sm:$0xff] %v20255_v16  ;;  %v20257_v8 = vpop.f32.mrb[61].mxu1  ;;  %v19184_v16 = vld [vmem:[%s19328_s27 + $0x408] sm:$0xff]  }
 0x323   : > { %21692 = vst [vmem:[#allocation20_spill] sm:$0xff] %v20257_v8  ;;  %v20259_v19 = vpop.f32.mrb[62].mxu1 }
 0x324   : > { %21693 = vst [vmem:[#allocation21_spill] sm:$0xff] %v20259_v19  ;;  %v20262_v31 = vpop.f32.mrb[63].mxu1  ;;  %v19185_v19 = vld [vmem:[%s19328_s27 + $0x410] sm:$0xff]  }
 0x325   : > { %21694 = vst [vmem:[#allocation22_spill] sm:$0xff] %v20262_v31 }
 0x326   : > { %16938 = vmatmul.mubr.msk.bf16.gmra.mrb[104].mxu0 %vm765_vm1, %v19182_v27 }
 0x327   : > { %16941 = vmatprep.mubr.msk.bf16.mxu0 %vm765_vm1, %v19183_v38 }
 0x329   : > { %v20267_v50 = vpop.f32.mrb[64].mxu1 }
 0x32a   : > { %21695 = vst [vmem:[#allocation23_spill] sm:$0xff] %v20267_v50  ;;  %v20269_v41 = vpop.f32.mrb[65].mxu1  ;;  %v19186_v50 = vld [vmem:[%s19328_s27 + $0x418] sm:$0xff]  }
 0x32b   : > { %21696 = vst [vmem:[#allocation24_spill] sm:$0xff] %v20269_v41  ;;  %v20271_v55 = vpop.f32.mrb[66].mxu1 }
 0x32c   : > { %21697 = vst [vmem:[#allocation25_spill] sm:$0xff] %v20271_v55  ;;  %v20274_v8 = vpop.f32.mrb[67].mxu1  ;;  %v19187_v55 = vld [vmem:[%s19328_s27 + $0x420] sm:$0xff]  }
 0x32d   : > { %21698 = vst [vmem:[#allocation26_spill] sm:$0xff] %v20274_v8 }
 0x32e   : > { %16942 = vmatmul.mubr.msk.bf16.gmra.mrb[108].mxu0 %vm765_vm1, %v19184_v16 }
 0x32f   : > { %16945 = vmatprep.mubr.msk.bf16.mxu0 %vm765_vm1, %v19185_v19 }
 0x331   : > { %v20279_v31 = vpop.f32.mrb[68].mxu1 }
 0x332   : > { %21699 = vst [vmem:[#allocation27_spill] sm:$0xff] %v20279_v31  ;;  %v20281_v27 = vpop.f32.mrb[69].mxu1  ;;  %v19188_v31 = vld [vmem:[%s19328_s27 + $0x428] sm:$0xff]  }
 0x333   : > { %21700 = vst [vmem:[#allocation28_spill] sm:$0xff] %v20281_v27  ;;  %v20283_v38 = vpop.f32.mrb[70].mxu1 }
 0x334   : > { %21701 = vst [vmem:[#allocation29_spill] sm:$0xff] %v20283_v38  ;;  %v20286_v41 = vpop.f32.mrb[71].mxu1  ;;  %v19189_v38 = vld [vmem:[%s19328_s27 + $0x430] sm:$0xff]  }
 0x335   : > { %21702 = vst [vmem:[#allocation30_spill] sm:$0xff] %v20286_v41 }
 0x336   : > { %16946 = vmatmul.mubr.msk.bf16.gmra.mrb[112].mxu0 %vm765_vm1, %v19186_v50 }
 0x337   : > { %16949 = vmatprep.mubr.msk.bf16.mxu0 %vm765_vm1, %v19187_v55 }
 0x339   : > { %v20291_v8 = vpop.f32.mrb[72].mxu1 }
 0x33a   : > { %21703 = vst [vmem:[#allocation31_spill] sm:$0xff] %v20291_v8  ;;  %v20293_v16 = vpop.f32.mrb[73].mxu1  ;;  %v19190_v8 = vld [vmem:[%s19328_s27 + $0x438] sm:$0xff]  }
 0x33b   : > { %21704 = vst [vmem:[#allocation32_spill] sm:$0xff] %v20293_v16  ;;  %v20295_v19 = vpop.f32.mrb[74].mxu1 }
 0x33c   : > { %21705 = vst [vmem:[#allocation33_spill] sm:$0xff] %v20295_v19  ;;  %v20298_v27 = vpop.f32.mrb[75].mxu1  ;;  %v19191_v19 = vld [vmem:[%s19328_s27 + $0x440] sm:$0xff]  }
 0x33d   : > { %21706 = vst [vmem:[#allocation34_spill] sm:$0xff] %v20298_v27 }
 0x33e   : > { %16950 = vmatmul.mubr.msk.bf16.gmra.mrb[116].mxu0 %vm765_vm1, %v19188_v31 }
 0x33f   : > { %16953 = vmatprep.mubr.msk.bf16.mxu0 %vm765_vm1, %v19189_v38 }
 0x341   : > { %v20303_v41 = vpop.f32.mrb[76].mxu1 }
 0x342   : > { %21707 = vst [vmem:[#allocation35_spill] sm:$0xff] %v20303_v41  ;;  %v20305_v50 = vpop.f32.mrb[77].mxu1  ;;  %v19192_v41 = vld [vmem:[%s19328_s27 + $0x448] sm:$0xff]  }
 0x343   : > { %21708 = vst [vmem:[#allocation36_spill] sm:$0xff] %v20305_v50  ;;  %v20307_v55 = vpop.f32.mrb[78].mxu1 }
 0x344   : > { %21709 = vst [vmem:[#allocation37_spill] sm:$0xff] %v20307_v55  ;;  %v20310_v16 = vpop.f32.mrb[79].mxu1  ;;  %v19193_v55 = vld [vmem:[%s19328_s27 + $0x30] sm:$0xff]  }
 0x345   : > { %21710 = vst [vmem:[#allocation38_spill] sm:$0xff] %v20310_v16 }
 0x346   : > { %16954 = vmatmul.mubr.msk.bf16.gmra.mrb[120].mxu0 %vm765_vm1, %v19190_v8 }
 0x347   : > { %16957 = vmatprep.mubr.msk.bf16.mxu0 %vm765_vm1, %v19191_v19 }
 0x349   : > { %v20315_v27 = vpop.f32.mrb[80].mxu1 }
 0x34a   : > { %21711 = vst [vmem:[#allocation39_spill] sm:$0xff] %v20315_v27  ;;  %v20317_v31 = vpop.f32.mrb[81].mxu1  ;;  %v19194_v27 = vld [vmem:[%s19328_s27 + $0x38] sm:$0xff]  }
 0x34b   : > { %21712 = vst [vmem:[#allocation40_spill] sm:$0xff] %v20317_v31  ;;  %v20319_v38 = vpop.f32.mrb[82].mxu1 }
 0x34c   : > { %21713 = vst [vmem:[#allocation41_spill] sm:$0xff] %v20319_v38  ;;  %v20322_v50 = vpop.f32.mrb[83].mxu1  ;;  %v19195_v38 = vld [vmem:[%s19328_s27 + $0x40] sm:$0xff]  }
 0x34d   : > { %21714 = vst [vmem:[#allocation42_spill] sm:$0xff] %v20322_v50 }
 0x34e   : > { %16958 = vmatmul.mubr.msk.bf16.gmra.mrb[124].mxu0 %vm765_vm1, %v19192_v41 }
 0x34f   : > { %16965 = vmatprep.mubr.msk.bf16.mxu0 %vm765_vm1, %v19193_v55 }
 0x351   : > { %v20327_v16 = vpop.f32.mrb[84].mxu1 }
 0x352   : > { %21715 = vst [vmem:[#allocation43_spill] sm:$0xff] %v20327_v16  ;;  %v20329_v8 = vpop.f32.mrb[85].mxu1  ;;  %v19196_v16 = vld [vmem:[%s19328_s27 + $0x48] sm:$0xff]  }
 0x353   : > { %21716 = vst [vmem:[#allocation44_spill] sm:$0xff] %v20329_v8  ;;  %v20331_v19 = vpop.f32.mrb[86].mxu1 }
 0x354   : > { %21717 = vst [vmem:[#allocation45_spill] sm:$0xff] %v20331_v19  ;;  %v20334_v31 = vpop.f32.mrb[87].mxu1  ;;  %v19197_v19 = vld [vmem:[%s19328_s27 + $0x50] sm:$0xff]  }
 0x355   : > { %21718 = vst [vmem:[#allocation46_spill] sm:$0xff] %v20334_v31 }
 0x356   : > { %16966 = vmatmul.mubr.msk.bf16.vlgmr.msra.gmra.mrb[0].mxu0 %vm765_vm1, %v19194_v27 }
 0x357   : > { %16969 = vmatprep.mubr.msk.bf16.mxu0 %vm765_vm1, %v19195_v38 }
 0x359   : > { %v20339_v50 = vpop.f32.mrb[88].mxu1 }
 0x35a   : > { %21719 = vst [vmem:[#allocation47_spill] sm:$0xff] %v20339_v50  ;;  %v20341_v41 = vpop.f32.mrb[89].mxu1  ;;  %v19198_v50 = vld [vmem:[%s19328_s27 + $0x58] sm:$0xff]  }
 0x35b   : > { %21720 = vst [vmem:[#allocation48_spill] sm:$0xff] %v20341_v41  ;;  %v20343_v55 = vpop.f32.mrb[90].mxu1 }
 0x35c   : > { %21721 = vst [vmem:[#allocation49_spill] sm:$0xff] %v20343_v55  ;;  %v20346_v8 = vpop.f32.mrb[91].mxu1  ;;  %v19199_v55 = vld [vmem:[%s19328_s27 + $0x60] sm:$0xff]  }
 0x35d   : > { %21722 = vst [vmem:[#allocation50_spill] sm:$0xff] %v20346_v8 }
 0x35e   : > { %16970 = vmatmul.mubr.msk.bf16.gmra.mrb[4].mxu0 %vm765_vm1, %v19196_v16 }
 0x35f   : > { %16973 = vmatprep.mubr.msk.bf16.mxu0 %vm765_vm1, %v19197_v19 }
 0x361   : > { %v20351_v31 = vpop.f32.mrb[92].mxu1 }
 0x362   : > { %21723 = vst [vmem:[#allocation51_spill] sm:$0xff] %v20351_v31  ;;  %v20353_v27 = vpop.f32.mrb[93].mxu1  ;;  %v19200_v31 = vld [vmem:[%s19328_s27 + $0x68] sm:$0xff]  }
 0x363   : > { %21724 = vst [vmem:[#allocation52_spill] sm:$0xff] %v20353_v27  ;;  %v20355_v38 = vpop.f32.mrb[94].mxu1 }
 0x364   : > { %21725 = vst [vmem:[#allocation53_spill] sm:$0xff] %v20355_v38  ;;  %v20358_v41 = vpop.f32.mrb[95].mxu1  ;;  %v19201_v38 = vld [vmem:[%s19328_s27 + $0x70] sm:$0xff]  }
 0x365   : > { %21726 = vst [vmem:[#allocation54_spill] sm:$0xff] %v20358_v41 }
 0x366   : > { %16974 = vmatmul.mubr.msk.bf16.gmra.mrb[8].mxu0 %vm765_vm1, %v19198_v50 }
 0x367   : > { %16977 = vmatprep.mubr.msk.bf16.mxu0 %vm765_vm1, %v19199_v55 }
 0x369   : > { %v20363_v8 = vpop.f32.mrb[96].mxu1 }
 0x36a   : > { %21727 = vst [vmem:[#allocation55_spill] sm:$0xff] %v20363_v8  ;;  %v20365_v16 = vpop.f32.mrb[97].mxu1  ;;  %v19202_v8 = vld [vmem:[%s19328_s27 + $0x78] sm:$0xff]  }
 0x36b   : > { %21728 = vst [vmem:[#allocation56_spill] sm:$0xff] %v20365_v16  ;;  %v20367_v19 = vpop.f32.mrb[98].mxu1 }
 0x36c   : > { %21729 = vst [vmem:[#allocation57_spill] sm:$0xff] %v20367_v19  ;;  %v20370_v27 = vpop.f32.mrb[99].mxu1  ;;  %v19203_v19 = vld [vmem:[%s19328_s27 + $0x80] sm:$0xff]  }
 0x36d   : > { %21730 = vst [vmem:[#allocation58_spill] sm:$0xff] %v20370_v27 }
 0x36e   : > { %16978 = vmatmul.mubr.msk.bf16.gmra.mrb[12].mxu0 %vm765_vm1, %v19200_v31 }
 0x36f   : > { %16981 = vmatprep.mubr.msk.bf16.mxu0 %vm765_vm1, %v19201_v38 }
 0x371   : > { %v20375_v41 = vpop.f32.mrb[100].mxu1 }
 0x372   : > { %21731 = vst [vmem:[#allocation59_spill] sm:$0xff] %v20375_v41  ;;  %v20377_v50 = vpop.f32.mrb[101].mxu1  ;;  %v19204_v41 = vld [vmem:[%s19328_s27 + $0x88] sm:$0xff]  }
 0x373   : > { %21732 = vst [vmem:[#allocation60_spill] sm:$0xff] %v20377_v50  ;;  %v20379_v55 = vpop.f32.mrb[102].mxu1 }
 0x374   : > { %21733 = vst [vmem:[#allocation61_spill] sm:$0xff] %v20379_v55  ;;  %v20382_v16 = vpop.f32.mrb[103].mxu1  ;;  %v19205_v55 = vld [vmem:[%s19328_s27 + $0x90] sm:$0xff]  }
 0x375   : > { %21734 = vst [vmem:[#allocation62_spill] sm:$0xff] %v20382_v16 }
 0x376   : > { %16982 = vmatmul.mubr.msk.bf16.gmra.mrb[16].mxu0 %vm765_vm1, %v19202_v8 }
 0x377   : > { %16985 = vmatprep.mubr.msk.bf16.mxu0 %vm765_vm1, %v19203_v19 }
 0x379   : > { %v20387_v27 = vpop.f32.mrb[104].mxu1 }
 0x37a   : > { %21735 = vst [vmem:[#allocation63_spill] sm:$0xff] %v20387_v27  ;;  %v20389_v31 = vpop.f32.mrb[105].mxu1  ;;  %v19206_v27 = vld [vmem:[%s19328_s27 + $0x98] sm:$0xff]  }
 0x37b   : > { %21736 = vst [vmem:[#allocation64_spill] sm:$0xff] %v20389_v31  ;;  %v20391_v38 = vpop.f32.mrb[106].mxu1 }
 0x37c   : > { %21737 = vst [vmem:[#allocation65_spill] sm:$0xff] %v20391_v38  ;;  %v20394_v50 = vpop.f32.mrb[107].mxu1  ;;  %v19207_v38 = vld [vmem:[%s19328_s27 + $0xa0] sm:$0xff]  }
 0x37d   : > { %21738 = vst [vmem:[#allocation66_spill] sm:$0xff] %v20394_v50 }
 0x37e   : > { %16986 = vmatmul.mubr.msk.bf16.gmra.mrb[20].mxu0 %vm765_vm1, %v19204_v41 }
 0x37f   : > { %16989 = vmatprep.mubr.msk.bf16.mxu0 %vm765_vm1, %v19205_v55 }
 0x381   : > { %v20399_v16 = vpop.f32.mrb[108].mxu1 }
 0x382   : > { %21739 = vst [vmem:[#allocation67_spill] sm:$0xff] %v20399_v16  ;;  %v20401_v8 = vpop.f32.mrb[109].mxu1  ;;  %v19208_v16 = vld [vmem:[%s19328_s27 + $0xa8] sm:$0xff]  }
 0x383   : > { %21740 = vst [vmem:[#allocation68_spill] sm:$0xff] %v20401_v8  ;;  %v20403_v19 = vpop.f32.mrb[110].mxu1 }
 0x384   : > { %21741 = vst [vmem:[#allocation69_spill] sm:$0xff] %v20403_v19  ;;  %v20406_v31 = vpop.f32.mrb[111].mxu1  ;;  %v19209_v19 = vld [vmem:[%s19328_s27 + $0xb0] sm:$0xff]  }
 0x385   : > { %21742 = vst [vmem:[#allocation70_spill] sm:$0xff] %v20406_v31 }
 0x386   : > { %16990 = vmatmul.mubr.msk.bf16.gmra.mrb[24].mxu0 %vm765_vm1, %v19206_v27 }
 0x387   : > { %16993 = vmatprep.mubr.msk.bf16.mxu0 %vm765_vm1, %v19207_v38 }
 0x389   : > { %v20411_v50 = vpop.f32.mrb[112].mxu1 }
 0x38a   : > { %21743 = vst [vmem:[#allocation71_spill] sm:$0xff] %v20411_v50  ;;  %v20413_v41 = vpop.f32.mrb[113].mxu1  ;;  %v19210_v50 = vld [vmem:[%s19328_s27 + $0xb8] sm:$0xff]  }
 0x38b   : > { %21744 = vst [vmem:[#allocation72_spill] sm:$0xff] %v20413_v41  ;;  %v20415_v55 = vpop.f32.mrb[114].mxu1 }
 0x38c   : > { %21745 = vst [vmem:[#allocation73_spill] sm:$0xff] %v20415_v55  ;;  %v20418_v8 = vpop.f32.mrb[115].mxu1  ;;  %v19211_v55 = vld [vmem:[%s19328_s27 + $0xc0] sm:$0xff]  }
 0x38d   : > { %21746 = vst [vmem:[#allocation74_spill] sm:$0xff] %v20418_v8 }
 0x38e   : > { %16994 = vmatmul.mubr.msk.bf16.gmra.mrb[28].mxu0 %vm765_vm1, %v19208_v16 }
 0x38f   : > { %16997 = vmatprep.mubr.msk.bf16.mxu0 %vm765_vm1, %v19209_v19 }
 0x391   : > { %v20423_v31 = vpop.f32.mrb[116].mxu1 }
 0x392   : > { %21747 = vst [vmem:[#allocation75_spill] sm:$0xff] %v20423_v31  ;;  %v20425_v27 = vpop.f32.mrb[117].mxu1  ;;  %v19213_v31 = vld [vmem:[%s19328_s27 + $0xd0] sm:$0xff]  }
 0x393   : > { %21748 = vst [vmem:[#allocation76_spill] sm:$0xff] %v20425_v27  ;;  %v20427_v38 = vpop.f32.mrb[118].mxu1  ;;  %v19212_v27 = vld [vmem:[%s19328_s27 + $0xc8] sm:$0xff]  }
 0x394   : > { %21749 = vst [vmem:[#allocation77_spill] sm:$0xff] %v20427_v38  ;;  %v20430_v41 = vpop.f32.mrb[119].mxu1 }
 0x395   : > { %21750 = vst [vmem:[#allocation78_spill] sm:$0xff] %v20430_v41  ;;  %v9617_v41 = vlaneseq }
 0x396   : > { %16998 = vmatmul.mubr.msk.bf16.gmra.mrb[32].mxu0 %vm765_vm1, %v19210_v50 }
 0x397   : > { %17001 = vmatprep.mubr.msk.bf16.mxu0 %vm765_vm1, %v19211_v55 }
 0x399   : > { %v20435_v8 = vpop.f32.mrb[120].mxu1 }
 0x39a   : > { %21751 = vst [vmem:[#allocation79_spill] sm:$0xff] %v20435_v8  ;;  %v20437_v16 = vpop.f32.mrb[121].mxu1  ;;  %v19214_v8 = vld [vmem:[%s19328_s27 + $0xd8] sm:$0xff]  }
 0x39b   : > { %21752 = vst [vmem:[#allocation80_spill] sm:$0xff] %v20437_v16  ;;  %v20439_v19 = vpop.f32.mrb[122].mxu1 }
 0x39c   : > { %21753 = vst [vmem:[#allocation81_spill] sm:$0xff] %v20439_v19  ;;  %v20442_v38 = vpop.f32.mrb[123].mxu1 }
 0x39d   : > { %21754 = vst [vmem:[#allocation82_spill] sm:$0xff] %v20442_v38  ;;  %v19215_v38 = vld [vmem:[%s19328_s27 + $0xe0] sm:$0xff]  }
 0x39e   : > { %17002 = vmatmul.mubr.msk.bf16.gmra.mrb[36].mxu0 %vm765_vm1, %v19212_v27  ;;  %v19216_v27 = vld [vmem:[%s19328_s27 + $0xe8] sm:$0xff]  }
 0x39f   : > { %17005 = vmatprep.mubr.msk.bf16.mxu0 %vm765_vm1, %v19213_v31  ;;  %v19217_v31 = vld [vmem:[%s19328_s27 + $0xf0] sm:$0xff]  }
 0x3a1   : > { %v20447_v50 = vpop.f32.mrb[124].mxu1 }
 0x3a2   : > { %21755 = vst [vmem:[#allocation83_spill] sm:$0xff] %v20447_v50  ;;  %v20449_v55 = vpop.f32.mrb[125].mxu1  ;;  %v19221_v50 = vld [vmem:[%s19328_s27 + $0x110] sm:$0xff]  }
 0x3a3   : > { %21756 = vst [vmem:[#allocation84_spill] sm:$0xff] %v20449_v55  ;;  %v20451_v16 = vpop.f32.mrb[126].mxu1  ;;  %v19218_v55 = vld [vmem:[%s19328_s27 + $0xf8] sm:$0xff]  }
 0x3a4   : > { %21757 = vst [vmem:[#allocation85_spill] sm:$0xff] %v20451_v16  ;;  %v20454_v19 = vpop.f32.mrb[127].mxu1  ;;  %v19219_v16 = vld [vmem:[%s19328_s27 + $0x100] sm:$0xff]  }
 0x3a5   : > { %21758 = vst [vmem:[#allocation86_spill] sm:$0xff] %v20454_v19  ;;  %v19220_v19 = vld [vmem:[%s19328_s27 + $0x108] sm:$0xff]  }
 0x3a6   : > { %17006 = vmatmul.mubr.msk.bf16.gmra.mrb[40].mxu0 %vm765_vm1, %v19214_v8  ;;  %v19222_v8 = vld [vmem:[%s19328_s27 + $0x118] sm:$0xff]  }
 0x3a7   : > { %17009 = vmatprep.mubr.msk.bf16.mxu0 %vm765_vm1, %v19215_v38  ;;  %v19223_v38 = vld [vmem:[%s19328_s27 + $0x120] sm:$0xff]  }
 0x3ae   : > { %17010 = vmatmul.mubr.msk.bf16.gmra.mrb[44].mxu0 %vm765_vm1, %v19216_v27  ;;  %v20474_v27 = vshrl.u32 %v9617_v41, 7 }
 0x3af   : > { %17013 = vmatprep.mubr.msk.bf16.mxu0 %vm765_vm1, %v19217_v31  ;;  %v20482_v31 = vand.u32 127, %v9617_v41  ;;  %v19226_v41 = vld [vmem:[%s19328_s27 + $0x138] sm:$0xff]  }
 0x3b6   : > { %17014 = vmatmul.mubr.msk.bf16.gmra.mrb[48].mxu0 %vm765_vm1, %v19218_v55  ;;  %v20478_v55 = vmul.u32 2, %v20474_v27 }
 0x3b7   : > { %17017 = vmatprep.mubr.msk.bf16.mxu0 %vm765_vm1, %v19219_v16  ;;  %v19224_v16 = vld [vmem:[%s19328_s27 + $0x128] sm:$0xff]  }
 0x3b8   : > { %21759 = vst [vmem:[#allocation87_spill] sm:$0xff] %v20478_v55 }
 0x3be   : > { %17018 = vmatmul.mubr.msk.bf16.gmra.mrb[52].mxu0 %vm765_vm1, %v19220_v19  ;;  %v19225_v19 = vld [vmem:[%s19328_s27 + $0x130] sm:$0xff]  }
 0x3bf   : > { %17021 = vmatprep.mubr.msk.bf16.mxu0 %vm765_vm1, %v19221_v50  ;;  %v9624_v50 = vadd.s32 4294967295, %v20478_v55  ;;  %v19227_v55 = vld [vmem:[%s19328_s27 + $0x140] sm:$0xff]  }
 0x3c1   : > { %vm9626_vm2 = vcmp.eq.s32.totalorder %v20482_v31, %v9624_v50  ;;  %v19229_v50 = vld [vmem:[%s19328_s27 + $0x150] sm:$0xff]  }
 0x3c6   : > { %17022 = vmatmul.mubr.msk.bf16.gmra.mrb[56].mxu0 %vm765_vm1, %v19222_v8  ;;  %v21662_v8 = vmov 0.0  }
 0x3c7   : > { %17025 = vmatprep.mubr.msk.bf16.mxu0 %vm765_vm1, %v19223_v38  ;;  %v20488_v38 = vsel %vm9626_vm2, 1.0, %v21662_v8  ;;  %v19231_v8 = vld [vmem:[%s19328_s27 + $0x160] sm:$0xff]  }
 0x3c8   : > { %17101 = vmatprep.mubr.msk.f32.mxu1 %vm9632_vm3, %v20488_v38 }
 0x3ce   : > { %17026 = vmatmul.mubr.msk.bf16.gmra.mrb[60].mxu0 %vm765_vm1, %v19224_v16  ;;  %v19228_v16 = vld [vmem:[%s19328_s27 + $0x148] sm:$0xff]  }
 0x3cf   : > { %17029 = vmatprep.mubr.msk.bf16.mxu0 %vm765_vm1, %v19225_v19  ;;  %v19230_v19 = vld [vmem:[%s19328_s27 + $0x158] sm:$0xff]  }
 0x3d6   : > { %17030 = vmatmul.mubr.msk.bf16.gmra.mrb[64].mxu0 %vm765_vm1, %v19226_v41  ;;  %v19233_v41 = vld [vmem:[%s19328_s27 + $0x170] sm:$0xff]  }
 0x3d7   : > { %17033 = vmatprep.mubr.msk.bf16.mxu0 %vm765_vm1, %v19227_v55  ;;  %v19234_v55 = vld [vmem:[%s19328_s27 + $0x178] sm:$0xff]  }
 0x3de   : > { %17034 = vmatmul.mubr.msk.bf16.gmra.mrb[68].mxu0 %vm765_vm1, %v19228_v16  ;;  %v19235_v16 = vld [vmem:[%s19328_s27 + $0x180] sm:$0xff]  }
 0x3df   : > { %17037 = vmatprep.mubr.msk.bf16.mxu0 %vm765_vm1, %v19229_v50  ;;  %v19236_v50 = vld [vmem:[%s19328_s27 + $0x188] sm:$0xff]  }
 0x3e6   : > { %17038 = vmatmul.mubr.msk.bf16.gmra.mrb[72].mxu0 %vm765_vm1, %v19230_v19  ;;  %v19237_v19 = vld [vmem:[%s19328_s27 + $0x190] sm:$0xff]  }
 0x3e7   : > { %17041 = vmatprep.mubr.msk.bf16.mxu0 %vm765_vm1, %v19231_v8  ;;  %v19238_v8 = vld [vmem:[%s19328_s27 + $0x198] sm:$0xff]  }
 0x3ee   : > { %17042 = vmatmul.mubr.msk.bf16.gmra.mrb[76].mxu0 %vm765_vm1, %v19232_v43  ;;  %v19239_v43 = vld [vmem:[%s19328_s27 + $0x1a0] sm:$0xff]  }
 0x3ef   : > { %17045 = vmatprep.mubr.msk.bf16.mxu0 %vm765_vm1, %v19233_v41  ;;  %v19240_v41 = vld [vmem:[%s19328_s27 + $0x1a8] sm:$0xff]  }
 0x3f6   : > { %17046 = vmatmul.mubr.msk.bf16.gmra.mrb[80].mxu0 %vm765_vm1, %v19234_v55  ;;  %v19241_v55 = vld [vmem:[%s19328_s27 + $0x1b0] sm:$0xff]  }
 0x3f7   : > { %17049 = vmatprep.mubr.msk.bf16.mxu0 %vm765_vm1, %v19235_v16  ;;  %v19242_v16 = vld [vmem:[%s19328_s27 + $0x1b8] sm:$0xff]  }
 0x3fe   : > { %17050 = vmatmul.mubr.msk.bf16.gmra.mrb[84].mxu0 %vm765_vm1, %v19236_v50  ;;  %v19244_v50 = vld [vmem:[%s19328_s27 + $0x1c8] sm:$0xff]  }
 0x3ff   : > { %17053 = vmatprep.mubr.msk.bf16.mxu0 %vm765_vm1, %v19237_v19  ;;  %v19245_v19 = vld [vmem:[%s19328_s27 + $0x1d0] sm:$0xff]  }
 0x406   : > { %17054 = vmatmul.mubr.msk.bf16.gmra.mrb[88].mxu0 %vm765_vm1, %v19238_v8  ;;  %v19246_v8 = vld [vmem:[%s19328_s27 + $0x1d8] sm:$0xff]  }
 0x407   : > { %17057 = vmatprep.mubr.msk.bf16.mxu0 %vm765_vm1, %v19239_v43  ;;  %v19247_v43 = vld [vmem:[%s19328_s27 + $0x1e0] sm:$0xff]  }
 0x40e   : > { %17058 = vmatmul.mubr.msk.bf16.gmra.mrb[92].mxu0 %vm765_vm1, %v19240_v41 }
 0x40f   : > { %17061 = vmatprep.mubr.msk.bf16.mxu0 %vm765_vm1, %v19241_v55 }
 0x416   : > { %17062 = vmatmul.mubr.msk.bf16.gmra.mrb[96].mxu0 %vm765_vm1, %v19242_v16  ;;  %v19248_v16 = vld [vmem:[%s19328_s27 + $0x1e8] sm:$0xff]  }
 0x417   : > { %17065 = vmatprep.mubr.msk.bf16.mxu0 %vm765_vm1, %v19243_v58  ;;  %v20542_v58 = vld [vmem:[%s21658_s2] ss:$0 sm:$0xff] }
 0x41e   : > { %17066 = vmatmul.mubr.msk.bf16.gmra.mrb[100].mxu0 %vm765_vm1, %v19244_v50 }
 0x41f   : > { %17069 = vmatprep.mubr.msk.bf16.mxu0 %vm765_vm1, %v19245_v19 }
 0x426   : > { %17070 = vmatmul.mubr.msk.bf16.gmra.mrb[104].mxu0 %vm765_vm1, %v19246_v8 }
 0x427   : > { %17073 = vmatprep.mubr.msk.bf16.mxu0 %vm765_vm1, %v19247_v43 }
 0x429   : > { %v16967_v41 = vpop.f32.mrb[0].mxu0 }
 0x42a   : > { %v18009_v55 = vadd.f32 %v16967_v41, %v19853_v4  ;;  %v8587_v56 = vpop.f32.mrb[1].mxu0 }
 0x42b   : > { %v18010_v50 = vadd.f32 %v8587_v56, %v19856_v7  ;;  %v16968_v19 = vpop.f32.mrb[2].mxu0 }
 0x42c   : > { %v18011_v48 = vadd.f32 %v16968_v19, %v19860_v10  ;;  %v8590_v8 = vpop.f32.mrb[3].mxu0  ;;  %v9235_v4 = vadd.f32 %v18009_v55, %v20542_v58 }
 0x42d   : > { %v18012_v43 = vadd.f32 %v8590_v8, %v19863_v12  ;;  %v9233_v41 = vadd.f32 %v18010_v50, %v20542_v58  ;;  %v19251_v8 = vld [vmem:[%s19328_s27 + $0x200] sm:$0xff]  }
 0x42e   : > { %17074 = vmatmul.mubr.msk.bf16.gmra.mrb[108].mxu0 %vm765_vm1, %v19248_v16  ;;  %v9236_v47 = vadd.f32 %v18011_v48, %v20542_v58  ;;  %v9363_v45 = vmax.f32 %v9235_v4, 0.0 }
 0x42f   : > { %17077 = vmatprep.mubr.msk.bf16.mxu0 %vm765_vm1, %v19249_v53  ;;  %v9234_v7 = vadd.f32 %v18012_v43, %v20542_v58  ;;  %v9361_v36 = vmax.f32 %v9233_v41, 0.0 }
 0x430   : > { %v9364_v16 = vmax.f32 %v9236_v47, 0.0 }
 0x431   : > { %v16971_v56 = vpop.f32.mrb[4].mxu0  ;;  %v9362_v48 = vmax.f32 %v9234_v7, 0.0 }
 0x432   : > { %v18013_v10 = vadd.f32 %v16971_v56, %v19869_v13  ;;  %v8603_v19 = vpop.f32.mrb[5].mxu0  ;;  %v9619_v13 = vadd.s32 8, %v20474_v27  ;;  %v9491_v56 = vmax.f32 %v9363_v45, 0.0 }
 0x433   : > { %v18014_v12 = vadd.f32 %v8603_v19, %v19872_v15  ;;  %v16972_v55 = vpop.f32.mrb[6].mxu0  ;;  %v9489_v15 = vmax.f32 %v9361_v36, 0.0  ;;  %v19252_v36 = vld [vmem:[%s19328_s27 + $0x208] sm:$0xff]  }
 0x434   : > { %v9239_v50 = vadd.f32 %v18013_v10, %v20542_v58  ;;  %v18015_v53 = vadd.f32 %v16972_v55, %v19876_v18  ;;  %v8606_v5 = vpop.f32.mrb[7].mxu0  ;;  %v9492_v18 = vmax.f32 %v9364_v16, 0.0 }
 0x435   : > { %v9237_v43 = vadd.f32 %v18014_v12, %v20542_v58  ;;  %v18016_v4 = vadd.f32 %v8606_v5, %v19879_v20  ;;  %v9490_v20 = vmax.f32 %v9362_v48, 0.0  ;;  %v20567_v12 = vmul.u32 2, %v9619_v13 }
 0x436   : > { %v9367_v32 = vmax.f32 %v9239_v50, 0.0  ;;  %v9240_v41 = vadd.f32 %v18015_v53, %v20542_v58  ;;  %17078 = vmatmul.mubr.msk.bf16.gmra.mrb[112].mxu0 %vm765_vm1, %v19250_v39 }
 0x437   : > { %v9365_v47 = vmax.f32 %v9237_v43, 0.0  ;;  %v9238_v10 = vadd.f32 %v18016_v4, %v20542_v58  ;;  %17081 = vmatprep.mubr.msk.bf16.mxu0 %vm765_vm1, %v19251_v8  ;;  %v19253_v8 = vld [vmem:[%s19328_s27 + $0x210] sm:$0xff]   ;;  %vm10840_vm6 = vcmp.eq.s32.totalorder %v20482_v31, %v20567_v12 }
 0x438   : > { %v9555_v7 = vmax.f32 %v9491_v56, %v9367_v32  ;;  %v9368_v19 = vmax.f32 %v9240_v41, 0.0 }
 0x439   : > { %v9553_v5 = vmax.f32 %v9489_v15, %v9365_v47  ;;  %v9366_v27 = vmax.f32 %v9238_v10, 0.0  ;;  %v16975_v45 = vpop.f32.mrb[8].mxu0  ;;  %v9625_v15 = vadd.s32 4294967295, %v20567_v12 }
 0x43a   : > { %v9556_v55 = vmax.f32 %v9492_v18, %v9368_v19  ;;  %v18017_v39 = vadd.f32 %v16975_v45, %v19885_v21  ;;  %v8619_v50 = vpop.f32.mrb[9].mxu0 }
 0x43b   : > { %v9554_v53 = vmax.f32 %v9490_v20, %v9366_v27  ;;  %v18018_v43 = vadd.f32 %v8619_v50, %v19888_v23  ;;  %v16976_v4 = vpop.f32.mrb[10].mxu0  ;;  %vm9627_vm4 = vcmp.eq.s32.totalorder %v20482_v31, %v9625_v15 }
 0x43c   : > { %v20573_v1 = vpack.c.bf16 %v9556_v55, %v9555_v7  ;;  %v9243_v16 = vadd.f32 %v18017_v39, %v20542_v58  ;;  %v18019_v48 = vadd.f32 %v16976_v4, %v19892_v26  ;;  %v8622_v56 = vpop.f32.mrb[11].mxu0 }
 0x43d   : > { %v20577_v41 = vpack.c.bf16 %v9554_v53, %v9553_v5  ;;  %v9241_v13 = vadd.f32 %v18018_v43, %v20542_v58  ;;  %v18020_v21 = vadd.f32 %v8622_v56, %v19895_v28 }
 0x43e   : > { %v9371_v10 = vmax.f32 %v9243_v16, 0.0  ;;  %v9244_v23 = vadd.f32 %v18019_v48, %v20542_v58  ;;  %17082 = vmatmul.mubr.msk.bf16.gmra.mrb[116].mxu0 %vm765_vm1, %v19252_v36  ;;  %v19254_v36 = vld [vmem:[%s19328_s27 + $0x218] sm:$0xff]   ;;  %v21760_v48 = vmov 0.0  }
 0x43f   : > { %v9369_v18 = vmax.f32 %v9241_v13, 0.0  ;;  %v9242_v7 = vadd.f32 %v18020_v21, %v20542_v58  ;;  %17622 = vmatprep.subr.bf16.mxu1 %v20577_v41  ;;  %17085 = vmatprep.mubr.msk.bf16.mxu0 %vm765_vm1, %v19253_v8  ;;  %v20598_v56 = vsel %vm9627_vm4, 1.0, %v21760_v48 }
 0x440   : > { %v9495_v26 = vmax.f32 %v9367_v32, %v9371_v10  ;;  %v9372_v20 = vmax.f32 %v9244_v23, 0.0  ;;  %17624 = vmatpush3.bf16.msra.mxu1 %v20577_v41  ;;  %v19255_v32 = vld [vmem:[%s19328_s27 + $0x220] sm:$0xff]  }
 0x441   : > { %v9493_v28 = vmax.f32 %v9365_v47, %v9369_v18  ;;  %v9370_v5 = vmax.f32 %v9242_v7, 0.0  ;;  %v16979_v45 = vpop.f32.mrb[12].mxu0  ;;  %17626 = vmatprep.subr.bf16.mxu1 %v20573_v1 }
 0x442   : > { %v9496_v55 = vmax.f32 %v9368_v19, %v9372_v20  ;;  %v18021_v39 = vadd.f32 %v16979_v45, %v19901_v29  ;;  %v8635_v50 = vpop.f32.mrb[13].mxu0 }
 0x443   : > { %v9494_v53 = vmax.f32 %v9366_v27, %v9370_v5  ;;  %v18022_v43 = vadd.f32 %v8635_v50, %v19904_v30  ;;  %v16980_v4 = vpop.f32.mrb[14].mxu0  ;;  %v19256_v5 = vld [vmem:[%s19328_s27 + $0x228] sm:$0xff]  }
 0x444   : > { %v9247_v8 = vadd.f32 %v18021_v39, %v20542_v58  ;;  %v18023_v47 = vadd.f32 %v16980_v4, %v19908_v33  ;;  %v8638_v16 = vpop.f32.mrb[15].mxu0  ;;  %17628 = vmatpush3.bf16.msra.mxu1 %v20573_v1 }
 0x445   : > { %v9245_v19 = vadd.f32 %v18022_v43, %v20542_v58  ;;  %v18024_v29 = vadd.f32 %v8638_v16, %v19911_v34 }
 0x446   : > { %v9375_v13 = vmax.f32 %v9247_v8, 0.0  ;;  %v9248_v30 = vadd.f32 %v18023_v47, %v20542_v58  ;;  %17086 = vmatmul.mubr.msk.bf16.gmra.mrb[120].mxu0 %vm765_vm1, %v19254_v36 }
 0x447   : > { %v9373_v27 = vmax.f32 %v9245_v19, 0.0  ;;  %v9246_v21 = vadd.f32 %v18024_v29, %v20542_v58  ;;  %17089 = vmatprep.mubr.msk.bf16.mxu0 %vm765_vm1, %v19255_v32  ;;  %17102 = vmatmul.mubr.msk.f32.vlgmr.msra.gmra.mrb[128].mxu1 %vm9632_vm3, %v20598_v56 }
 0x448   : > { %v9559_v33 = vmax.f32 %v9495_v26, %v9375_v13  ;;  %v9376_v15 = vmax.f32 %v9248_v30, 0.0  ;;  %17112 = vmatprep.mubr.msk.f32.mxu1 %vm9632_vm3, %v20488_v38 }
 0x449   : > { %v9557_v34 = vmax.f32 %v9493_v28, %v9373_v27  ;;  %v9374_v10 = vmax.f32 %v9246_v21, 0.0  ;;  %v16983_v23 = vpop.f32.mrb[16].mxu0 }
 0x44a   : > { %v9560_v18 = vmax.f32 %v9496_v55, %v9376_v15  ;;  %v18025_v7 = vadd.f32 %v16983_v23, %v19917_v35  ;;  %v8651_v20 = vpop.f32.mrb[17].mxu0 }
 0x44b   : > { %v9558_v45 = vmax.f32 %v9494_v53, %v9374_v10  ;;  %v18026_v39 = vadd.f32 %v8651_v20, %v19920_v37  ;;  %v16984_v50 = vpop.f32.mrb[18].mxu0 }
 0x44c   : > { %v20613_v36 = vpack.c.bf16 %v9560_v18, %v9559_v33  ;;  %v9251_v26 = vadd.f32 %v18025_v7, %v20542_v58  ;;  %v18027_v43 = vadd.f32 %v16984_v50, %v19924_v40  ;;  %v8654_v4 = vpop.f32.mrb[19].mxu0 }
 0x44d   : > { %v20617_v32 = vpack.c.bf16 %v9558_v45, %v9557_v34  ;;  %v9249_v28 = vadd.f32 %v18026_v39, %v20542_v58  ;;  %v18028_v55 = vadd.f32 %v8654_v4, %v19927_v42 }
 0x44e   : > { %v9379_v35 = vmax.f32 %v9251_v26, 0.0  ;;  %v9252_v8 = vadd.f32 %v18027_v43, %v20542_v58  ;;  %17090 = vmatmul.mubr.msk.bf16.gmra.mrb[124].mxu0 %vm765_vm1, %v19256_v5 }
 0x44f   : > { %v9377_v37 = vmax.f32 %v9249_v28, 0.0  ;;  %v9250_v53 = vadd.f32 %v18028_v55, %v20542_v58  ;;  %17630 = vmatprep.subr.bf16.mxu1 %v20617_v32 }
 0x450   : > { %v9499_v47 = vmax.f32 %v9375_v13, %v9379_v35  ;;  %v9380_v16 = vmax.f32 %v9252_v8, 0.0  ;;  %17632 = vmatpush3.bf16.msra.mxu1 %v20617_v32 }
 0x451   : > { %v9497_v40 = vmax.f32 %v9373_v27, %v9377_v37  ;;  %v9378_v19 = vmax.f32 %v9250_v53, 0.0  ;;  %v16987_v29 = vpop.f32.mrb[20].mxu0  ;;  %17634 = vmatprep.subr.bf16.mxu1 %v20613_v36 }
 0x452   : > { %v9500_v42 = vmax.f32 %v9376_v15, %v9380_v16  ;;  %v18029_v30 = vadd.f32 %v16987_v29, %v19938_v44  ;;  %v8667_v21 = vpop.f32.mrb[21].mxu0 }
 0x453   : > { %v9498_v33 = vmax.f32 %v9374_v10, %v9378_v19  ;;  %v18030_v34 = vadd.f32 %v8667_v21, %v19942_v46  ;;  %v16988_v23 = vpop.f32.mrb[22].mxu0 }
 0x454   : > { %v9255_v18 = vadd.f32 %v18029_v30, %v20542_v58  ;;  %v18031_v13 = vadd.f32 %v16988_v23, %v19946_v49  ;;  %v8670_v7 = vpop.f32.mrb[23].mxu0  ;;  %17636 = vmatpush3.bf16.msra.mxu1 %v20613_v36 }
 0x455   : > { %v9253_v27 = vadd.f32 %v18030_v34, %v20542_v58  ;;  %v18032_v20 = vadd.f32 %v8670_v7, %v19949_v51 }
 0x456   : > { %v9383_v5 = vmax.f32 %v9255_v18, 0.0  ;;  %v9256_v15 = vadd.f32 %v18031_v13, %v20542_v58 }
 0x457   : > { %v9381_v44 = vmax.f32 %v9253_v27, 0.0  ;;  %v9254_v10 = vadd.f32 %v18032_v20, %v20542_v58  ;;  %17113 = vmatmul.mubr.msk.f32.vlgmr.msra.gmra.mrb[130].mxu1 %vm9632_vm3, %v20598_v56 }
 0x458   : > { %v9563_v46 = vmax.f32 %v9499_v47, %v9383_v5  ;;  %v9384_v45 = vmax.f32 %v9256_v15, 0.0  ;;  %17123 = vmatprep.mubr.msk.f32.mxu1 %vm9632_vm3, %v20488_v38 }
 0x459   : > { %v9561_v49 = vmax.f32 %v9497_v40, %v9381_v44  ;;  %v9382_v39 = vmax.f32 %v9254_v10, 0.0  ;;  %v16991_v50 = vpop.f32.mrb[24].mxu0 }
 0x45a   : > { %v9564_v26 = vmax.f32 %v9500_v42, %v9384_v45  ;;  %v18033_v51 = vadd.f32 %v16991_v50, %v19955_v52  ;;  %v8683_v43 = vpop.f32.mrb[25].mxu0 }
 0x45b   : > { %v9562_v4 = vmax.f32 %v9498_v33, %v9382_v39  ;;  %v18034_v28 = vadd.f32 %v8683_v43, %v19958_v54  ;;  %v16992_v55 = vpop.f32.mrb[26].mxu0 }
 0x45c   : > { %v20642_v35 = vpack.c.bf16 %v9564_v26, %v9563_v46  ;;  %v9259_v8 = vadd.f32 %v18033_v51, %v20542_v58  ;;  %v18035_v37 = vadd.f32 %v16992_v55, %v19962_v57  ;;  %v8686_v53 = vpop.f32.mrb[27].mxu0 }
 0x45d   : > { %v20646_v47 = vpack.c.bf16 %v9562_v4, %v9561_v49  ;;  %v9257_v16 = vadd.f32 %v18034_v28, %v20542_v58  ;;  %v18036_v40 = vadd.f32 %v8686_v53, %v19965_v59 }
 0x45e   : > { %v9387_v19 = vmax.f32 %v9259_v8, 0.0  ;;  %v9260_v52 = vadd.f32 %v18035_v37, %v20542_v58 }
 0x45f   : > { %v9385_v29 = vmax.f32 %v9257_v16, 0.0  ;;  %v9258_v54 = vadd.f32 %v18036_v40, %v20542_v58  ;;  %17638 = vmatprep.subr.bf16.mxu1 %v20646_v47 }
 0x460   : > { %v9503_v42 = vmax.f32 %v9383_v5, %v9387_v19  ;;  %v9388_v30 = vmax.f32 %v9260_v52, 0.0  ;;  %17640 = vmatpush3.bf16.msra.mxu1 %v20646_v47 }
 0x461   : > { %v9501_v57 = vmax.f32 %v9381_v44, %v9385_v29  ;;  %v9386_v21 = vmax.f32 %v9258_v54, 0.0  ;;  %v16995_v33 = vpop.f32.mrb[28].mxu0  ;;  %17642 = vmatprep.subr.bf16.mxu1 %v20642_v35 }
 0x462   : > { %v9504_v34 = vmax.f32 %v9384_v45, %v9388_v30  ;;  %v18037_v59 = vadd.f32 %v16995_v33, %v19971_v60  ;;  %v8699_v23 = vpop.f32.mrb[29].mxu0 }
 0x463   : > { %v9502_v18 = vmax.f32 %v9382_v39, %v9386_v21  ;;  %v18038_v13 = vadd.f32 %v8699_v23, %v19974_v62  ;;  %v16996_v7 = vpop.f32.mrb[30].mxu0 }
 0x464   : > { %v9263_v27 = vadd.f32 %v18037_v59, %v20542_v58  ;;  %v18039_v20 = vadd.f32 %v16996_v7, %v19978_v2  ;;  %v8702_v5 = vpop.f32.mrb[31].mxu0  ;;  %17644 = vmatpush3.bf16.msra.mxu1 %v20642_v35 }
 0x465   : > { %v9261_v15 = vadd.f32 %v18038_v13, %v20542_v58  ;;  %v18040_v44 = vadd.f32 %v8702_v5, %v19981_v6 }
 0x466   : > { %v9391_v10 = vmax.f32 %v9263_v27, 0.0  ;;  %v9264_v46 = vadd.f32 %v18039_v20, %v20542_v58 }
 0x467   : > { %v9389_v60 = vmax.f32 %v9261_v15, 0.0  ;;  %v9262_v45 = vadd.f32 %v18040_v44, %v20542_v58  ;;  %17124 = vmatmul.mubr.msk.f32.vlgmr.msra.gmra.mrb[132].mxu1 %vm9632_vm3, %v20598_v56 }
 0x468   : > { %v9567_v62 = vmax.f32 %v9503_v42, %v9391_v10  ;;  %v9392_v49 = vmax.f32 %v9264_v46, 0.0  ;;  %17134 = vmatprep.mubr.msk.f32.mxu1 %vm9632_vm3, %v20488_v38 }
 0x469   : > { %v9565_v2 = vmax.f32 %v9501_v57, %v9389_v60  ;;  %v9390_v39 = vmax.f32 %v9262_v45, 0.0  ;;  %v16999_v50 = vpop.f32.mrb[32].mxu0 }
 0x46a   : > { %v9568_v26 = vmax.f32 %v9504_v34, %v9392_v49  ;;  %v18041_v6 = vadd.f32 %v16999_v50, %v20171_v61  ;;  %v8715_v51 = vpop.f32.mrb[33].mxu0 }
 0x46b   : > { %v9566_v43 = vmax.f32 %v9502_v18, %v9390_v39  ;;  %v18042_v4 = vadd.f32 %v8715_v51, %v20173_v63  ;;  %v17000_v28 = vpop.f32.mrb[34].mxu0 }
 0x46c   : > { %v20670_v55 = vpack.c.bf16 %v9568_v26, %v9567_v62  ;;  %v9267_v8 = vadd.f32 %v18041_v6, %v20542_v58  ;;  %v18043_v37 = vadd.f32 %v17000_v28, %v20175_v0  ;;  %v8718_v53 = vpop.f32.mrb[35].mxu0  ;;  %v21761_v28 = vld [vmem:[#allocation2_spill] sm:$0xff] }
 0x46d   : > { %v20674_v16 = vpack.c.bf16 %v9566_v43, %v9565_v2  ;;  %v9265_v40 = vadd.f32 %v18042_v4, %v20542_v58  ;;  %v18044_v19 = vadd.f32 %v8718_v53, %v20178_v3 }
 0x46e   : > { %v9395_v52 = vmax.f32 %v9267_v8, 0.0  ;;  %v9268_v61 = vadd.f32 %v18043_v37, %v20542_v58 }
 0x46f   : > { %v9393_v29 = vmax.f32 %v9265_v40, 0.0  ;;  %v9266_v63 = vadd.f32 %v18044_v19, %v20542_v58  ;;  %17646 = vmatprep.subr.bf16.mxu1 %v20674_v16 }
 0x470   : > { %v9507_v54 = vmax.f32 %v9391_v10, %v9395_v52  ;;  %v9396_v42 = vmax.f32 %v9268_v61, 0.0  ;;  %17648 = vmatpush3.bf16.msra.mxu1 %v20674_v16 }
 0x471   : > { %v9505_v0 = vmax.f32 %v9389_v60, %v9393_v29  ;;  %v9394_v30 = vmax.f32 %v9266_v63, 0.0  ;;  %v17003_v57 = vpop.f32.mrb[36].mxu0  ;;  %17650 = vmatprep.subr.bf16.mxu1 %v20670_v55  ;;  %v21762_v63 = vld [vmem:[#allocation3_spill] sm:$0xff] }
 0x472   : > { %v9508_v21 = vmax.f32 %v9392_v49, %v9396_v42  ;;  %v18045_v3 = vadd.f32 %v17003_v57, %v20183_v9  ;;  %v8731_v33 = vpop.f32.mrb[37].mxu0 }
 0x473   : > { %v9506_v34 = vmax.f32 %v9390_v39, %v9394_v30  ;;  %v18046_v59 = vadd.f32 %v8731_v33, %v20185_v11  ;;  %v17004_v23 = vpop.f32.mrb[38].mxu0  ;;  %v21763_v30 = vld [vmem:[#allocation4_spill] sm:$0xff]  ;;  %v21764_v33 = vld [vmem:[#allocation5_spill] sm:$0xff] }
 0x474   : > { %v9271_v18 = vadd.f32 %v18045_v3, %v20542_v58  ;;  %v18047_v13 = vadd.f32 %v17004_v23, %v20187_v14  ;;  %v8734_v7 = vpop.f32.mrb[39].mxu0  ;;  %17652 = vmatpush3.bf16.msra.mxu1 %v20670_v55 }
 0x475   : > { %v9269_v27 = vadd.f32 %v18046_v59, %v20542_v58  ;;  %v18048_v20 = vadd.f32 %v8734_v7, %v20190_v17 }
 0x476   : > { %v9399_v5 = vmax.f32 %v9271_v18, 0.0  ;;  %v9272_v15 = vadd.f32 %v18047_v13, %v20542_v58  ;;  %v21765_v18 = vld [vmem:[#allocation6_spill] sm:$0xff] }
 0x477   : > { %v9397_v9 = vmax.f32 %v9269_v27, 0.0  ;;  %v9270_v44 = vadd.f32 %v18048_v20, %v20542_v58  ;;  %17135 = vmatmul.mubr.msk.f32.vlgmr.msra.gmra.mrb[134].mxu1 %vm9632_vm3, %v20598_v56 }
 0x478   : > { %v9571_v11 = vmax.f32 %v9507_v54, %v9399_v5  ;;  %v9400_v10 = vmax.f32 %v9272_v15, 0.0  ;;  %17145 = vmatprep.mubr.msk.f32.mxu1 %vm9632_vm3, %v20488_v38 }
 0x479   : > { %v9569_v14 = vmax.f32 %v9505_v0, %v9397_v9  ;;  %v9398_v46 = vmax.f32 %v9270_v44, 0.0  ;;  %v17007_v60 = vpop.f32.mrb[40].mxu0 }
 0x47a   : > { %v9572_v45 = vmax.f32 %v9508_v21, %v9400_v10  ;;  %v18049_v17 = vadd.f32 %v17007_v60, %v20195_v22  ;;  %v8747_v62 = vpop.f32.mrb[41].mxu0 }
 0x47b   : > { %v9570_v49 = vmax.f32 %v9506_v34, %v9398_v46  ;;  %v18050_v2 = vadd.f32 %v8747_v62, %v20197_v24  ;;  %v17008_v39 = vpop.f32.mrb[42].mxu0  ;;  %v21767_v62 = vld [vmem:[#allocation8_spill] sm:$0xff] }
 0x47c   : > { %v20698_v50 = vpack.c.bf16 %v9572_v45, %v9571_v11  ;;  %v9275_v26 = vadd.f32 %v18049_v17, %v20542_v58  ;;  %v18051_v6 = vadd.f32 %v17008_v39, %v20199_v25  ;;  %v8750_v51 = vpop.f32.mrb[43].mxu0 }
 0x47d   : > { %v20702_v43 = vpack.c.bf16 %v9570_v49, %v9569_v14  ;;  %v9273_v4 = vadd.f32 %v18050_v2, %v20542_v58  ;;  %v18052_v8 = vadd.f32 %v8750_v51, %v21761_v28 }
 0x47e   : > { %v9403_v37 = vmax.f32 %v9275_v26, 0.0  ;;  %v9276_v22 = vadd.f32 %v18051_v6, %v20542_v58  ;;  %v21768_v6 = vld [vmem:[#allocation9_spill] sm:$0xff] }
 0x47f   : > { %v9401_v53 = vmax.f32 %v9273_v4, 0.0  ;;  %v9274_v24 = vadd.f32 %v18052_v8, %v20542_v58  ;;  %17654 = vmatprep.subr.bf16.mxu1 %v20702_v43 }
 0x480   : > { %v9511_v40 = vmax.f32 %v9399_v5, %v9403_v37  ;;  %v9404_v19 = vmax.f32 %v9276_v22, 0.0  ;;  %17656 = vmatpush3.bf16.msra.mxu1 %v20702_v43  ;;  %v21769_v37 = vld [vmem:[#allocation10_spill] sm:$0xff] }
 0x481   : > { %v9509_v25 = vmax.f32 %v9397_v9, %v9401_v53  ;;  %v9402_v52 = vmax.f32 %v9274_v24, 0.0  ;;  %v17011_v61 = vpop.f32.mrb[44].mxu0  ;;  %17658 = vmatprep.subr.bf16.mxu1 %v20698_v50 }
 0x482   : > { %v9512_v29 = vmax.f32 %v9400_v10, %v9404_v19  ;;  %v18053_v54 = vadd.f32 %v17011_v61, %v21762_v63  ;;  %v8763_v42 = vpop.f32.mrb[45].mxu0 }
 0x483   : > { %v9510_v0 = vmax.f32 %v9398_v46, %v9402_v52  ;;  %v18054_v57 = vadd.f32 %v8763_v42, %v21763_v30  ;;  %v17012_v21 = vpop.f32.mrb[46].mxu0  ;;  %v21766_v46 = vld [vmem:[#allocation7_spill] sm:$0xff] }
 0x484   : > { %v9279_v3 = vadd.f32 %v18053_v54, %v20542_v58  ;;  %v18055_v34 = vadd.f32 %v17012_v21, %v21764_v33  ;;  %v8766_v59 = vpop.f32.mrb[47].mxu0  ;;  %17660 = vmatpush3.bf16.msra.mxu1 %v20698_v50  ;;  %v21770_v42 = vld [vmem:[#allocation11_spill] sm:$0xff]  ;;  %v21771_v21 = vld [vmem:[#allocation12_spill] sm:$0xff] }
 0x485   : > { %v9277_v23 = vadd.f32 %v18054_v57, %v20542_v58  ;;  %v18056_v13 = vadd.f32 %v8766_v59, %v21765_v18  ;;  %v21772_v59 = vld [vmem:[#allocation13_spill] sm:$0xff] }
 0x486   : > { %v9407_v7 = vmax.f32 %v9279_v3, 0.0  ;;  %v9280_v27 = vadd.f32 %v18055_v34, %v20542_v58 }
 0x487   : > { %v9405_v20 = vmax.f32 %v9277_v23, 0.0  ;;  %v9278_v5 = vadd.f32 %v18056_v13, %v20542_v58  ;;  %17146 = vmatmul.mubr.msk.f32.vlgmr.msra.gmra.mrb[136].mxu1 %vm9632_vm3, %v20598_v56 }
 0x488   : > { %v9575_v15 = vmax.f32 %v9511_v40, %v9407_v7  ;;  %v9408_v9 = vmax.f32 %v9280_v27, 0.0  ;;  %17156 = vmatprep.mubr.msk.f32.mxu1 %vm9632_vm3, %v20488_v38 }
 0x489   : > { %v9573_v44 = vmax.f32 %v9509_v25, %v9405_v20  ;;  %v9406_v11 = vmax.f32 %v9278_v5, 0.0  ;;  %v17015_v10 = vpop.f32.mrb[48].mxu0 }
 0x48a   : > { %v9576_v14 = vmax.f32 %v9512_v29, %v9408_v9  ;;  %v18057_v60 = vadd.f32 %v17015_v10, %v21766_v46  ;;  %v8779_v45 = vpop.f32.mrb[49].mxu0 }
 0x48b   : > { %v9574_v17 = vmax.f32 %v9510_v0, %v9406_v11  ;;  %v18058_v49 = vadd.f32 %v8779_v45, %v21767_v62  ;;  %v17016_v2 = vpop.f32.mrb[50].mxu0  ;;  %v21774_v45 = vld [vmem:[#allocation15_spill] sm:$0xff] }
 0x48c   : > { %v20726_v39 = vpack.c.bf16 %v9576_v14, %v9575_v15  ;;  %v9283_v26 = vadd.f32 %v18057_v60, %v20542_v58  ;;  %v18059_v51 = vadd.f32 %v17016_v2, %v21768_v6  ;;  %v8782_v4 = vpop.f32.mrb[51].mxu0  ;;  %v21775_v2 = vld [vmem:[#allocation16_spill] sm:$0xff] }
 0x48d   : > { %v20730_v28 = vpack.c.bf16 %v9574_v17, %v9573_v44  ;;  %v9281_v8 = vadd.f32 %v18058_v49, %v20542_v58  ;;  %v18060_v22 = vadd.f32 %v8782_v4, %v21769_v37 }
 0x48e   : > { %v9411_v53 = vmax.f32 %v9283_v26, 0.0  ;;  %v9284_v24 = vadd.f32 %v18059_v51, %v20542_v58 }
 0x48f   : > { %v9409_v40 = vmax.f32 %v9281_v8, 0.0  ;;  %v9282_v19 = vadd.f32 %v18060_v22, %v20542_v58  ;;  %17662 = vmatprep.subr.bf16.mxu1 %v20730_v28  ;;  %v21776_v8 = vld [vmem:[#allocation17_spill] sm:$0xff] }
 0x490   : > { %v9515_v25 = vmax.f32 %v9407_v7, %v9411_v53  ;;  %v9412_v52 = vmax.f32 %v9284_v24, 0.0  ;;  %17664 = vmatpush3.bf16.msra.mxu1 %v20730_v28  ;;  %v21773_v7 = vld [vmem:[#allocation14_spill] sm:$0xff] }
 0x491   : > { %v9513_v61 = vmax.f32 %v9405_v20, %v9409_v40  ;;  %v9410_v29 = vmax.f32 %v9282_v19, 0.0  ;;  %v17019_v63 = vpop.f32.mrb[52].mxu0  ;;  %17666 = vmatprep.subr.bf16.mxu1 %v20726_v39  ;;  %v21777_v40 = vld [vmem:[#allocation18_spill] sm:$0xff] }
 0x492   : > { %v9516_v54 = vmax.f32 %v9408_v9, %v9412_v52  ;;  %v18061_v0 = vadd.f32 %v17019_v63, %v21770_v42  ;;  %v8795_v30 = vpop.f32.mrb[53].mxu0 }
 0x493   : > { %v9514_v57 = vmax.f32 %v9406_v11, %v9410_v29  ;;  %v18062_v3 = vadd.f32 %v8795_v30, %v21771_v21  ;;  %v17020_v33 = vpop.f32.mrb[54].mxu0  ;;  %v21778_v21 = vld [vmem:[#allocation19_spill] sm:$0xff] }
 0x494   : > { %v9287_v34 = vadd.f32 %v18061_v0, %v20542_v58  ;;  %v18063_v23 = vadd.f32 %v17020_v33, %v21772_v59  ;;  %v8798_v18 = vpop.f32.mrb[55].mxu0  ;;  %17668 = vmatpush3.bf16.msra.mxu1 %v20726_v39  ;;  %v21779_v59 = vld [vmem:[#allocation20_spill] sm:$0xff] }
 0x495   : > { %v9285_v13 = vadd.f32 %v18062_v3, %v20542_v58  ;;  %v18064_v27 = vadd.f32 %v8798_v18, %v21773_v7  ;;  %v21780_v7 = vld [vmem:[#allocation21_spill] sm:$0xff] }
 0x496   : > { %v9415_v20 = vmax.f32 %v9287_v34, 0.0  ;;  %v9288_v5 = vadd.f32 %v18063_v23, %v20542_v58 }
 0x497   : > { %v9413_v15 = vmax.f32 %v9285_v13, 0.0  ;;  %v9286_v9 = vadd.f32 %v18064_v27, %v20542_v58  ;;  %17157 = vmatmul.mubr.msk.f32.vlgmr.msra.gmra.mrb[138].mxu1 %vm9632_vm3, %v20598_v56 }
 0x498   : > { %v9579_v44 = vmax.f32 %v9515_v25, %v9415_v20  ;;  %v9416_v11 = vmax.f32 %v9288_v5, 0.0  ;;  %17167 = vmatprep.mubr.msk.f32.mxu1 %vm9632_vm3, %v20488_v38 }
 0x499   : > { %v9577_v10 = vmax.f32 %v9513_v61, %v9413_v15  ;;  %v9414_v14 = vmax.f32 %v9286_v9, 0.0  ;;  %v17023_v46 = vpop.f32.mrb[56].mxu0 }
 0x49a   : > { %v9580_v60 = vmax.f32 %v9516_v54, %v9416_v11  ;;  %v18065_v17 = vadd.f32 %v17023_v46, %v21774_v45  ;;  %v8811_v62 = vpop.f32.mrb[57].mxu0 }
 0x49b   : > { %v9578_v49 = vmax.f32 %v9514_v57, %v9414_v14  ;;  %v18066_v26 = vadd.f32 %v8811_v62, %v21775_v2  ;;  %v17024_v6 = vpop.f32.mrb[58].mxu0  ;;  %v21782_v2 = vld [vmem:[#allocation23_spill] sm:$0xff] }
 0x49c   : > { %v20754_v51 = vpack.c.bf16 %v9580_v60, %v9579_v44  ;;  %v9291_v4 = vadd.f32 %v18065_v17, %v20542_v58  ;;  %v18067_v37 = vadd.f32 %v17024_v6, %v21776_v8  ;;  %v8814_v22 = vpop.f32.mrb[59].mxu0  ;;  %v21783_v8 = vld [vmem:[#allocation24_spill] sm:$0xff] }
 0x49d   : > { %v20758_v53 = vpack.c.bf16 %v9578_v49, %v9577_v10  ;;  %v9289_v24 = vadd.f32 %v18066_v26, %v20542_v58  ;;  %v18068_v19 = vadd.f32 %v8814_v22, %v21777_v40 }
 0x49e   : > { %v9419_v25 = vmax.f32 %v9291_v4, 0.0  ;;  %v9292_v52 = vadd.f32 %v18067_v37, %v20542_v58 }
 0x49f   : > { %v9417_v61 = vmax.f32 %v9289_v24, 0.0  ;;  %v9290_v29 = vadd.f32 %v18068_v19, %v20542_v58  ;;  %17670 = vmatprep.subr.bf16.mxu1 %v20758_v53  ;;  %v21784_v19 = vld [vmem:[#allocation25_spill] sm:$0xff] }
 0x4a0   : > { %v9519_v63 = vmax.f32 %v9415_v20, %v9419_v25  ;;  %v9420_v54 = vmax.f32 %v9292_v52, 0.0  ;;  %17672 = vmatpush3.bf16.msra.mxu1 %v20758_v53 }
 0x4a1   : > { %v9517_v42 = vmax.f32 %v9413_v15, %v9417_v61  ;;  %v9418_v0 = vmax.f32 %v9290_v29, 0.0  ;;  %v17027_v30 = vpop.f32.mrb[60].mxu0  ;;  %17674 = vmatprep.subr.bf16.mxu1 %v20754_v51  ;;  %v21781_v15 = vld [vmem:[#allocation22_spill] sm:$0xff] }
 0x4a2   : > { %v9520_v57 = vmax.f32 %v9416_v11, %v9420_v54  ;;  %v18069_v3 = vadd.f32 %v17027_v30, %v21778_v21  ;;  %v8827_v33 = vpop.f32.mrb[61].mxu0 }
 0x4a3   : > { %v9518_v34 = vmax.f32 %v9414_v14, %v9418_v0  ;;  %v18070_v23 = vadd.f32 %v8827_v33, %v21779_v59  ;;  %v17028_v18 = vpop.f32.mrb[62].mxu0 }
 0x4a4   : > { %v9295_v13 = vadd.f32 %v18069_v3, %v20542_v58  ;;  %v18071_v27 = vadd.f32 %v17028_v18, %v21780_v7  ;;  %v8830_v20 = vpop.f32.mrb[63].mxu0  ;;  %17676 = vmatpush3.bf16.msra.mxu1 %v20754_v51  ;;  %v21786_v18 = vld [vmem:[#allocation27_spill] sm:$0xff] }
 0x4a5   : > { %v9293_v5 = vadd.f32 %v18070_v23, %v20542_v58  ;;  %v18072_v9 = vadd.f32 %v8830_v20, %v21781_v15  ;;  %v21787_v20 = vld [vmem:[#allocation28_spill] sm:$0xff] }
 0x4a6   : > { %v9423_v44 = vmax.f32 %v9295_v13, 0.0  ;;  %v9296_v11 = vadd.f32 %v18071_v27, %v20542_v58 }
 0x4a7   : > { %v9421_v10 = vmax.f32 %v9293_v5, 0.0  ;;  %v9294_v14 = vadd.f32 %v18072_v9, %v20542_v58  ;;  %17168 = vmatmul.mubr.msk.f32.vlgmr.msra.gmra.mrb[140].mxu1 %vm9632_vm3, %v20598_v56 }
 0x4a8   : > { %v9583_v46 = vmax.f32 %v9519_v63, %v9423_v44  ;;  %v9424_v60 = vmax.f32 %v9296_v11, 0.0  ;;  %17178 = vmatprep.mubr.msk.f32.mxu1 %vm9632_vm3, %v20488_v38  ;;  %v21785_v63 = vld [vmem:[#allocation26_spill] sm:$0xff]  ;;  %v21788_v11 = vld [vmem:[#allocation29_spill] sm:$0xff] }
 0x4a9   : > { %v9581_v45 = vmax.f32 %v9517_v42, %v9421_v10  ;;  %v9422_v17 = vmax.f32 %v9294_v14, 0.0  ;;  %v17031_v62 = vpop.f32.mrb[64].mxu0 }
 0x4aa   : > { %v9584_v49 = vmax.f32 %v9520_v57, %v9424_v60  ;;  %v18073_v26 = vadd.f32 %v17031_v62, %v21782_v2  ;;  %v8843_v6 = vpop.f32.mrb[65].mxu0 }
 0x4ab   : > { %v9582_v4 = vmax.f32 %v9518_v34, %v9422_v17  ;;  %v18074_v37 = vadd.f32 %v8843_v6, %v21783_v8  ;;  %v17032_v22 = vpop.f32.mrb[66].mxu0 }
 0x4ac   : > { %v20782_v24 = vpack.c.bf16 %v9584_v49, %v9583_v46  ;;  %v9299_v40 = vadd.f32 %v18073_v26, %v20542_v58  ;;  %v18075_v25 = vadd.f32 %v17032_v22, %v21784_v19  ;;  %v8846_v52 = vpop.f32.mrb[67].mxu0  ;;  %v21789_v46 = vld [vmem:[#allocation30_spill] sm:$0xff]  ;;  %v21790_v22 = vld [vmem:[#allocation31_spill] sm:$0xff] }
 0x4ad   : > { %v20786_v61 = vpack.c.bf16 %v9582_v4, %v9581_v45  ;;  %v9297_v29 = vadd.f32 %v18074_v37, %v20542_v58  ;;  %v18076_v54 = vadd.f32 %v8846_v52, %v21785_v63  ;;  %v21791_v52 = vld [vmem:[#allocation32_spill] sm:$0xff] }
 0x4ae   : > { %v9427_v42 = vmax.f32 %v9299_v40, 0.0  ;;  %v9300_v0 = vadd.f32 %v18075_v25, %v20542_v58 }
 0x4af   : > { %v9425_v30 = vmax.f32 %v9297_v29, 0.0  ;;  %v9298_v57 = vadd.f32 %v18076_v54, %v20542_v58  ;;  %17678 = vmatprep.subr.bf16.mxu1 %v20786_v61 }
 0x4b0   : > { %v9523_v21 = vmax.f32 %v9423_v44, %v9427_v42  ;;  %v9428_v3 = vmax.f32 %v9300_v0, 0.0  ;;  %17680 = vmatpush3.bf16.msra.mxu1 %v20786_v61  ;;  %v21792_v0 = vld [vmem:[#allocation33_spill] sm:$0xff] }
 0x4b1   : > { %v9521_v33 = vmax.f32 %v9421_v10, %v9425_v30  ;;  %v9426_v34 = vmax.f32 %v9298_v57, 0.0  ;;  %v17035_v59 = vpop.f32.mrb[68].mxu0  ;;  %17682 = vmatprep.subr.bf16.mxu1 %v20782_v24 }
 0x4b2   : > { %v9524_v23 = vmax.f32 %v9424_v60, %v9428_v3  ;;  %v18077_v13 = vadd.f32 %v17035_v59, %v21786_v18  ;;  %v8859_v7 = vpop.f32.mrb[69].mxu0 }
 0x4b3   : > { %v9522_v27 = vmax.f32 %v9422_v17, %v9426_v34  ;;  %v18078_v5 = vadd.f32 %v8859_v7, %v21787_v20  ;;  %v17036_v15 = vpop.f32.mrb[70].mxu0 }
 0x4b4   : > { %v9303_v9 = vadd.f32 %v18077_v13, %v20542_v58  ;;  %v18079_v44 = vadd.f32 %v17036_v15, %v21788_v11  ;;  %v8862_v14 = vpop.f32.mrb[71].mxu0  ;;  %17684 = vmatpush3.bf16.msra.mxu1 %v20782_v24  ;;  %v21794_v11 = vld [vmem:[#allocation35_spill] sm:$0xff] }
 0x4b5   : > { %v9301_v10 = vadd.f32 %v18078_v5, %v20542_v58  ;;  %v18080_v45 = vadd.f32 %v8862_v14, %v21789_v46  ;;  %v21795_v46 = vld [vmem:[#allocation36_spill] sm:$0xff] }
 0x4b6   : > { %v9431_v62 = vmax.f32 %v9303_v9, 0.0  ;;  %v9304_v60 = vadd.f32 %v18079_v44, %v20542_v58 }
 0x4b7   : > { %v9429_v49 = vmax.f32 %v9301_v10, 0.0  ;;  %v9302_v17 = vadd.f32 %v18080_v45, %v20542_v58  ;;  %17179 = vmatmul.mubr.msk.f32.vlgmr.msra.gmra.mrb[142].mxu1 %vm9632_vm3, %v20598_v56 }
 0x4b8   : > { %v9587_v2 = vmax.f32 %v9523_v21, %v9431_v62  ;;  %v9432_v26 = vmax.f32 %v9304_v60, 0.0  ;;  %17189 = vmatprep.mubr.msk.f32.mxu1 %vm9632_vm3, %v20488_v38 }
 0x4b9   : > { %v9585_v6 = vmax.f32 %v9521_v33, %v9429_v49  ;;  %v9430_v4 = vmax.f32 %v9302_v17, 0.0  ;;  %v17039_v8 = vpop.f32.mrb[72].mxu0  ;;  %v21793_v33 = vld [vmem:[#allocation34_spill] sm:$0xff] }
 0x4ba   : > { %v9588_v37 = vmax.f32 %v9524_v23, %v9432_v26  ;;  %v18081_v40 = vadd.f32 %v17039_v8, %v21790_v22  ;;  %v8875_v19 = vpop.f32.mrb[73].mxu0  ;;  %v21797_v8 = vld [vmem:[#allocation38_spill] sm:$0xff] }
 0x4bb   : > { %v9586_v25 = vmax.f32 %v9522_v27, %v9430_v4  ;;  %v18082_v29 = vadd.f32 %v8875_v19, %v21791_v52  ;;  %v17040_v63 = vpop.f32.mrb[74].mxu0 }
 0x4bc   : > { %v20810_v54 = vpack.c.bf16 %v9588_v37, %v9587_v2  ;;  %v9307_v42 = vadd.f32 %v18081_v40, %v20542_v58  ;;  %v18083_v30 = vadd.f32 %v17040_v63, %v21792_v0  ;;  %v8878_v57 = vpop.f32.mrb[75].mxu0  ;;  %v21796_v2 = vld [vmem:[#allocation37_spill] sm:$0xff]  ;;  %v21798_v0 = vld [vmem:[#allocation39_spill] sm:$0xff] }
 0x4bd   : > { %v20814_v21 = vpack.c.bf16 %v9586_v25, %v9585_v6  ;;  %v9305_v3 = vadd.f32 %v18082_v29, %v20542_v58  ;;  %v18084_v34 = vadd.f32 %v8878_v57, %v21793_v33  ;;  %v21799_v33 = vld [vmem:[#allocation40_spill] sm:$0xff] }
 0x4be   : > { %v9435_v59 = vmax.f32 %v9307_v42, 0.0  ;;  %v9308_v23 = vadd.f32 %v18083_v30, %v20542_v58 }
 0x4bf   : > { %v9433_v18 = vmax.f32 %v9305_v3, 0.0  ;;  %v9306_v13 = vadd.f32 %v18084_v34, %v20542_v58  ;;  %17686 = vmatprep.subr.bf16.mxu1 %v20814_v21 }
 0x4c0   : > { %v9527_v7 = vmax.f32 %v9431_v62, %v9435_v59  ;;  %v9436_v27 = vmax.f32 %v9308_v23, 0.0  ;;  %17688 = vmatpush3.bf16.msra.mxu1 %v20814_v21 }
 0x4c1   : > { %v9525_v20 = vmax.f32 %v9429_v49, %v9433_v18  ;;  %v9434_v5 = vmax.f32 %v9306_v13, 0.0  ;;  %v17043_v15 = vpop.f32.mrb[76].mxu0  ;;  %17690 = vmatprep.subr.bf16.mxu1 %v20810_v54  ;;  %v21800_v13 = vld [vmem:[#allocation41_spill] sm:$0xff] }
 0x4c2   : > { %v9528_v9 = vmax.f32 %v9432_v26, %v9436_v27  ;;  %v18085_v44 = vadd.f32 %v17043_v15, %v21794_v11  ;;  %v8891_v14 = vpop.f32.mrb[77].mxu0  ;;  %v21801_v15 = vld [vmem:[#allocation42_spill] sm:$0xff] }
 0x4c3   : > { %v9526_v10 = vmax.f32 %v9430_v4, %v9434_v5  ;;  %v18086_v45 = vadd.f32 %v8891_v14, %v21795_v46  ;;  %v17044_v60 = vpop.f32.mrb[78].mxu0 }
 0x4c4   : > { %v9311_v17 = vadd.f32 %v18085_v44, %v20542_v58  ;;  %v18087_v62 = vadd.f32 %v17044_v60, %v21796_v2  ;;  %v8894_v6 = vpop.f32.mrb[79].mxu0  ;;  %17692 = vmatpush3.bf16.msra.mxu1 %v20810_v54 }
 0x4c5   : > { %v9309_v49 = vadd.f32 %v18086_v45, %v20542_v58  ;;  %v18088_v37 = vadd.f32 %v8894_v6, %v21797_v8  ;;  %v21802_v6 = vld [vmem:[#allocation43_spill] sm:$0xff] }
 0x4c6   : > { %v9439_v22 = vmax.f32 %v9311_v17, 0.0  ;;  %v9312_v26 = vadd.f32 %v18087_v62, %v20542_v58 }
 0x4c7   : > { %v9437_v40 = vmax.f32 %v9309_v49, 0.0  ;;  %v9310_v4 = vadd.f32 %v18088_v37, %v20542_v58  ;;  %17190 = vmatmul.mubr.msk.f32.vlgmr.msra.gmra.mrb[144].mxu1 %vm9632_vm3, %v20598_v56 }
 0x4c8   : > { %v9591_v19 = vmax.f32 %v9527_v7, %v9439_v22  ;;  %v9440_v25 = vmax.f32 %v9312_v26, 0.0  ;;  %17200 = vmatprep.mubr.msk.f32.mxu1 %vm9632_vm3, %v20488_v38  ;;  %v21803_v26 = vld [vmem:[#allocation44_spill] sm:$0xff] }
 0x4c9   : > { %v9589_v52 = vmax.f32 %v9525_v20, %v9437_v40  ;;  %v9438_v29 = vmax.f32 %v9310_v4, 0.0  ;;  %v17047_v63 = vpop.f32.mrb[80].mxu0 }
 0x4ca   : > { %v9592_v42 = vmax.f32 %v9528_v9, %v9440_v25  ;;  %v18089_v30 = vadd.f32 %v17047_v63, %v21798_v0  ;;  %v8907_v57 = vpop.f32.mrb[81].mxu0 }
 0x4cb   : > { %v9590_v3 = vmax.f32 %v9526_v10, %v9438_v29  ;;  %v18090_v34 = vadd.f32 %v8907_v57, %v21799_v33  ;;  %v17048_v59 = vpop.f32.mrb[82].mxu0 }
 0x4cc   : > { %v20838_v23 = vpack.c.bf16 %v9592_v42, %v9591_v19  ;;  %v9315_v18 = vadd.f32 %v18089_v30, %v20542_v58  ;;  %v18091_v7 = vadd.f32 %v17048_v59, %v21800_v13  ;;  %v8910_v27 = vpop.f32.mrb[83].mxu0  ;;  %v21805_v42 = vld [vmem:[#allocation46_spill] sm:$0xff] }
 0x4cd   : > { %v20842_v5 = vpack.c.bf16 %v9590_v3, %v9589_v52  ;;  %v9313_v20 = vadd.f32 %v18090_v34, %v20542_v58  ;;  %v18092_v9 = vadd.f32 %v8910_v27, %v21801_v15  ;;  %v21806_v27 = vld [vmem:[#allocation47_spill] sm:$0xff] }
 0x4ce   : > { %v9443_v11 = vmax.f32 %v9315_v18, 0.0  ;;  %v9316_v44 = vadd.f32 %v18091_v7, %v20542_v58 }
 0x4cf   : > { %v9441_v14 = vmax.f32 %v9313_v20, 0.0  ;;  %v9314_v10 = vadd.f32 %v18092_v9, %v20542_v58  ;;  %17694 = vmatprep.subr.bf16.mxu1 %v20842_v5  ;;  %v20856_v58 = vld [vmem:[%s21658_s2] ss:$0 sm:$0xff] }
 0x4d0   : > { %v9531_v46 = vmax.f32 %v9439_v22, %v9443_v11  ;;  %v9444_v45 = vmax.f32 %v9316_v44, 0.0  ;;  %17696 = vmatpush3.bf16.msra.mxu1 %v20842_v5  ;;  %v21807_v11 = vld [vmem:[#allocation48_spill] sm:$0xff] }
 0x4d1   : > { %v9529_v60 = vmax.f32 %v9437_v40, %v9441_v14  ;;  %v9442_v17 = vmax.f32 %v9314_v10, 0.0  ;;  %v17051_v2 = vpop.f32.mrb[84].mxu0  ;;  %17698 = vmatprep.subr.bf16.mxu1 %v20838_v23  ;;  %v21804_v40 = vld [vmem:[#allocation45_spill] sm:$0xff] }
 0x4d2   : > { %v9532_v62 = vmax.f32 %v9440_v25, %v9444_v45  ;;  %v18093_v49 = vadd.f32 %v17051_v2, %v21802_v6  ;;  %v8923_v8 = vpop.f32.mrb[85].mxu0 }
 0x4d3   : > { %v9530_v37 = vmax.f32 %v9438_v29, %v9442_v17  ;;  %v18094_v4 = vadd.f32 %v8923_v8, %v21803_v26  ;;  %v17052_v19 = vpop.f32.mrb[86].mxu0 }
 0x4d4   : > { %v9319_v22 = vadd.f32 %v20856_v58, %v18093_v49  ;;  %v18095_v52 = vadd.f32 %v17052_v19, %v21804_v40  ;;  %v8926_v63 = vpop.f32.mrb[87].mxu0  ;;  %17700 = vmatpush3.bf16.msra.mxu1 %v20838_v23  ;;  %v21809_v49 = vld [vmem:[#allocation50_spill] sm:$0xff] }
 0x4d5   : > { %v9317_v25 = vadd.f32 %v20856_v58, %v18094_v4  ;;  %v18096_v0 = vadd.f32 %v8926_v63, %v21805_v42  ;;  %v21810_v42 = vld [vmem:[#allocation51_spill] sm:$0xff] }
 0x4d6   : > { %v9447_v29 = vmax.f32 %v9319_v22, 0.0  ;;  %v9320_v30 = vadd.f32 %v20856_v58, %v18095_v52 }
 0x4d7   : > { %v9445_v57 = vmax.f32 %v9317_v25, 0.0  ;;  %v9318_v3 = vadd.f32 %v20856_v58, %v18096_v0  ;;  %17201 = vmatmul.mubr.msk.f32.vlgmr.msra.gmra.mrb[146].mxu1 %vm9632_vm3, %v20598_v56 }
 0x4d8   : > { %v9595_v33 = vmax.f32 %v9531_v46, %v9447_v29  ;;  %v9448_v34 = vmax.f32 %v9320_v30, 0.0  ;;  %17211 = vmatprep.mubr.msk.f32.mxu1 %vm9632_vm3, %v20488_v38  ;;  %v21808_v46 = vld [vmem:[#allocation49_spill] sm:$0xff] }
 0x4d9   : > { %v9593_v59 = vmax.f32 %v9529_v60, %v9445_v57  ;;  %v9446_v18 = vmax.f32 %v9318_v3, 0.0  ;;  %v17055_v13 = vpop.f32.mrb[88].mxu0 }
 0x4da   : > { %v9596_v7 = vmax.f32 %v9532_v62, %v9448_v34  ;;  %v18097_v20 = vadd.f32 %v17055_v13, %v21806_v27  ;;  %v8939_v15 = vpop.f32.mrb[89].mxu0  ;;  %v21812_v27 = vld [vmem:[#allocation53_spill] sm:$0xff] }
 0x4db   : > { %v9594_v9 = vmax.f32 %v9530_v37, %v9446_v18  ;;  %v18098_v44 = vadd.f32 %v8939_v15, %v21807_v11  ;;  %v17056_v14 = vpop.f32.mrb[90].mxu0  ;;  %v21813_v15 = vld [vmem:[#allocation54_spill] sm:$0xff] }
 0x4dc   : > { %v20871_v10 = vpack.c.bf16 %v9596_v7, %v9595_v33  ;;  %v9323_v45 = vadd.f32 %v20856_v58, %v18097_v20  ;;  %v18099_v17 = vadd.f32 %v17056_v14, %v21808_v46  ;;  %v8942_v2 = vpop.f32.mrb[91].mxu0  ;;  %v21811_v33 = vld [vmem:[#allocation52_spill] sm:$0xff] }
 0x4dd   : > { %v20875_v6 = vpack.c.bf16 %v9594_v9, %v9593_v59  ;;  %v9321_v60 = vadd.f32 %v20856_v58, %v18098_v44  ;;  %v18100_v62 = vadd.f32 %v8942_v2, %v21809_v49  ;;  %v21814_v49 = vld [vmem:[#allocation55_spill] sm:$0xff] }
 0x4de   : > { %v9451_v8 = vmax.f32 %v9323_v45, 0.0  ;;  %v9324_v26 = vadd.f32 %v20856_v58, %v18099_v17 }
 0x4df   : > { %v9449_v37 = vmax.f32 %v9321_v60, 0.0  ;;  %v9322_v4 = vadd.f32 %v20856_v58, %v18100_v62  ;;  %17702 = vmatprep.subr.bf16.mxu1 %v20875_v6 }
 0x4e0   : > { %v9535_v19 = vmax.f32 %v9447_v29, %v9451_v8  ;;  %v9452_v22 = vmax.f32 %v9324_v26, 0.0  ;;  %17704 = vmatpush3.bf16.msra.mxu1 %v20875_v6 }
 0x4e1   : > { %v9533_v40 = vmax.f32 %v9445_v57, %v9449_v37  ;;  %v9450_v52 = vmax.f32 %v9322_v4, 0.0  ;;  %v17059_v63 = vpop.f32.mrb[92].mxu0  ;;  %17706 = vmatprep.subr.bf16.mxu1 %v20871_v10  ;;  %v21815_v37 = vld [vmem:[#allocation56_spill] sm:$0xff] }
 0x4e2   : > { %v9536_v25 = vmax.f32 %v9448_v34, %v9452_v22  ;;  %v18101_v0 = vadd.f32 %v17059_v63, %v21810_v42  ;;  %v8955_v30 = vpop.f32.mrb[93].mxu0 }
 0x4e3   : > { %v9534_v3 = vmax.f32 %v9446_v18, %v9450_v52  ;;  %v18102_v59 = vadd.f32 %v8955_v30, %v21811_v33  ;;  %v17060_v13 = vpop.f32.mrb[94].mxu0  ;;  %v21817_v33 = vld [vmem:[#allocation58_spill] sm:$0xff] }
 0x4e4   : > { %v9327_v7 = vadd.f32 %v20856_v58, %v18101_v0  ;;  %v18103_v29 = vadd.f32 %v17060_v13, %v21812_v27  ;;  %v8958_v20 = vpop.f32.mrb[95].mxu0  ;;  %17708 = vmatpush3.bf16.msra.mxu1 %v20871_v10 }
 0x4e5   : > { %v9325_v57 = vadd.f32 %v20856_v58, %v18102_v59  ;;  %v18104_v9 = vadd.f32 %v8958_v20, %v21813_v15 }
 0x4e6   : > { %v9455_v11 = vmax.f32 %v9327_v7, 0.0  ;;  %v9328_v34 = vadd.f32 %v20856_v58, %v18103_v29 }
 0x4e7   : > { %v9453_v44 = vmax.f32 %v9325_v57, 0.0  ;;  %v9326_v18 = vadd.f32 %v20856_v58, %v18104_v9  ;;  %17212 = vmatmul.mubr.msk.f32.vlgmr.msra.gmra.mrb[148].mxu1 %vm9632_vm3, %v20598_v56 }
 0x4e8   : > { %v9599_v14 = vmax.f32 %v9535_v19, %v9455_v11  ;;  %v9456_v45 = vmax.f32 %v9328_v34, 0.0  ;;  %17222 = vmatprep.mubr.msk.f32.mxu1 %vm9632_vm3, %v20488_v38  ;;  %v21816_v19 = vld [vmem:[#allocation57_spill] sm:$0xff]  ;;  %v21818_v34 = vld [vmem:[#allocation59_spill] sm:$0xff] }
 0x4e9   : > { %v9597_v46 = vmax.f32 %v9533_v40, %v9453_v44  ;;  %v9454_v17 = vmax.f32 %v9326_v18, 0.0  ;;  %v17063_v2 = vpop.f32.mrb[96].mxu0 }
 0x4ea   : > { %v9600_v60 = vmax.f32 %v9536_v25, %v9456_v45  ;;  %v18105_v62 = vadd.f32 %v17063_v2, %v21814_v49  ;;  %v8971_v8 = vpop.f32.mrb[97].mxu0  ;;  %v21819_v2 = vld [vmem:[#allocation60_spill] sm:$0xff] }
 0x4eb   : > { %v9598_v26 = vmax.f32 %v9534_v3, %v9454_v17  ;;  %v18106_v4 = vadd.f32 %v8971_v8, %v21815_v37  ;;  %v17064_v22 = vpop.f32.mrb[98].mxu0  ;;  %v21820_v8 = vld [vmem:[#allocation61_spill] sm:$0xff]  ;;  %v21821_v37 = vld [vmem:[#allocation62_spill] sm:$0xff] }
 0x4ec   : > { %v20899_v52 = vpack.c.bf16 %v9600_v60, %v9599_v14  ;;  %v9331_v63 = vadd.f32 %v20856_v58, %v18105_v62  ;;  %v18107_v42 = vadd.f32 %v17064_v22, %v21816_v19  ;;  %v8974_v0 = vpop.f32.mrb[99].mxu0 }
 0x4ed   : > { %v20903_v30 = vpack.c.bf16 %v9598_v26, %v9597_v46  ;;  %v9329_v40 = vadd.f32 %v20856_v58, %v18106_v4  ;;  %v18108_v25 = vadd.f32 %v8974_v0, %v21817_v33 }
 0x4ee   : > { %v9459_v59 = vmax.f32 %v9331_v63, 0.0  ;;  %v9332_v13 = vadd.f32 %v20856_v58, %v18107_v42 }
 0x4ef   : > { %v9457_v3 = vmax.f32 %v9329_v40, 0.0  ;;  %v9330_v7 = vadd.f32 %v20856_v58, %v18108_v25  ;;  %17710 = vmatprep.subr.bf16.mxu1 %v20903_v30 }
 0x4f0   : > { %v9539_v27 = vmax.f32 %v9455_v11, %v9459_v59  ;;  %v9460_v29 = vmax.f32 %v9332_v13, 0.0  ;;  %17712 = vmatpush3.bf16.msra.mxu1 %v20903_v30  ;;  %v21822_v59 = vld [vmem:[#allocation63_spill] sm:$0xff] }
 0x4f1   : > { %v9537_v20 = vmax.f32 %v9453_v44, %v9457_v3  ;;  %v9458_v57 = vmax.f32 %v9330_v7, 0.0  ;;  %v17067_v15 = vpop.f32.mrb[100].mxu0  ;;  %17714 = vmatprep.subr.bf16.mxu1 %v20899_v52 }
 0x4f2   : > { %v9540_v9 = vmax.f32 %v9456_v45, %v9460_v29  ;;  %v18109_v18 = vadd.f32 %v17067_v15, %v21818_v34  ;;  %v8987_v14 = vpop.f32.mrb[101].mxu0  ;;  %v21823_v29 = vld [vmem:[#allocation64_spill] sm:$0xff] }
 0x4f3   : > { %v9538_v46 = vmax.f32 %v9454_v17, %v9458_v57  ;;  %v18110_v60 = vadd.f32 %v8987_v14, %v21819_v2  ;;  %v17068_v49 = vpop.f32.mrb[102].mxu0 }
 0x4f4   : > { %v9335_v62 = vadd.f32 %v20856_v58, %v18109_v18  ;;  %v18111_v11 = vadd.f32 %v17068_v49, %v21820_v8  ;;  %v8990_v26 = vpop.f32.mrb[103].mxu0  ;;  %17716 = vmatpush3.bf16.msra.mxu1 %v20899_v52  ;;  %v21825_v49 = vld [vmem:[#allocation66_spill] sm:$0xff] }
 0x4f5   : > { %v9333_v44 = vadd.f32 %v20856_v58, %v18110_v60  ;;  %v18112_v4 = vadd.f32 %v8990_v26, %v21821_v37 }
 0x4f6   : > { %v9463_v22 = vmax.f32 %v9335_v62, 0.0  ;;  %v9336_v45 = vadd.f32 %v20856_v58, %v18111_v11 }
 0x4f7   : > { %v9461_v63 = vmax.f32 %v9333_v44, 0.0  ;;  %v9334_v17 = vadd.f32 %v20856_v58, %v18112_v4  ;;  %17223 = vmatmul.mubr.msk.f32.vlgmr.msra.gmra.mrb[150].mxu1 %vm9632_vm3, %v20598_v56 }
 0x4f8   : > { %v9603_v19 = vmax.f32 %v9539_v27, %v9463_v22  ;;  %v9464_v42 = vmax.f32 %v9336_v45, 0.0  ;;  %17233 = vmatprep.mubr.msk.f32.mxu1 %vm9632_vm3, %v20488_v38  ;;  %v21824_v27 = vld [vmem:[#allocation65_spill] sm:$0xff] }
 0x4f9   : > { %v9601_v0 = vmax.f32 %v9537_v20, %v9461_v63  ;;  %v9462_v40 = vmax.f32 %v9334_v17, 0.0  ;;  %v17071_v33 = vpop.f32.mrb[104].mxu0 }
 0x4fa   : > { %v9604_v25 = vmax.f32 %v9540_v9, %v9464_v42  ;;  %v18113_v13 = vadd.f32 %v17071_v33, %v21822_v59  ;;  %v9003_v3 = vpop.f32.mrb[105].mxu0  ;;  %v21827_v59 = vld [vmem:[#allocation68_spill] sm:$0xff] }
 0x4fb   : > { %v9602_v7 = vmax.f32 %v9538_v46, %v9462_v40  ;;  %v18114_v57 = vadd.f32 %v9003_v3, %v21823_v29  ;;  %v17072_v15 = vpop.f32.mrb[106].mxu0  ;;  %v21828_v29 = vld [vmem:[#allocation69_spill] sm:$0xff] }
 0x4fc   : > { %v20927_v34 = vpack.c.bf16 %v9604_v25, %v9603_v19  ;;  %v9339_v18 = vadd.f32 %v20856_v58, %v18113_v13  ;;  %v18115_v14 = vadd.f32 %v17072_v15, %v21824_v27  ;;  %v9006_v2 = vpop.f32.mrb[107].mxu0  ;;  %v21826_v19 = vld [vmem:[#allocation67_spill] sm:$0xff]  ;;  %v21829_v15 = vld [vmem:[#allocation70_spill] sm:$0xff] }
 0x4fd   : > { %v20931_v60 = vpack.c.bf16 %v9602_v7, %v9601_v0  ;;  %v9337_v20 = vadd.f32 %v20856_v58, %v18114_v57  ;;  %v18116_v9 = vadd.f32 %v9006_v2, %v21825_v49 }
 0x4fe   : > { %v9467_v62 = vmax.f32 %v9339_v18, 0.0  ;;  %v9340_v8 = vadd.f32 %v20856_v58, %v18115_v14 }
 0x4ff   : > { %v9465_v46 = vmax.f32 %v9337_v20, 0.0  ;;  %v9338_v11 = vadd.f32 %v20856_v58, %v18116_v9  ;;  %17718 = vmatprep.subr.bf16.mxu1 %v20931_v60 }
 0x500   : > { %v9543_v26 = vmax.f32 %v9463_v22, %v9467_v62  ;;  %v9468_v44 = vmax.f32 %v9340_v8, 0.0  ;;  %17720 = vmatpush3.bf16.msra.mxu1 %v20931_v60 }
 0x501   : > { %v9541_v37 = vmax.f32 %v9461_v63, %v9465_v46  ;;  %v9466_v4 = vmax.f32 %v9338_v11, 0.0  ;;  %v17075_v45 = vpop.f32.mrb[108].mxu0  ;;  %17722 = vmatprep.subr.bf16.mxu1 %v20927_v34  ;;  %v21830_v46 = vld [vmem:[#allocation71_spill] sm:$0xff] }
 0x502   : > { %v9544_v17 = vmax.f32 %v9464_v42, %v9468_v44  ;;  %v18117_v0 = vadd.f32 %v17075_v45, %v21826_v19  ;;  %v9019_v33 = vpop.f32.mrb[109].mxu0  ;;  %v21831_v45 = vld [vmem:[#allocation72_spill] sm:$0xff] }
 0x503   : > { %v9542_v25 = vmax.f32 %v9462_v40, %v9466_v4  ;;  %v18118_v13 = vadd.f32 %v9019_v33, %v21827_v59  ;;  %v17076_v3 = vpop.f32.mrb[110].mxu0 }
 0x504   : > { %v9343_v7 = vadd.f32 %v20856_v58, %v18117_v0  ;;  %v18119_v22 = vadd.f32 %v17076_v3, %v21828_v29  ;;  %v9022_v57 = vpop.f32.mrb[111].mxu0  ;;  %17724 = vmatpush3.bf16.msra.mxu1 %v20927_v34  ;;  %v21833_v29 = vld [vmem:[#allocation74_spill] sm:$0xff] }
 0x505   : > { %v9341_v63 = vadd.f32 %v20856_v58, %v18118_v13  ;;  %v18120_v18 = vadd.f32 %v9022_v57, %v21829_v15 }
 0x506   : > { %v9471_v27 = vmax.f32 %v9343_v7, 0.0  ;;  %v9344_v42 = vadd.f32 %v20856_v58, %v18119_v22 }
 0x507   : > { %v9469_v14 = vmax.f32 %v9341_v63, 0.0  ;;  %v9342_v40 = vadd.f32 %v20856_v58, %v18120_v18  ;;  %17234 = vmatmul.mubr.msk.f32.vlgmr.msra.gmra.mrb[152].mxu1 %vm9632_vm3, %v20598_v56 }
 0x508   : > { %v9607_v2 = vmax.f32 %v9543_v26, %v9471_v27  ;;  %v9472_v20 = vmax.f32 %v9344_v42, 0.0  ;;  %17244 = vmatprep.mubr.msk.f32.mxu1 %vm9632_vm3, %v20488_v38  ;;  %v21832_v26 = vld [vmem:[#allocation73_spill] sm:$0xff] }
 0x509   : > { %v9605_v49 = vmax.f32 %v9541_v37, %v9469_v14  ;;  %v9470_v9 = vmax.f32 %v9342_v40, 0.0  ;;  %v17079_v62 = vpop.f32.mrb[112].mxu0 }
 0x50a   : > { %v9608_v8 = vmax.f32 %v9544_v17, %v9472_v20  ;;  %v18121_v11 = vadd.f32 %v17079_v62, %v21830_v46  ;;  %v9035_v44 = vpop.f32.mrb[113].mxu0  ;;  %v21834_v62 = vld [vmem:[#allocation75_spill] sm:$0xff] }
 0x50b   : > { %v9606_v4 = vmax.f32 %v9542_v25, %v9470_v9  ;;  %v18122_v19 = vadd.f32 %v9035_v44, %v21831_v45  ;;  %v17080_v0 = vpop.f32.mrb[114].mxu0  ;;  %v21835_v44 = vld [vmem:[#allocation76_spill] sm:$0xff] }
 0x50c   : > { %v20955_v33 = vpack.c.bf16 %v9608_v8, %v9607_v2  ;;  %v9347_v59 = vadd.f32 %v20856_v58, %v18121_v11  ;;  %v18123_v13 = vadd.f32 %v17080_v0, %v21832_v26  ;;  %v9038_v3 = vpop.f32.mrb[115].mxu0  ;;  %v21836_v0 = vld [vmem:[#allocation77_spill] sm:$0xff]  ;;  %v21837_v26 = vld [vmem:[#allocation78_spill] sm:$0xff] }
 0x50d   : > { %v20959_v7 = vpack.c.bf16 %v9606_v4, %v9605_v49  ;;  %v9345_v37 = vadd.f32 %v20856_v58, %v18122_v19  ;;  %v18124_v17 = vadd.f32 %v9038_v3, %v21833_v29 }
 0x50e   : > { %v9475_v22 = vmax.f32 %v9347_v59, 0.0  ;;  %v9348_v57 = vadd.f32 %v20856_v58, %v18123_v13 }
 0x50f   : > { %v9473_v25 = vmax.f32 %v9345_v37, 0.0  ;;  %v9346_v63 = vadd.f32 %v20856_v58, %v18124_v17  ;;  %17726 = vmatprep.subr.bf16.mxu1 %v20959_v7 }
 0x510   : > { %v9547_v15 = vmax.f32 %v9471_v27, %v9475_v22  ;;  %v9476_v18 = vmax.f32 %v9348_v57, 0.0  ;;  %17728 = vmatpush3.bf16.msra.mxu1 %v20959_v7 }
 0x511   : > { %v9545_v42 = vmax.f32 %v9469_v14, %v9473_v25  ;;  %v9474_v40 = vmax.f32 %v9346_v63, 0.0  ;;  %v17083_v2 = vpop.f32.mrb[116].mxu0  ;;  %17730 = vmatprep.subr.bf16.mxu1 %v20955_v33 }
 0x512   : > { %v9548_v49 = vmax.f32 %v9472_v20, %v9476_v18  ;;  %v18125_v8 = vadd.f32 %v17083_v2, %v21834_v62  ;;  %v9051_v46 = vpop.f32.mrb[117].mxu0  ;;  %v21838_v18 = vld [vmem:[#allocation79_spill] sm:$0xff] }
 0x513   : > { %v9546_v11 = vmax.f32 %v9470_v9, %v9474_v40  ;;  %v18126_v4 = vadd.f32 %v9051_v46, %v21835_v44  ;;  %v17084_v45 = vpop.f32.mrb[118].mxu0  ;;  %v21839_v46 = vld [vmem:[#allocation80_spill] sm:$0xff] }
 0x514   : > { %v9351_v19 = vadd.f32 %v20856_v58, %v18125_v8  ;;  %v18127_v27 = vadd.f32 %v17084_v45, %v21836_v0  ;;  %v9054_v59 = vpop.f32.mrb[119].mxu0  ;;  %17732 = vmatpush3.bf16.msra.mxu1 %v20955_v33  ;;  %v21840_v0 = vld [vmem:[#allocation81_spill] sm:$0xff] }
 0x515   : > { %v9349_v14 = vadd.f32 %v20856_v58, %v18126_v4  ;;  %v18128_v13 = vadd.f32 %v9054_v59, %v21837_v26 }
 0x516   : > { %v9479_v3 = vmax.f32 %v9351_v19, 0.0  ;;  %v9352_v20 = vadd.f32 %v20856_v58, %v18127_v27 }
 0x517   : > { %v9477_v37 = vmax.f32 %v9349_v14, 0.0  ;;  %v9350_v9 = vadd.f32 %v20856_v58, %v18128_v13  ;;  %17245 = vmatmul.mubr.msk.f32.vlgmr.msra.gmra.mrb[154].mxu1 %vm9632_vm3, %v20598_v56  ;;  %v21841_v14 = vld [vmem:[#allocation82_spill] sm:$0xff] }
 0x518   : > { %v9611_v29 = vmax.f32 %v9547_v15, %v9479_v3  ;;  %v9480_v17 = vmax.f32 %v9352_v20, 0.0  ;;  %17255 = vmatprep.mubr.msk.f32.mxu1 %vm9632_vm3, %v20488_v38 }
 0x519   : > { %v9609_v22 = vmax.f32 %v9545_v42, %v9477_v37  ;;  %v9478_v57 = vmax.f32 %v9350_v9, 0.0  ;;  %v17087_v25 = vpop.f32.mrb[120].mxu0 }
 0x51a   : > { %v9612_v63 = vmax.f32 %v9548_v49, %v9480_v17  ;;  %v18129_v40 = vadd.f32 %v17087_v25, %v21838_v18  ;;  %v9067_v2 = vpop.f32.mrb[121].mxu0  ;;  %v20982_v62 = vpop.f32.mrb[128].mxu1 }
 0x51b   : > { %v9610_v8 = vmax.f32 %v9546_v11, %v9478_v57  ;;  %v18130_v44 = vadd.f32 %v9067_v2, %v21839_v46  ;;  %v17088_v4 = vpop.f32.mrb[122].mxu0  ;;  %v20985_v45 = vpop.f32.mrb[129].mxu1  ;;  %v21842_v2 = vld [vmem:[#allocation83_spill] sm:$0xff] }
 0x51c   : > { %v20987_v15 = vpack.c.bf16 %v9612_v63, %v9611_v29  ;;  %v9355_v19 = vadd.f32 %v20856_v58, %v18129_v40  ;;  %v18131_v42 = vadd.f32 %v17088_v4, %v21840_v0  ;;  %v9070_v27 = vpop.f32.mrb[123].mxu0  ;;  %v21843_v4 = vld [vmem:[#allocation84_spill] sm:$0xff] }
 0x51d   : > { %v20991_v59 = vpack.c.bf16 %v9610_v8, %v9609_v22  ;;  %v9353_v49 = vadd.f32 %v20856_v58, %v18130_v44  ;;  %v18132_v26 = vadd.f32 %v9070_v27, %v21841_v14  ;;  %v21844_v27 = vld [vmem:[#allocation85_spill] sm:$0xff]  ;;  %v21845_v14 = vld [vmem:[#allocation86_spill] sm:$0xff] }
 0x51e   : > { %v9483_v13 = vmax.f32 %v9355_v19, 0.0  ;;  %v9356_v11 = vadd.f32 %v20856_v58, %v18131_v42 }
 0x51f   : > { %v9481_v20 = vmax.f32 %v9353_v49, 0.0  ;;  %v9354_v9 = vadd.f32 %v20856_v58, %v18132_v26  ;;  %17734 = vmatprep.subr.bf16.mxu1 %v20991_v59 }
 0x520   : > { %v9551_v29 = vmax.f32 %v9479_v3, %v9483_v13  ;;  %v9484_v25 = vmax.f32 %v9356_v11, 0.0  ;;  %17736 = vmatpush3.bf16.msra.mxu1 %v20991_v59 }
 0x521   : > { %v9549_v63 = vmax.f32 %v9477_v37, %v9481_v20  ;;  %v9482_v18 = vmax.f32 %v9354_v9, 0.0  ;;  %v17091_v22 = vpop.f32.mrb[124].mxu0  ;;  %17738 = vmatprep.subr.bf16.mxu1 %v20987_v15 }
 0x522   : > { %v9552_v40 = vmax.f32 %v9480_v17, %v9484_v25  ;;  %v18133_v8 = vadd.f32 %v17091_v22, %v21842_v2  ;;  %v9083_v46 = vpop.f32.mrb[125].mxu0 }
 0x523   : > { %v9550_v44 = vmax.f32 %v9478_v57, %v9482_v18  ;;  %v18134_v19 = vadd.f32 %v9083_v46, %v21843_v4  ;;  %v17092_v0 = vpop.f32.mrb[126].mxu0 }
 0x524   : > { %v9359_v42 = vadd.f32 %v20856_v58, %v18133_v8  ;;  %v18135_v3 = vadd.f32 %v17092_v0, %v21844_v27  ;;  %v9086_v49 = vpop.f32.mrb[127].mxu0  ;;  %17740 = vmatpush3.bf16.msra.mxu1 %v20987_v15 }
 0x525   : > { %v9357_v37 = vadd.f32 %v20856_v58, %v18134_v19  ;;  %v18136_v26 = vadd.f32 %v9086_v49, %v21845_v14 }
 0x526   : > { %v9487_v13 = vmax.f32 %v9359_v42, 0.0  ;;  %v9360_v17 = vadd.f32 %v20856_v58, %v18135_v3 }
 0x527   : > { %v9485_v11 = vmax.f32 %v9357_v37, 0.0  ;;  %v9358_v57 = vadd.f32 %v20856_v58, %v18136_v26  ;;  %17256 = vmatmul.mubr.msk.f32.vlgmr.msra.gmra.mrb[156].mxu1 %vm9632_vm3, %v20598_v56  ;;  %v21846_v58 = vld [vmem:[#allocation87_spill] sm:$0xff] }
 0x528   : > { %v9615_v20 = vmax.f32 %v9551_v29, %v9487_v13  ;;  %v9488_v9 = vmax.f32 %v9360_v17, 0.0  ;;  %17266 = vmatprep.mubr.msk.f32.mxu1 %vm9632_vm3, %v20488_v38  ;;  %vm10839_vm5 = vcmp.eq.s32.totalorder %v20482_v31, %v21846_v58 }
 0x529   : > { %v9613_v25 = vmax.f32 %v9549_v63, %v9485_v11  ;;  %v9486_v18 = vmax.f32 %v9358_v57, 0.0  ;;  %v21029_v38 = vsel %vm10839_vm5, 1.0, %v21760_v48 }
 0x52a   : > { %v9616_v22 = vmax.f32 %v9552_v40, %v9488_v9  ;;  %v21013_v2 = vpop.f32.mrb[130].mxu1  ;;  %v21045_v40 = vsel %vm10840_vm6, 1.0, %v21760_v48 }
 0x52b   : > { %v9614_v8 = vmax.f32 %v9550_v44, %v9486_v18  ;;  %v21015_v46 = vpop.f32.mrb[131].mxu1 }
 0x52c   : > { %v21017_v4 = vpack.c.bf16 %v9616_v22, %v9615_v20  ;;  %v12083_v20 = vadd.s32 1, %v21846_v58 }
 0x52d   : > { %v21019_v19 = vpack.c.bf16 %v9614_v8, %v9613_v25  ;;  %v12084_v25 = vadd.s32 1, %v20567_v12 }
 0x52e   : > { %vm12085_vm7 = vcmp.eq.s32.totalorder %v20482_v31, %v12083_v20 }
 0x52f   : > { %17742 = vmatprep.subr.bf16.mxu1 %v21019_v19  ;;  %v21199_v9 = vsel %vm12085_vm7, 1.0, %v21760_v48  ;;  %vm12086_vm8 = vcmp.eq.s32.totalorder %v20482_v31, %v12084_v25 }
 0x530   : > { %17744 = vmatpush3.bf16.msra.mxu1 %v21019_v19  ;;  %v21215_v12 = vsel %vm12086_vm8, 1.0, %v21760_v48 }
 0x531   : > { %17746 = vmatprep.subr.bf16.mxu1 %v21017_v4 }
 0x534   : > { %17748 = vmatpush3.bf16.msra.mxu1 %v21017_v4 }
 0x535   : > { %17750 = vmatprep.subr.bf16.mxu1 %v20577_v41 }
 0x537   : > { %17267 = vmatmul.mubr.msk.f32.vlgmr.msra.gmra.mrb[158].mxu1 %vm9632_vm3, %v20598_v56 }
 0x538   : > { %17752 = vmatpush3.bf16.msra.mxu1 %v20577_v41  ;;  %17277 = vmatprep.mubr.msk.f32.mxu1 %vm9632_vm3, %v21029_v38 }
 0x539   : > { %17754 = vmatprep.subr.bf16.mxu1 %v20573_v1 }
 0x53a   : > { %v21039_v29 = vpop.f32.mrb[132].mxu1 }
 0x53b   : > { %v21041_v63 = vpop.f32.mrb[133].mxu1 }
 0x53c   : > { %17756 = vmatpush3.bf16.msra.mxu1 %v20573_v1 }
 0x53d   : > { %17758 = vmatprep.subr.bf16.mxu1 %v20617_v32 }
 0x53f   : > { %17278 = vmatmul.mubr.msk.f32.vlgmr.msra.gmra.mrb[160].mxu1 %vm9632_vm3, %v21045_v40 }
 0x540   : > { %17760 = vmatpush3.bf16.msra.mxu1 %v20617_v32  ;;  %17288 = vmatprep.mubr.msk.f32.mxu1 %vm9632_vm3, %v21029_v38 }
 0x541   : > { %17762 = vmatprep.subr.bf16.mxu1 %v20613_v36 }
 0x544   : > { %17764 = vmatpush3.bf16.msra.mxu1 %v20613_v36 }
 0x545   : > { %17766 = vmatprep.subr.bf16.mxu1 %v20646_v47 }
 0x547   : > { %17289 = vmatmul.mubr.msk.f32.vlgmr.msra.gmra.mrb[162].mxu1 %vm9632_vm3, %v21045_v40 }
 0x548   : > { %17768 = vmatpush3.bf16.msra.mxu1 %v20646_v47  ;;  %17299 = vmatprep.mubr.msk.f32.mxu1 %vm9632_vm3, %v21029_v38 }
 0x549   : > { %17770 = vmatprep.subr.bf16.mxu1 %v20642_v35 }
 0x54a   : > { %v21062_v56 = vpop.f32.mrb[134].mxu1 }
 0x54b   : > { %v21064_v44 = vpop.f32.mrb[135].mxu1 }
 0x54c   : > { %17772 = vmatpush3.bf16.msra.mxu1 %v20642_v35 }
 0x54d   : > { %17774 = vmatprep.subr.bf16.mxu1 %v20674_v16 }
 0x54f   : > { %17300 = vmatmul.mubr.msk.f32.vlgmr.msra.gmra.mrb[164].mxu1 %vm9632_vm3, %v21045_v40 }
 0x550   : > { %17776 = vmatpush3.bf16.msra.mxu1 %v20674_v16  ;;  %17310 = vmatprep.mubr.msk.f32.mxu1 %vm9632_vm3, %v21029_v38 }
 0x551   : > { %17778 = vmatprep.subr.bf16.mxu1 %v20670_v55 }
 0x554   : > { %17780 = vmatpush3.bf16.msra.mxu1 %v20670_v55 }
 0x555   : > { %17782 = vmatprep.subr.bf16.mxu1 %v20702_v43 }
 0x557   : > { %17311 = vmatmul.mubr.msk.f32.vlgmr.msra.gmra.mrb[166].mxu1 %vm9632_vm3, %v21045_v40 }
 0x558   : > { %17784 = vmatpush3.bf16.msra.mxu1 %v20702_v43  ;;  %17321 = vmatprep.mubr.msk.f32.mxu1 %vm9632_vm3, %v21029_v38 }
 0x559   : > { %17786 = vmatprep.subr.bf16.mxu1 %v20698_v50 }
 0x55a   : > { %v21082_v0 = vpop.f32.mrb[136].mxu1 }
 0x55b   : > { %v21084_v42 = vpop.f32.mrb[137].mxu1 }
 0x55c   : > { %17788 = vmatpush3.bf16.msra.mxu1 %v20698_v50 }
 0x55d   : > { %17790 = vmatprep.subr.bf16.mxu1 %v20730_v28 }
 0x55f   : > { %17322 = vmatmul.mubr.msk.f32.vlgmr.msra.gmra.mrb[168].mxu1 %vm9632_vm3, %v21045_v40 }
 0x560   : > { %17792 = vmatpush3.bf16.msra.mxu1 %v20730_v28  ;;  %17332 = vmatprep.mubr.msk.f32.mxu1 %vm9632_vm3, %v21029_v38 }
 0x561   : > { %17794 = vmatprep.subr.bf16.mxu1 %v20726_v39 }
 0x564   : > { %17796 = vmatpush3.bf16.msra.mxu1 %v20726_v39 }
 0x565   : > { %17798 = vmatprep.subr.bf16.mxu1 %v20758_v53 }
 0x567   : > { %17333 = vmatmul.mubr.msk.f32.vlgmr.msra.gmra.mrb[170].mxu1 %vm9632_vm3, %v21045_v40 }
 0x568   : > { %17800 = vmatpush3.bf16.msra.mxu1 %v20758_v53  ;;  %17343 = vmatprep.mubr.msk.f32.mxu1 %vm9632_vm3, %v21029_v38 }
 0x569   : > { %17802 = vmatprep.subr.bf16.mxu1 %v20754_v51 }
 0x56a   : > { %v21102_v27 = vpop.f32.mrb[138].mxu1 }
 0x56b   : > { %v21104_v3 = vpop.f32.mrb[139].mxu1 }
 0x56c   : > { %17804 = vmatpush3.bf16.msra.mxu1 %v20754_v51 }
 0x56d   : > { %17806 = vmatprep.subr.bf16.mxu1 %v20786_v61 }
 0x56f   : > { %17344 = vmatmul.mubr.msk.f32.vlgmr.msra.gmra.mrb[172].mxu1 %vm9632_vm3, %v21045_v40 }
 0x570   : > { %17808 = vmatpush3.bf16.msra.mxu1 %v20786_v61  ;;  %17354 = vmatprep.mubr.msk.f32.mxu1 %vm9632_vm3, %v21029_v38 }
 0x571   : > { %17810 = vmatprep.subr.bf16.mxu1 %v20782_v24 }
 0x574   : > { %17812 = vmatpush3.bf16.msra.mxu1 %v20782_v24 }
 0x575   : > { %17814 = vmatprep.subr.bf16.mxu1 %v20814_v21 }
 0x577   : > { %17355 = vmatmul.mubr.msk.f32.vlgmr.msra.gmra.mrb[174].mxu1 %vm9632_vm3, %v21045_v40 }
 0x578   : > { %17816 = vmatpush3.bf16.msra.mxu1 %v20814_v21  ;;  %17365 = vmatprep.mubr.msk.f32.mxu1 %vm9632_vm3, %v21029_v38 }
 0x579   : > { %17818 = vmatprep.subr.bf16.mxu1 %v20810_v54 }
 0x57a   : > { %v21122_v49 = vpop.f32.mrb[140].mxu1 }
 0x57b   : > { %v21124_v37 = vpop.f32.mrb[141].mxu1 }
 0x57c   : > { %17820 = vmatpush3.bf16.msra.mxu1 %v20810_v54 }
 0x57d   : > { %17822 = vmatprep.subr.bf16.mxu1 %v20842_v5 }
 0x57f   : > { %17366 = vmatmul.mubr.msk.f32.vlgmr.msra.gmra.mrb[176].mxu1 %vm9632_vm3, %v21045_v40 }
 0x580   : > { %17824 = vmatpush3.bf16.msra.mxu1 %v20842_v5  ;;  %17376 = vmatprep.mubr.msk.f32.mxu1 %vm9632_vm3, %v21029_v38 }
 0x581   : > { %17826 = vmatprep.subr.bf16.mxu1 %v20838_v23 }
 0x584   : > { %17828 = vmatpush3.bf16.msra.mxu1 %v20838_v23 }
 0x585   : > { %17830 = vmatprep.subr.bf16.mxu1 %v20875_v6 }
 0x587   : > { %17377 = vmatmul.mubr.msk.f32.vlgmr.msra.gmra.mrb[178].mxu1 %vm9632_vm3, %v21045_v40 }
 0x588   : > { %17832 = vmatpush3.bf16.msra.mxu1 %v20875_v6  ;;  %17387 = vmatprep.mubr.msk.f32.mxu1 %vm9632_vm3, %v21029_v38 }
 0x589   : > { %17834 = vmatprep.subr.bf16.mxu1 %v20871_v10 }
 0x58a   : > { %v21142_v14 = vpop.f32.mrb[142].mxu1 }
 0x58b   : > { %v21144_v26 = vpop.f32.mrb[143].mxu1 }
 0x58c   : > { %17836 = vmatpush3.bf16.msra.mxu1 %v20871_v10 }
 0x58d   : > { %17838 = vmatprep.subr.bf16.mxu1 %v20903_v30 }
 0x58f   : > { %17388 = vmatmul.mubr.msk.f32.vlgmr.msra.gmra.mrb[180].mxu1 %vm9632_vm3, %v21045_v40 }
 0x590   : > { %17840 = vmatpush3.bf16.msra.mxu1 %v20903_v30  ;;  %17398 = vmatprep.mubr.msk.f32.mxu1 %vm9632_vm3, %v21029_v38 }
 0x591   : > { %17842 = vmatprep.subr.bf16.mxu1 %v20899_v52 }
 0x594   : > { %17844 = vmatpush3.bf16.msra.mxu1 %v20899_v52 }
 0x595   : > { %17846 = vmatprep.subr.bf16.mxu1 %v20931_v60 }
 0x597   : > { %17399 = vmatmul.mubr.msk.f32.vlgmr.msra.gmra.mrb[182].mxu1 %vm9632_vm3, %v21045_v40 }
 0x598   : > { %17848 = vmatpush3.bf16.msra.mxu1 %v20931_v60  ;;  %17409 = vmatprep.mubr.msk.f32.mxu1 %vm9632_vm3, %v21029_v38 }
 0x599   : > { %17850 = vmatprep.subr.bf16.mxu1 %v20927_v34 }
 0x59a   : > { %v21162_v13 = vpop.f32.mrb[144].mxu1 }
 0x59b   : > { %v21164_v17 = vpop.f32.mrb[145].mxu1 }
 0x59c   : > { %17852 = vmatpush3.bf16.msra.mxu1 %v20927_v34 }
 0x59d   : > { %17854 = vmatprep.subr.bf16.mxu1 %v20959_v7 }
 0x59f   : > { %17410 = vmatmul.mubr.msk.f32.vlgmr.msra.gmra.mrb[184].mxu1 %vm9632_vm3, %v21045_v40 }
 0x5a0   : > { %17856 = vmatpush3.bf16.msra.mxu1 %v20959_v7  ;;  %17420 = vmatprep.mubr.msk.f32.mxu1 %vm9632_vm3, %v21029_v38 }
 0x5a1   : > { %17858 = vmatprep.subr.bf16.mxu1 %v20955_v33 }
 0x5a4   : > { %17860 = vmatpush3.bf16.msra.mxu1 %v20955_v33 }
 0x5a5   : > { %17862 = vmatprep.subr.bf16.mxu1 %v20991_v59 }
 0x5a7   : > { %17421 = vmatmul.mubr.msk.f32.vlgmr.msra.gmra.mrb[186].mxu1 %vm9632_vm3, %v21045_v40 }
 0x5a8   : > { %17864 = vmatpush3.bf16.msra.mxu1 %v20991_v59  ;;  %17431 = vmatprep.mubr.msk.f32.mxu1 %vm9632_vm3, %v21029_v38 }
 0x5a9   : > { %17866 = vmatprep.subr.bf16.mxu1 %v20987_v15 }
 0x5aa   : > { %v21182_v11 = vpop.f32.mrb[146].mxu1 }
 0x5ab   : > { %v21184_v57 = vpop.f32.mrb[147].mxu1 }
 0x5ac   : > { %17868 = vmatpush3.bf16.msra.mxu1 %v20987_v15 }
 0x5ad   : > { %17870 = vmatprep.subr.bf16.mxu1 %v21019_v19 }
 0x5af   : > { %17432 = vmatmul.mubr.msk.f32.vlgmr.msra.gmra.mrb[188].mxu1 %vm9632_vm3, %v21045_v40 }
 0x5b0   : > { %17872 = vmatpush3.bf16.msra.mxu1 %v21019_v19  ;;  %17442 = vmatprep.mubr.msk.f32.mxu1 %vm9632_vm3, %v21029_v38 }
 0x5b1   : > { %17874 = vmatprep.subr.bf16.mxu1 %v21017_v4 }
 0x5b4   : > { %17876 = vmatpush3.bf16.msra.mxu1 %v21017_v4 }
 0x5b5   : > { %17878 = vmatprep.subr.bf16.mxu1 %v20577_v41 }
 0x5b7   : > { %17443 = vmatmul.mubr.msk.f32.vlgmr.msra.gmra.mrb[190].mxu1 %vm9632_vm3, %v21045_v40 }
 0x5b8   : > { %17880 = vmatpush3.bf16.msra.mxu1 %v20577_v41  ;;  %17453 = vmatprep.mubr.msk.f32.mxu1 %vm9632_vm3, %v21199_v9 }
 0x5b9   : > { %17882 = vmatprep.subr.bf16.mxu1 %v20573_v1 }
 0x5ba   : > { %v21209_v18 = vpop.f32.mrb[148].mxu1 }
 0x5bb   : > { %v21211_v22 = vpop.f32.mrb[149].mxu1 }
 0x5bc   : > { %17884 = vmatpush3.bf16.msra.mxu1 %v20573_v1 }
 0x5bd   : > { %17886 = vmatprep.subr.bf16.mxu1 %v20617_v32 }
 0x5bf   : > { %17454 = vmatmul.mubr.msk.f32.vlgmr.msra.gmra.mrb[192].mxu1 %vm9632_vm3, %v21215_v12 }
 0x5c0   : > { %17888 = vmatpush3.bf16.msra.mxu1 %v20617_v32  ;;  %17464 = vmatprep.mubr.msk.f32.mxu1 %vm9632_vm3, %v21199_v9 }
 0x5c1   : > { %17890 = vmatprep.subr.bf16.mxu1 %v20613_v36 }
 0x5c4   : > { %17892 = vmatpush3.bf16.msra.mxu1 %v20613_v36 }
 0x5c5   : > { %17894 = vmatprep.subr.bf16.mxu1 %v20646_v47 }
 0x5c7   : > { %17465 = vmatmul.mubr.msk.f32.vlgmr.msra.gmra.mrb[194].mxu1 %vm9632_vm3, %v21215_v12 }
 0x5c8   : > { %17896 = vmatpush3.bf16.msra.mxu1 %v20646_v47  ;;  %17475 = vmatprep.mubr.msk.f32.mxu1 %vm9632_vm3, %v21199_v9 }
 0x5c9   : > { %17898 = vmatprep.subr.bf16.mxu1 %v20642_v35 }
 0x5ca   : > { %v21232_v1 = vpop.f32.mrb[150].mxu1 }
 0x5cb   : > { %v21234_v31 = vpop.f32.mrb[151].mxu1 }
 0x5cc   : > { %17900 = vmatpush3.bf16.msra.mxu1 %v20642_v35 }
 0x5cd   : > { %17902 = vmatprep.subr.bf16.mxu1 %v20674_v16 }
 0x5cf   : > { %17476 = vmatmul.mubr.msk.f32.vlgmr.msra.gmra.mrb[196].mxu1 %vm9632_vm3, %v21215_v12 }
 0x5d0   : > { %17904 = vmatpush3.bf16.msra.mxu1 %v20674_v16  ;;  %17486 = vmatprep.mubr.msk.f32.mxu1 %vm9632_vm3, %v21199_v9 }
 0x5d1   : > { %17906 = vmatprep.subr.bf16.mxu1 %v20670_v55 }
 0x5d4   : > { %17908 = vmatpush3.bf16.msra.mxu1 %v20670_v55 }
 0x5d5   : > { %17910 = vmatprep.subr.bf16.mxu1 %v20702_v43 }
 0x5d7   : > { %17487 = vmatmul.mubr.msk.f32.vlgmr.msra.gmra.mrb[198].mxu1 %vm9632_vm3, %v21215_v12 }
 0x5d8   : > { %17912 = vmatpush3.bf16.msra.mxu1 %v20702_v43  ;;  %17497 = vmatprep.mubr.msk.f32.mxu1 %vm9632_vm3, %v21199_v9 }
 0x5d9   : > { %17914 = vmatprep.subr.bf16.mxu1 %v20698_v50 }
 0x5da   : > { %v21252_v41 = vpop.f32.mrb[152].mxu1 }
 0x5db   : > { %v21254_v48 = vpop.f32.mrb[153].mxu1 }
 0x5dc   : > { %17916 = vmatpush3.bf16.msra.mxu1 %v20698_v50 }
 0x5dd   : > { %17918 = vmatprep.subr.bf16.mxu1 %v20730_v28 }
 0x5df   : > { %17498 = vmatmul.mubr.msk.f32.vlgmr.msra.gmra.mrb[200].mxu1 %vm9632_vm3, %v21215_v12 }
 0x5e0   : > { %17920 = vmatpush3.bf16.msra.mxu1 %v20730_v28  ;;  %17508 = vmatprep.mubr.msk.f32.mxu1 %vm9632_vm3, %v21199_v9 }
 0x5e1   : > { %17922 = vmatprep.subr.bf16.mxu1 %v20726_v39 }
 0x5e4   : > { %17924 = vmatpush3.bf16.msra.mxu1 %v20726_v39 }
 0x5e5   : > { %17926 = vmatprep.subr.bf16.mxu1 %v20758_v53 }
 0x5e7   : > { %17509 = vmatmul.mubr.msk.f32.vlgmr.msra.gmra.mrb[202].mxu1 %vm9632_vm3, %v21215_v12 }
 0x5e8   : > { %17928 = vmatpush3.bf16.msra.mxu1 %v20758_v53  ;;  %17519 = vmatprep.mubr.msk.f32.mxu1 %vm9632_vm3, %v21199_v9 }
 0x5e9   : > { %17930 = vmatprep.subr.bf16.mxu1 %v20754_v51 }
 0x5ea   : > { %v21272_v36 = vpop.f32.mrb[154].mxu1 }
 0x5eb   : > { %v21274_v32 = vpop.f32.mrb[155].mxu1 }
 0x5ec   : > { %17932 = vmatpush3.bf16.msra.mxu1 %v20754_v51 }
 0x5ed   : > { %17934 = vmatprep.subr.bf16.mxu1 %v20786_v61 }
 0x5ef   : > { %17520 = vmatmul.mubr.msk.f32.vlgmr.msra.gmra.mrb[204].mxu1 %vm9632_vm3, %v21215_v12 }
 0x5f0   : > { %17936 = vmatpush3.bf16.msra.mxu1 %v20786_v61  ;;  %17530 = vmatprep.mubr.msk.f32.mxu1 %vm9632_vm3, %v21199_v9 }
 0x5f1   : > { %17938 = vmatprep.subr.bf16.mxu1 %v20782_v24 }
 0x5f4   : > { %17940 = vmatpush3.bf16.msra.mxu1 %v20782_v24 }
 0x5f5   : > { %17942 = vmatprep.subr.bf16.mxu1 %v20814_v21 }
 0x5f7   : > { %17531 = vmatmul.mubr.msk.f32.vlgmr.msra.gmra.mrb[206].mxu1 %vm9632_vm3, %v21215_v12 }
 0x5f8   : > { %17944 = vmatpush3.bf16.msra.mxu1 %v20814_v21  ;;  %17541 = vmatprep.mubr.msk.f32.mxu1 %vm9632_vm3, %v21199_v9 }
 0x5f9   : > { %17946 = vmatprep.subr.bf16.mxu1 %v20810_v54 }
 0x5fa   : > { %v21292_v35 = vpop.f32.mrb[156].mxu1 }
 0x5fb   : > { %21847 = vst [vmem:[#allocation2_spill] sm:$0xff] %v21292_v35  ;;  %v21294_v47 = vpop.f32.mrb[157].mxu1 }
 0x5fc   : > { %17948 = vmatpush3.bf16.msra.mxu1 %v20810_v54 }
 0x5fd   : > { %17950 = vmatprep.subr.bf16.mxu1 %v20842_v5 }
 0x5ff   : > { %17542 = vmatmul.mubr.msk.f32.vlgmr.msra.gmra.mrb[208].mxu1 %vm9632_vm3, %v21215_v12 }
 0x600   : > { %17952 = vmatpush3.bf16.msra.mxu1 %v20842_v5  ;;  %17552 = vmatprep.mubr.msk.f32.mxu1 %vm9632_vm3, %v21199_v9 }
 0x601   : > { %17954 = vmatprep.subr.bf16.mxu1 %v20838_v23 }
 0x604   : > { %17956 = vmatpush3.bf16.msra.mxu1 %v20838_v23 }
 0x605   : > { %17958 = vmatprep.subr.bf16.mxu1 %v20875_v6 }
 0x607   : > { %17553 = vmatmul.mubr.msk.f32.vlgmr.msra.gmra.mrb[210].mxu1 %vm9632_vm3, %v21215_v12 }
 0x608   : > { %17960 = vmatpush3.bf16.msra.mxu1 %v20875_v6  ;;  %17563 = vmatprep.mubr.msk.f32.mxu1 %vm9632_vm3, %v21199_v9 }
 0x609   : > { %17962 = vmatprep.subr.bf16.mxu1 %v20871_v10 }
 0x60a   : > { %v21312_v55 = vpop.f32.mrb[158].mxu1 }
 0x60b   : > { %v21314_v16 = vpop.f32.mrb[159].mxu1 }
 0x60c   : > { %21848 = vst [vmem:[#allocation3_spill] sm:$0xff] %v21314_v16  ;;  %17964 = vmatpush3.bf16.msra.mxu1 %v20871_v10 }
 0x60d   : > { %17966 = vmatprep.subr.bf16.mxu1 %v20903_v30 }
 0x60f   : > { %17564 = vmatmul.mubr.msk.f32.vlgmr.msra.gmra.mrb[212].mxu1 %vm9632_vm3, %v21215_v12 }
 0x610   : > { %17968 = vmatpush3.bf16.msra.mxu1 %v20903_v30  ;;  %17574 = vmatprep.mubr.msk.f32.mxu1 %vm9632_vm3, %v21199_v9 }
 0x611   : > { %17970 = vmatprep.subr.bf16.mxu1 %v20899_v52 }
 0x612   : > { %v21324_v50 = vpop.f32.mrb[160].mxu1 }
 0x613   : > { %v21328_v39 = vpop.f32.mrb[161].mxu1  ;;  %v21857_v38 = vmax.f32 %v20982_v62, %v21324_v50 }
 0x614   : > { %17972 = vmatpush3.bf16.msra.mxu1 %v20899_v52 }
 0x615   : > { %17974 = vmatprep.subr.bf16.mxu1 %v20931_v60 }
 0x617   : > { %17575 = vmatmul.mubr.msk.f32.vlgmr.msra.gmra.mrb[214].mxu1 %vm9632_vm3, %v21215_v12 }
 0x618   : > { %17976 = vmatpush3.bf16.msra.mxu1 %v20931_v60  ;;  %17585 = vmatprep.mubr.msk.f32.mxu1 %vm9632_vm3, %v21199_v9 }
 0x619   : > { %17978 = vmatprep.subr.bf16.mxu1 %v20927_v34 }
 0x61a   : > { %v21340_v51 = vpop.f32.mrb[162].mxu1 }
 0x61b   : > { %v21344_v24 = vpop.f32.mrb[163].mxu1  ;;  %v21859_v50 = vmax.f32 %v21013_v2, %v21340_v51 }
 0x61c   : > { %17980 = vmatpush3.bf16.msra.mxu1 %v20927_v34  ;;  %v21860_v16 = vmax.f32 %v21015_v46, %v21344_v24 }
 0x61d   : > { %17982 = vmatprep.subr.bf16.mxu1 %v20959_v7 }
 0x61f   : > { %17586 = vmatmul.mubr.msk.f32.vlgmr.msra.gmra.mrb[216].mxu1 %vm9632_vm3, %v21215_v12 }
 0x620   : > { %17984 = vmatpush3.bf16.msra.mxu1 %v20959_v7  ;;  %17596 = vmatprep.mubr.msk.f32.mxu1 %vm9632_vm3, %v21199_v9 }
 0x621   : > { %17986 = vmatprep.subr.bf16.mxu1 %v20955_v33 }
 0x622   : > { %v21356_v54 = vpop.f32.mrb[164].mxu1 }
 0x623   : > { %v21360_v23 = vpop.f32.mrb[165].mxu1 }
 0x624   : > { %17988 = vmatpush3.bf16.msra.mxu1 %v20955_v33  ;;  %v21862_v51 = vmax.f32 %v21041_v63, %v21360_v23 }
 0x625   : > { %17990 = vmatprep.subr.bf16.mxu1 %v20991_v59 }
 0x627   : > { %17597 = vmatmul.mubr.msk.f32.vlgmr.msra.gmra.mrb[218].mxu1 %vm9632_vm3, %v21215_v12 }
 0x628   : > { %17992 = vmatpush3.bf16.msra.mxu1 %v20991_v59  ;;  %17607 = vmatprep.mubr.msk.f32.mxu1 %vm9632_vm3, %v21199_v9 }
 0x629   : > { %17994 = vmatprep.subr.bf16.mxu1 %v20987_v15 }
 0x62a   : > { %v21372_v10 = vpop.f32.mrb[166].mxu1 }
 0x62b   : > { %v21376_v52 = vpop.f32.mrb[167].mxu1  ;;  %v21863_v24 = vmax.f32 %v21062_v56, %v21372_v10 }
 0x62c   : > { %17996 = vmatpush3.bf16.msra.mxu1 %v20987_v15 }
 0x62d   : > { %17998 = vmatprep.subr.bf16.mxu1 %v21019_v19 }
 0x62f   : > { %17608 = vmatmul.mubr.msk.f32.vlgmr.msra.gmra.mrb[220].mxu1 %vm9632_vm3, %v21215_v12 }
 0x630   : > { %18000 = vmatpush3.bf16.msra.mxu1 %v21019_v19  ;;  %17618 = vmatprep.mubr.msk.f32.mxu1 %vm9632_vm3, %v21199_v9 }
 0x631   : > { %18002 = vmatprep.subr.bf16.mxu1 %v21017_v4 }
 0x632   : > { %v21388_v34 = vpop.f32.mrb[168].mxu1 }
 0x633   : > { %v21392_v33 = vpop.f32.mrb[169].mxu1 }
 0x634   : > { %18004 = vmatpush3.bf16.msra.mxu1 %v21017_v4  ;;  %v21866_v10 = vmax.f32 %v21084_v42, %v21392_v33 }
 0x637   : > { %17619 = vmatmul.mubr.msk.f32.vlgmr.msra.gmra.mrb[222].mxu1 %vm9632_vm3, %v21215_v12  ;;  %v21858_v12 = vmax.f32 %v20985_v45, %v21328_v39 }
 0x63a   : > { %v21399_v15 = vpop.f32.mrb[170].mxu1 }
 0x63b   : > { %v21403_v8 = vpop.f32.mrb[171].mxu1 }
 0x642   : > { %v21407_v58 = vpop.f32.mrb[172].mxu1 }
 0x643   : > { %v21411_v40 = vpop.f32.mrb[173].mxu1 }
 0x64a   : > { %v21415_v20 = vpop.f32.mrb[174].mxu1 }
 0x64b   : > { %v21419_v25 = vpop.f32.mrb[175].mxu1 }
 0x652   : > { %v21423_v19 = vpop.f32.mrb[176].mxu1 }
 0x653   : > { %v21427_v59 = vpop.f32.mrb[177].mxu1 }
 0x65a   : > { %v21431_v7 = vpop.f32.mrb[178].mxu1 }
 0x65b   : > { %v21435_v60 = vpop.f32.mrb[179].mxu1 }
 0x662   : > { %v21439_v30 = vpop.f32.mrb[180].mxu1 }
 0x663   : > { %v21443_v6 = vpop.f32.mrb[181].mxu1 }
 0x66a   : > { %v21447_v5 = vpop.f32.mrb[182].mxu1 }
 0x66b   : > { %v21451_v21 = vpop.f32.mrb[183].mxu1 }
 0x66c   : > { %21849 = vst [vmem:[#allocation4_spill] sm:$0xff] %v21451_v21 }
 0x672   : > { %v21455_v61 = vpop.f32.mrb[184].mxu1 }
 0x673   : > { %21850 = vst [vmem:[#allocation5_spill] sm:$0xff] %v21455_v61  ;;  %v21459_v53 = vpop.f32.mrb[185].mxu1 }
 0x674   : > { %21851 = vst [vmem:[#allocation6_spill] sm:$0xff] %v21459_v53 }
 0x67a   : > { %v21463_v28 = vpop.f32.mrb[186].mxu1 }
 0x67b   : > { %21852 = vst [vmem:[#allocation7_spill] sm:$0xff] %v21463_v28  ;;  %v21467_v43 = vpop.f32.mrb[187].mxu1 }
 0x67c   : > { %21853 = vst [vmem:[#allocation8_spill] sm:$0xff] %v21467_v43 }
 0x682   : > { %v21471_v21 = vpop.f32.mrb[188].mxu1 }
 0x683   : > { %21854 = vst [vmem:[#allocation9_spill] sm:$0xff] %v21471_v21  ;;  %v21475_v61 = vpop.f32.mrb[189].mxu1 }
 0x68a   : > { %v21479_v53 = vpop.f32.mrb[190].mxu1 }
 0x68b   : > { %21855 = vst [vmem:[#allocation10_spill] sm:$0xff] %v21479_v53  ;;  %v21483_v28 = vpop.f32.mrb[191].mxu1 }
 0x68c   : > { %21856 = vst [vmem:[#allocation11_spill] sm:$0xff] %v21483_v28 }
 0x692   : > { %v17455_v43 = vpop.f32.mrb[192].mxu1 }
 0x693   : > { %v13298_v21 = vmax.f32 %v21857_v38, %v17455_v43  ;;  %v12163_v35 = vpop.f32.mrb[193].mxu1 }
 0x694   : > { %v13297_v9 = vmax.f32 %v21858_v12, %v12163_v35 }
 0x695   : > { %v15388_v4 = vpack.c.bf16 %v13298_v21, %v13298_v21 }
 0x696   : > { %v15387_v28 = vpack.c.bf16 %v13297_v9, %v13297_v9 }
 0x697   : > { %13459 = vst.msk [vmem:[%s21494_s5 + $0x4] sm:$0xf] %vm13457_vm9, %v15388_v4 }
 0x698   : > { %13458 = vst.msk [vmem:[%s21494_s5] sm:$0xf] %vm13457_vm9, %v15387_v28  ;;  %v21861_v28 = vmax.f32 %v21039_v29, %v21356_v54  ;;  %v21864_v54 = vmax.f32 %v21064_v44, %v21376_v52 }
 0x69a   : > { %v17466_v62 = vpop.f32.mrb[194].mxu1 }
 0x69b   : > { %v13300_v43 = vmax.f32 %v21859_v50, %v17466_v62  ;;  %v12238_v38 = vpop.f32.mrb[195].mxu1  ;;  %v21865_v50 = vmax.f32 %v21082_v0, %v21388_v34  ;;  %v21868_v34 = vmax.f32 %v21104_v3, %v21403_v8 }
 0x69c   : > { %v13299_v53 = vmax.f32 %v21860_v16, %v12238_v38 }
 0x69d   : > { %v15390_v45 = vpack.c.bf16 %v13300_v43, %v13300_v43 }
 0x69e   : > { %v15389_v35 = vpack.c.bf16 %v13299_v53, %v13299_v53 }
 0x69f   : > { %13461 = vst.msk [vmem:[%s21494_s5 + $0xc] sm:$0xf] %vm13457_vm9, %v15390_v45 }
 0x6a0   : > { %13460 = vst.msk [vmem:[%s21494_s5 + $0x8] sm:$0xf] %vm13457_vm9, %v15389_v35  ;;  %v21867_v35 = vmax.f32 %v21102_v27, %v21399_v15  ;;  %v21870_v15 = vmax.f32 %v21124_v37, %v21411_v40 }
 0x6a2   : > { %v17477_v39 = vpop.f32.mrb[196].mxu1 }
 0x6a3   : > { %v13302_v21 = vmax.f32 %v21861_v28, %v17477_v39  ;;  %v12313_v2 = vpop.f32.mrb[197].mxu1 }
 0x6a4   : > { %v13301_v4 = vmax.f32 %v21862_v51, %v12313_v2  ;;  %v21869_v2 = vmax.f32 %v21122_v49, %v21407_v58  ;;  %v21872_v58 = vmax.f32 %v21144_v26, %v21419_v25 }
 0x6a5   : > { %v15392_v46 = vpack.c.bf16 %v13302_v21, %v13302_v21 }
 0x6a6   : > { %v15391_v16 = vpack.c.bf16 %v13301_v4, %v13301_v4 }
 0x6a7   : > { %13463 = vst.msk [vmem:[%s21494_s5 + $0x14] sm:$0xf] %vm13457_vm9, %v15392_v46 }
 0x6a8   : > { %13462 = vst.msk [vmem:[%s21494_s5 + $0x10] sm:$0xf] %vm13457_vm9, %v15391_v16  ;;  %v21871_v16 = vmax.f32 %v21142_v14, %v21415_v20  ;;  %v21874_v20 = vmax.f32 %v21164_v17, %v21427_v59 }
 0x6aa   : > { %v17488_v53 = vpop.f32.mrb[198].mxu1 }
 0x6ab   : > { %v13304_v9 = vmax.f32 %v21863_v24, %v17488_v53  ;;  %v12388_v29 = vpop.f32.mrb[199].mxu1 }
 0x6ac   : > { %v13303_v12 = vmax.f32 %v21864_v54, %v12388_v29  ;;  %v21873_v29 = vmax.f32 %v21162_v13, %v21423_v19  ;;  %v21876_v19 = vmax.f32 %v21184_v57, %v21435_v60 }
 0x6ad   : > { %v15394_v63 = vpack.c.bf16 %v13304_v9, %v13304_v9 }
 0x6ae   : > { %v15393_v23 = vpack.c.bf16 %v13303_v12, %v13303_v12 }
 0x6af   : > { %13465 = vst.msk [vmem:[%s21494_s5 + $0x1c] sm:$0xf] %vm13457_vm9, %v15394_v63 }
 0x6b0   : > { %13464 = vst.msk [vmem:[%s21494_s5 + $0x18] sm:$0xf] %vm13457_vm9, %v15393_v23  ;;  %v21875_v23 = vmax.f32 %v21182_v11, %v21431_v7  ;;  %v21878_v7 = vmax.f32 %v21211_v22, %v21443_v6 }
 0x6b2   : > { %v17499_v62 = vpop.f32.mrb[200].mxu1 }
 0x6b3   : > { %v13306_v43 = vmax.f32 %v21865_v50, %v17499_v62  ;;  %v12463_v56 = vpop.f32.mrb[201].mxu1 }
 0x6b4   : > { %v13305_v38 = vmax.f32 %v21866_v10, %v12463_v56  ;;  %v21877_v56 = vmax.f32 %v21209_v18, %v21439_v30  ;;  %v21880_v30 = vld [vmem:[#allocation4_spill] sm:$0xff] }
 0x6b5   : > { %v15396_v44 = vpack.c.bf16 %v13306_v43, %v13306_v43 }
 0x6b6   : > { %v15395_v52 = vpack.c.bf16 %v13305_v38, %v13305_v38 }
 0x6b7   : > { %13467 = vst.msk [vmem:[%s21494_s5 + $0x24] sm:$0xf] %vm13457_vm9, %v15396_v44 }
 0x6b8   : > { %13466 = vst.msk [vmem:[%s21494_s5 + $0x20] sm:$0xf] %vm13457_vm9, %v15395_v52  ;;  %v21879_v52 = vmax.f32 %v21232_v1, %v21447_v5  ;;  %v21884_v5 = vld [vmem:[#allocation6_spill] sm:$0xff] }
 0x6ba   : > { %v17510_v45 = vpop.f32.mrb[202].mxu1 }
 0x6bb   : > { %v13308_v39 = vmax.f32 %v21867_v35, %v17510_v45  ;;  %v12538_v0 = vpop.f32.mrb[203].mxu1  ;;  %v21881_v35 = vmax.f32 %v21234_v31, %v21880_v30 }
 0x6bc   : > { %v13307_v28 = vmax.f32 %v21868_v34, %v12538_v0  ;;  %v21882_v34 = vld [vmem:[#allocation5_spill] sm:$0xff] }
 0x6bd   : > { %v15398_v42 = vpack.c.bf16 %v13308_v39, %v13308_v39 }
 0x6be   : > { %v15397_v33 = vpack.c.bf16 %v13307_v28, %v13307_v28  ;;  %v21883_v28 = vmax.f32 %v21252_v41, %v21882_v34 }
 0x6bf   : > { %13469 = vst.msk [vmem:[%s21494_s5 + $0x2c] sm:$0xf] %vm13457_vm9, %v15398_v42 }
 0x6c0   : > { %13468 = vst.msk [vmem:[%s21494_s5 + $0x28] sm:$0xf] %vm13457_vm9, %v15397_v33  ;;  %v21885_v33 = vmax.f32 %v21254_v48, %v21884_v5 }
 0x6c2   : > { %v17521_v21 = vpop.f32.mrb[204].mxu1 }
 0x6c3   : > { %v13310_v51 = vmax.f32 %v21869_v2, %v17521_v21  ;;  %v12613_v27 = vpop.f32.mrb[205].mxu1 }
 0x6c4   : > { %v13309_v4 = vmax.f32 %v21870_v15, %v12613_v27  ;;  %v21886_v27 = vld [vmem:[#allocation7_spill] sm:$0xff] }
 0x6c5   : > { %v15400_v3 = vpack.c.bf16 %v13310_v51, %v13310_v51  ;;  %v21887_v15 = vmax.f32 %v21272_v36, %v21886_v27 }
 0x6c6   : > { %v15399_v8 = vpack.c.bf16 %v13309_v4, %v13309_v4 }
 0x6c7   : > { %13471 = vst.msk [vmem:[%s21494_s5 + $0x34] sm:$0xf] %vm13457_vm9, %v15400_v3  ;;  %v21888_v3 = vld [vmem:[#allocation8_spill] sm:$0xff] }
 0x6c8   : > { %13470 = vst.msk [vmem:[%s21494_s5 + $0x30] sm:$0xf] %vm13457_vm9, %v15399_v8  ;;  %v21889_v8 = vmax.f32 %v21274_v32, %v21888_v3 }
 0x6ca   : > { %v17532_v46 = vpop.f32.mrb[206].mxu1 }
 0x6cb   : > { %v13312_v53 = vmax.f32 %v21871_v16, %v17532_v46  ;;  %v12688_v49 = vpop.f32.mrb[207].mxu1 }
 0x6cc   : > { %v13311_v24 = vmax.f32 %v21872_v58, %v12688_v49  ;;  %v21890_v49 = vld [vmem:[#allocation2_spill] sm:$0xff]  ;;  %v21891_v58 = vld [vmem:[#allocation9_spill] sm:$0xff] }
 0x6cd   : > { %v15402_v37 = vpack.c.bf16 %v13312_v53, %v13312_v53 }
 0x6ce   : > { %v15401_v40 = vpack.c.bf16 %v13311_v24, %v13311_v24  ;;  %v21892_v24 = vmax.f32 %v21890_v49, %v21891_v58 }
 0x6cf   : > { %13473 = vst.msk [vmem:[%s21494_s5 + $0x3c] sm:$0xf] %vm13457_vm9, %v15402_v37 }
 0x6d0   : > { %13472 = vst.msk [vmem:[%s21494_s5 + $0x38] sm:$0xf] %vm13457_vm9, %v15401_v40  ;;  %v21893_v40 = vmax.f32 %v21294_v47, %v21475_v61 }
 0x6d2   : > { %v17543_v9 = vpop.f32.mrb[208].mxu1 }
 0x6d3   : > { %v13314_v54 = vmax.f32 %v21873_v29, %v17543_v9  ;;  %v12763_v14 = vpop.f32.mrb[209].mxu1 }
 0x6d4   : > { %v13313_v12 = vmax.f32 %v21874_v20, %v12763_v14  ;;  %v21894_v14 = vld [vmem:[#allocation10_spill] sm:$0xff] }
 0x6d5   : > { %v15404_v26 = vpack.c.bf16 %v13314_v54, %v13314_v54  ;;  %v21895_v20 = vmax.f32 %v21312_v55, %v21894_v14 }
 0x6d6   : > { %v15403_v25 = vpack.c.bf16 %v13313_v12, %v13313_v12 }
 0x6d7   : > { %13475 = vst.msk [vmem:[%s21494_s5 + $0x44] sm:$0xf] %vm13457_vm9, %v15404_v26 }
 0x6d8   : > { %13474 = vst.msk [vmem:[%s21494_s5 + $0x40] sm:$0xf] %vm13457_vm9, %v15403_v25  ;;  %v21896_v25 = vld [vmem:[#allocation3_spill] sm:$0xff] }
 0x6da   : > { %v17554_v63 = vpop.f32.mrb[210].mxu1 }
 0x6db   : > { %v13316_v62 = vmax.f32 %v21875_v23, %v17554_v63  ;;  %v12838_v13 = vpop.f32.mrb[211].mxu1  ;;  %v21897_v63 = vld [vmem:[#allocation11_spill] sm:$0xff] }
 0x6dc   : > { %v13315_v50 = vmax.f32 %v21876_v19, %v12838_v13  ;;  %v21898_v23 = vmax.f32 %v21896_v25, %v21897_v63 }
 0x6dd   : > { %v15406_v17 = vpack.c.bf16 %v13316_v62, %v13316_v62 }
 0x6de   : > { %v15405_v59 = vpack.c.bf16 %v13315_v50, %v13315_v50 }
 0x6df   : > { %13477 = vst.msk [vmem:[%s21494_s5 + $0x4c] sm:$0xf] %vm13457_vm9, %v15406_v17 }
 0x6e0   : > { %13476 = vst.msk [vmem:[%s21494_s5 + $0x48] sm:$0xf] %vm13457_vm9, %v15405_v59 }
 0x6e2   : > { %v17565_v43 = vpop.f32.mrb[212].mxu1 }
 0x6e3   : > { %v13318_v10 = vmax.f32 %v21877_v56, %v17565_v43  ;;  %v12913_v11 = vpop.f32.mrb[213].mxu1 }
 0x6e4   : > { %v13317_v38 = vmax.f32 %v21878_v7, %v12913_v11 }
 0x6e5   : > { %v15408_v57 = vpack.c.bf16 %v13318_v10, %v13318_v10 }
 0x6e6   : > { %v15407_v60 = vpack.c.bf16 %v13317_v38, %v13317_v38 }
 0x6e7   : > { %13479 = vst.msk [vmem:[%s21494_s5 + $0x54] sm:$0xf] %vm13457_vm9, %v15408_v57 }
 0x6e8   : > { %13478 = vst.msk [vmem:[%s21494_s5 + $0x50] sm:$0xf] %vm13457_vm9, %v15407_v60 }
 0x6ea   : > { %v17576_v44 = vpop.f32.mrb[214].mxu1 }
 0x6eb   : > { %v13320_v45 = vmax.f32 %v21879_v52, %v17576_v44  ;;  %v12988_v18 = vpop.f32.mrb[215].mxu1 }
 0x6ec   : > { %v13319_v39 = vmax.f32 %v21881_v35, %v12988_v18 }
 0x6ed   : > { %v15410_v22 = vpack.c.bf16 %v13320_v45, %v13320_v45 }
 0x6ee   : > { %v15409_v6 = vpack.c.bf16 %v13319_v39, %v13319_v39 }
 0x6ef   : > { %13481 = vst.msk [vmem:[%s21494_s5 + $0x5c] sm:$0xf] %vm13457_vm9, %v15410_v22 }
 0x6f0   : > { %13480 = vst.msk [vmem:[%s21494_s5 + $0x58] sm:$0xf] %vm13457_vm9, %v15409_v6 }
 0x6f2   : > { %v17587_v0 = vpop.f32.mrb[216].mxu1 }
 0x6f3   : > { %v13322_v42 = vmax.f32 %v21883_v28, %v17587_v0  ;;  %v13063_v1 = vpop.f32.mrb[217].mxu1 }
 0x6f4   : > { %v13321_v21 = vmax.f32 %v21885_v33, %v13063_v1 }
 0x6f5   : > { %v15412_v31 = vpack.c.bf16 %v13322_v42, %v13322_v42 }
 0x6f6   : > { %v15411_v2 = vpack.c.bf16 %v13321_v21, %v13321_v21 }
 0x6f7   : > { %13483 = vst.msk [vmem:[%s21494_s5 + $0x64] sm:$0xf] %vm13457_vm9, %v15412_v31 }
 0x6f8   : > { %13482 = vst.msk [vmem:[%s21494_s5 + $0x60] sm:$0xf] %vm13457_vm9, %v15411_v2 }
 0x6fa   : > { %v17598_v51 = vpop.f32.mrb[218].mxu1 }
 0x6fb   : > { %v13324_v4 = vmax.f32 %v21887_v15, %v17598_v51  ;;  %v13138_v41 = vpop.f32.mrb[219].mxu1 }
 0x6fc   : > { %v13323_v46 = vmax.f32 %v21889_v8, %v13138_v41 }
 0x6fd   : > { %v15414_v48 = vpack.c.bf16 %v13324_v4, %v13324_v4 }
 0x6fe   : > { %v15413_v16 = vpack.c.bf16 %v13323_v46, %v13323_v46 }
 0x6ff   : > { %13485 = vst.msk [vmem:[%s21494_s5 + $0x6c] sm:$0xf] %vm13457_vm9, %v15414_v48 }
 0x700   : > { %13484 = vst.msk [vmem:[%s21494_s5 + $0x68] sm:$0xf] %vm13457_vm9, %v15413_v16 }
 0x702   : > { %v17609_v53 = vpop.f32.mrb[220].mxu1 }
 0x703   : > { %v13326_v37 = vmax.f32 %v21892_v24, %v17609_v53  ;;  %v13213_v36 = vpop.f32.mrb[221].mxu1 }
 0x704   : > { %v13325_v9 = vmax.f32 %v21893_v40, %v13213_v36 }
 0x705   : > { %v15416_v32 = vpack.c.bf16 %v13326_v37, %v13326_v37 }
 0x706   : > { %v15415_v29 = vpack.c.bf16 %v13325_v9, %v13325_v9 }
 0x707   : > { %13487 = vst.msk [vmem:[%s21494_s5 + $0x74] sm:$0xf] %vm13457_vm9, %v15416_v32 }
 0x708   : > { %13486 = vst.msk [vmem:[%s21494_s5 + $0x70] sm:$0xf] %vm13457_vm9, %v15415_v29 }
 0x70a   : > { %v17620_v54 = vpop.f32.mrb[222].mxu1 }
 0x70b   : > { %v13328_v12 = vmax.f32 %v21895_v20, %v17620_v54  ;;  %v13288_v26 = vpop.f32.mrb[223].mxu1 }
 0x70c   : > { %v13327_v62 = vmax.f32 %v21898_v23, %v13288_v26 }
 0x70d   : > { %v15418_v13 = vpack.c.bf16 %v13328_v12, %v13328_v12 }
 0x70e   : > { %v15417_v19 = vpack.c.bf16 %v13327_v62, %v13327_v62 }
 0x70f   : > { %13489 = vst.msk [vmem:[%s21494_s5 + $0x7c] sm:$0xf] %vm13457_vm9, %v15418_v13 }
 0x710   : > { %13488 = vst.msk [vmem:[%s21494_s5 + $0x78] sm:$0xf] %vm13457_vm9, %v15417_v19 }
 0x711 PF: > { %s13_s12 = sadd.s32 1, %s19266_s12  }
 0x712   : > { %p10_p4 = scmp.ge.s32.totalorder %s13_s12, 4  }
 0x714   :  { %12 = sbr.rel (!%p10_p4) target bundleno = 1 (0x1), region = 74 }

</bundles_post_ra>
